<compile_context>
chip_gen: v6e
topology: v6e:2x2x1
jax: 0.10.0
libtpu: 0.0.40
codegen_flags: <defaults>
</compile_context>

<pallas_src>
import math
from functools import partial

import jax
import jax.numpy as jnp
from jax.experimental import pallas as pl
from jax.experimental.pallas import tpu as pltpu

BN_EPS = 1e-3
ACT_DTYPE = jnp.bfloat16                 # inter-layer activation storage dtype
VMEM_LIMIT_BYTES = 32 * 1024 * 1024      # well under v7x's 64 MiB physical VMEM


def _cparams(*semantics):
    return pltpu.CompilerParams(
        dimension_semantics=tuple(semantics),
        vmem_limit_bytes=VMEM_LIMIT_BYTES,
    )


# ----------------------------- activations ---------------------------------
def _apply_act(y, act):
    if act == "relu":
        return jnp.maximum(y, 0.0)
    if act == "hardswish":
        return y * jnp.clip(y + 3.0, 0.0, 6.0) * (1.0 / 6.0)
    if act == "hardsigmoid":
        return jnp.clip(y + 3.0, 0.0, 6.0) * (1.0 / 6.0)
    return y


# ---------------------- fused 1x1-conv (matmul) kernel ----------------------
def _mm_kernel(*refs, act, has_skip):
    x_ref, w_ref, b_ref = refs[0], refs[1], refs[2]
    if has_skip:
        s_ref, o_ref = refs[3], refs[4]
    else:
        o_ref = refs[3]
    y = jnp.dot(x_ref[...], w_ref[...],
                preferred_element_type=jnp.float32) + b_ref[...]
    y = _apply_act(y, act)
    if has_skip:
        y = y + s_ref[...].astype(jnp.float32)     # residual fused in epilogue
    o_ref[...] = y.astype(o_ref.dtype)


def _row_tile(R):
    # Largest row tile that divides R while still giving >=2 grid programs
    # (keeps both v7x TensorCores busy); tiny late-block row counts run as a
    # single program.
    for t in (1024, 512, 256, 128, 64):
        if R % t == 0 and R // t >= 2:
            return t
    return R


def conv1x1(x2d, w, b, act=None, skip=None, out_dtype=ACT_DTYPE):
    """y = act(x2d @ w + b) (+ skip).  x2d: (B*R, K) bf16, w: (K, N) bf16,
    b: (N,) f32, skip: (B*R, N) bf16 optional.  Batch is folded into rows."""
    R, Kd = x2d.shape
    N = w.shape[1]
    TM = _row_tile(R)
    grid = (R // TM,)

    in_specs = [pl.BlockSpec((TM, Kd), lambda m: (m, 0)),
                pl.BlockSpec((Kd, N), lambda m: (0, 0)),
                pl.BlockSpec((1, N), lambda m: (0, 0))]
    inputs = [x2d, w, b.reshape(1, N)]
    if skip is not None:
        in_specs.append(pl.BlockSpec((TM, N), lambda m: (m, 0)))
        inputs.append(skip)

    return pl.pallas_call(
        partial(_mm_kernel, act=act, has_skip=skip is not None),
        out_shape=jax.ShapeDtypeStruct((R, N), out_dtype),
        grid=grid,
        in_specs=in_specs,
        out_specs=pl.BlockSpec((TM, N), lambda m: (m, 0)),
        compiler_params=_cparams("parallel"),
    )(*inputs)


# ----------------- depthwise conv (+ fused SE) kernels -----------------------
def _se_scale(y, w1_ref, b1_ref, w2_ref, b2_ref):
    """Squeeze-excite: GAP + fc1 + relu + fc2 + hardsigmoid -> (1, C) scale."""
    C = y.shape[-1]
    pooled = jnp.mean(y, axis=(0, 1), keepdims=True).reshape(1, C)
    h1 = jnp.maximum(
        jnp.dot(pooled, w1_ref[...], preferred_element_type=jnp.float32)
        + b1_ref[...], 0.0)
    s = jnp.dot(h1, w2_ref[...], preferred_element_type=jnp.float32) + b2_ref[...]
    return _apply_act(s, "hardsigmoid")


def _dw_kernel_pad(*refs, K, pad, act, use_se):
    """Stride-1 depthwise conv; padding is done in-kernel via a VMEM scratch
    (no XLA-side jnp.pad materialization).  SE scale fused into the epilogue."""
    x_ref, w_ref, b_ref = refs[0], refs[1], refs[2]
    if use_se:
        w1_ref, b1_ref, w2_ref, b2_ref, o_ref, xp_ref = refs[3:9]
    else:
        o_ref, xp_ref = refs[3], refs[4]
    H, W = x_ref.shape[1], x_ref.shape[2]
    OH, OW, C = o_ref.shape[1], o_ref.shape[2], o_ref.shape[3]

    xp_ref[...] = jnp.zeros_like(xp_ref)
    xp_ref[pad:pad + H, pad:pad + W, :] = x_ref[0].astype(jnp.float32)

    acc = jnp.zeros((OH, OW, C), jnp.float32)
    # TODO(synk): each kw shift relayouts the sublane axis; a width-on-lanes
    # layout with pltpu.roll would move these shifts to the idle XLU slot.
    for kh in range(K):
        for kw in range(K):
            acc = acc + xp_ref[kh:kh + OH, kw:kw + OW, :] * w_ref[kh, kw, :]
    y = _apply_act(acc + b_ref[...], act)
    if use_se:
        y = y * _se_scale(y, w1_ref, b1_ref, w2_ref, b2_ref)
    o_ref[0] = y.astype(o_ref.dtype)


def _dw_kernel_phase(*refs, K, act, use_se):
    """Stride-2 depthwise conv over a stride^2 phase-decomposed input; only
    contiguous static slices are used.  SE scale fused into the epilogue."""
    x_ref, w_ref, b_ref = refs[0], refs[1], refs[2]
    if use_se:
        w1_ref, b1_ref, w2_ref, b2_ref, o_ref = refs[3:8]
    else:
        o_ref = refs[3]
    OH, OW, C = o_ref.shape[1], o_ref.shape[2], o_ref.shape[3]

    acc = jnp.zeros((OH, OW, C), jnp.float32)
    for kh in range(K):
        for kw in range(K):
            p = (kh % 2) * 2 + (kw % 2)
            qh, qw = kh // 2, kw // 2
            tap = x_ref[p, 0, qh:qh + OH, qw:qw + OW, :].astype(jnp.float32)
            acc = acc + tap * w_ref[kh, kw, :]
    y = _apply_act(acc + b_ref[...], act)
    if use_se:
        y = y * _se_scale(y, w1_ref, b1_ref, w2_ref, b2_ref)
    o_ref[0] = y.astype(o_ref.dtype)


def _phase_split_s2(x, K, padding):
    """Pad + decompose into 4 stride-2 phase sub-images (XLA side, bf16)."""
    B, H, W, C = x.shape
    OH = (H + 2 * padding - K) // 2 + 1
    OW = (W + 2 * padding - K) // 2 + 1
    Hs, Ws = OH + (K - 1) // 2, OW + (K - 1) // 2
    Ht, Wt = 2 * Hs, 2 * Ws
    xp = jnp.pad(x, ((0, 0),
                     (padding, Ht - H - padding),
                     (padding, Wt - W - padding),
                     (0, 0)))
    phases = jnp.stack(
        [xp[:, ph::2, pw::2, :] for ph in range(2) for pw in range(2)], axis=0)
    return phases, OH, OW, Hs, Ws


def depthwise_se_block(x, wdw, bdw, stride, padding, act, se_params):
    """Depthwise KxK conv (BN folded) + activation, with the whole SE block
    (GAP + fc1 + relu + fc2 + hardsigmoid + channel scale) fused into the
    kernel epilogue.  Returns (B, OH, OW, C) bf16."""
    B, H, W, C = x.shape
    K = wdw.shape[0]
    use_se = se_params is not None

    if stride == 1:
        Hp, Wp = H + 2 * padding, W + 2 * padding
        OH, OW = Hp - K + 1, Wp - K + 1
        in_specs = [pl.BlockSpec((1, H, W, C), lambda b: (b, 0, 0, 0))]
        inputs = [x]
        scratch = [pltpu.VMEM((Hp, Wp, C), jnp.float32)]
        kernel = partial(_dw_kernel_pad, K=K, pad=padding, act=act, use_se=use_se)
    else:
        phases, OH, OW, Hs, Ws = _phase_split_s2(x, K, padding)
        in_specs = [pl.BlockSpec((4, 1, Hs, Ws, C), lambda b: (0, b, 0, 0, 0))]
        inputs = [phases]
        scratch = []
        kernel = partial(_dw_kernel_phase, K=K, act=act, use_se=use_se)

    in_specs += [pl.BlockSpec((K, K, C), lambda b: (0, 0, 0)),
                 pl.BlockSpec((1, C), lambda b: (0, 0))]
    inputs += [wdw, bdw.reshape(1, C)]
    if use_se:
        w1, b1 = se_params["fc1"]["w"], se_params["fc1"]["b"]
        w2, b2 = se_params["fc2"]["w"], se_params["fc2"]["b"]
        Sq = w1.shape[1]
        in_specs += [pl.BlockSpec((C, Sq), lambda b: (0, 0)),
                     pl.BlockSpec((1, Sq), lambda b: (0, 0)),
                     pl.BlockSpec((Sq, C), lambda b: (0, 0)),
                     pl.BlockSpec((1, C), lambda b: (0, 0))]
        inputs += [w1, b1.reshape(1, Sq), w2, b2.reshape(1, C)]

    # TODO(synk): at large resolutions this per-batch full-map block should be
    # tiled over output rows (SE GAP accumulated in scratch) for v7x's 64 MiB VMEM.
    return pl.pallas_call(
        kernel,
        out_shape=jax.ShapeDtypeStruct((B, OH, OW, C), ACT_DTYPE),
        grid=(B,),
        in_specs=in_specs,
        out_specs=pl.BlockSpec((1, OH, OW, C), lambda b: (b, 0, 0, 0)),
        scratch_shapes=scratch,
        compiler_params=_cparams("parallel"),
    )(*inputs)


# ------------------------------- stem ---------------------------------------
def _im2col_stem(x, K=3, stride=2, padding=1):
    """im2col for the 3-channel stem conv; built once in XLA (a few KB) so the
    stem becomes a single (B*OH*OW, 27) @ (27, Cout) MXU matmul."""
    B, H, W, C = x.shape
    OH = (H + 2 * padding - K) // stride + 1
    OW = (W + 2 * padding - K) // stride + 1
    xp = jnp.pad(x, ((0, 0), (padding, padding), (padding, padding), (0, 0)))
    cols = jnp.concatenate(
        [xp[:, kh:kh + stride * OH:stride, kw:kw + stride * OW:stride, :]
         for kh in range(K) for kw in range(K)], axis=-1)
    return cols.reshape(B * OH * OW, K * K * C).astype(ACT_DTYPE), OH, OW


# ------------- head: lastconv + hardswish + GAP + classifier -----------------
def _head_kernel(x_ref, wl_ref, bl_ref, w1_ref, b1_ref, w2_ref, b2_ref, o_ref):
    x = x_ref[0]                                              # (HW, Cin) bf16
    y = jnp.dot(x, wl_ref[...], preferred_element_type=jnp.float32) + bl_ref[...]
    y = _apply_act(y, "hardswish")                            # lastconv + HS
    pooled = jnp.mean(y, axis=0, keepdims=True)               # GAP -> (1, Cl)
    h1 = jnp.dot(pooled, w1_ref[...], preferred_element_type=jnp.float32) + b1_ref[...]
    h1 = _apply_act(h1, "hardswish")
    # TODO(synk): nn.Dropout(0.2) treated as identity (inference semantics)
    o_ref[0] = jnp.dot(h1, w2_ref[...], preferred_element_type=jnp.float32) + b2_ref[...]


def head_forward(x3, lastconv, fc1, fc2):
    B, R, C = x3.shape
    Cl = lastconv["w"].shape[1]
    L = fc1["w"].shape[1]
    NC = fc2["w"].shape[1]
    out = pl.pallas_call(
        _head_kernel,
        out_shape=jax.ShapeDtypeStruct((B, 1, NC), jnp.float32),
        grid=(B,),
        in_specs=[
            pl.BlockSpec((1, R, C), lambda b: (b, 0, 0)),
            pl.BlockSpec((C, Cl), lambda b: (0, 0)),
            pl.BlockSpec((1, Cl), lambda b: (0, 0)),
            pl.BlockSpec((Cl, L), lambda b: (0, 0)),
            pl.BlockSpec((1, L), lambda b: (0, 0)),
            pl.BlockSpec((L, NC), lambda b: (0, 0)),
            pl.BlockSpec((1, NC), lambda b: (0, 0)),
        ],
        out_specs=pl.BlockSpec((1, 1, NC), lambda b: (b, 0, 0)),
        compiler_params=_cparams("parallel"),
    )(x3, lastconv["w"], lastconv["b"].reshape(1, Cl),
      fc1["w"], fc1["b"].reshape(1, L),
      fc2["w"], fc2["b"].reshape(1, NC))
    return out.reshape(B, NC)


# ------------------------------- config --------------------------------------
def _make_divisible(v, divisor=8, min_value=None):
    if min_value is None:
        min_value = divisor
    rounds = int(v + divisor / 2) // divisor * divisor
    new_v = max(min_value, rounds)
    if new_v < 0.9 * v:
        new_v += divisor
    return new_v


def bneck_conf(inp, kernel, exp, out, use_se, activation, stride, dilation,
               width_mult=1.0):
    return dict(
        input_channels=_make_divisible(inp * width_mult, 8),
        kernel=kernel,
        expanded_channels=_make_divisible(exp * width_mult, 8),
        out_channels=_make_divisible(out * width_mult, 8),
        use_se=use_se,
        use_hs=(activation == "HS"),
        stride=stride,
        dilation=dilation,
    )


# --------------------------- parameter initialization ------------------------
class KeyGen:
    def __init__(self, seed):
        self._key = jax.random.PRNGKey(seed)

    def __call__(self):
        self._key, k = jax.random.split(self._key)
        return k


# BN(eval) with gamma=1, beta=0, running_mean=0, running_var=1 folds to a
# constant scale of 1/sqrt(1+eps) and zero bias.
_BN_SCALE = 1.0 / math.sqrt(1.0 + BN_EPS)


def init_conv_bn(kg, cin, cout, k, dtype=jnp.float32):
    fan_out = cout * k * k
    std = math.sqrt(2.0 / fan_out)              # kaiming_normal_(mode='fan_out')
    w = std * jax.random.normal(kg(), (k, k, cin, cout), jnp.float32) * _BN_SCALE
    b = jnp.zeros((cout,), jnp.float32)
    if k == 1:
        w = w.reshape(cin, cout)
    return dict(w=w.astype(dtype), b=b)


def init_dwconv_bn(kg, c, k):
    fan_out = k * k                             # groups == c
    std = math.sqrt(2.0 / fan_out)
    w = std * jax.random.normal(kg(), (k, k, c), jnp.float32) * _BN_SCALE
    return dict(w=w, b=jnp.zeros((c,), jnp.float32))


def init_fc(kg, cin, cout, std):
    return dict(w=std * jax.random.normal(kg(), (cin, cout), jnp.float32),
                b=jnp.zeros((cout,), jnp.float32))


def init_se(kg, channels, squeeze):
    return dict(fc1=init_fc(kg, channels, squeeze, math.sqrt(2.0 / squeeze)),
                fc2=init_fc(kg, squeeze, channels, math.sqrt(2.0 / channels)))


def init_params(kg, settings, last_channel, num_classes):
    params = {}
    firstconv_out = settings[0]["input_channels"]
    stem = init_conv_bn(kg, 3, firstconv_out, 3)
    params["stem"] = dict(w=stem["w"].reshape(27, firstconv_out).astype(jnp.bfloat16),
                          b=stem["b"])
    blocks = []
    for cnf in settings:
        bp = {}
        if cnf["input_channels"] != cnf["expanded_channels"]:
            bp["expand"] = init_conv_bn(kg, cnf["input_channels"],
                                        cnf["expanded_channels"], 1, jnp.bfloat16)
        bp["dw"] = init_dwconv_bn(kg, cnf["expanded_channels"], cnf["kernel"])
        if cnf["use_se"]:
            # matches the reference module: _make_divisible(input_channels * 4, 8)
            squeeze = _make_divisible(cnf["input_channels"] * 4, 8)
            bp["se"] = init_se(kg, cnf["expanded_channels"], squeeze)
        bp["project"] = init_conv_bn(kg, cnf["expanded_channels"],
                                     cnf["out_channels"], 1, jnp.bfloat16)
        blocks.append(bp)
    params["blocks"] = blocks
    lastconv_in = settings[-1]["out_channels"]
    lastconv_out = 6 * lastconv_in
    params["lastconv"] = init_conv_bn(kg, lastconv_in, lastconv_out, 1, jnp.bfloat16)
    params["fc1"] = init_fc(kg, lastconv_out, last_channel, 0.001)
    params["fc2"] = init_fc(kg, last_channel, num_classes, 0.001)
    return params


# ------------------------------- forward --------------------------------------
def mobilenet_v3_forward(params, settings, x_nchw):
    x = jnp.transpose(x_nchw, (0, 2, 3, 1)).astype(jnp.float32)   # NCHW -> NHWC
    B = x.shape[0]

    # stem: Conv 3x3 s2 + BN + Hardswish as a single fused matmul
    cols, OH, OW = _im2col_stem(x)
    y = conv1x1(cols, params["stem"]["w"], params["stem"]["b"], act="hardswish")
    x = y.reshape(B, OH, OW, -1)                                   # bf16

    for cnf, bp in zip(settings, params["blocks"]):
        act = "hardswish" if cnf["use_hs"] else "relu"
        B_, H_, W_, Cin = x.shape
        x2d = x.reshape(B_ * H_ * W_, Cin)

        h = x
        if "expand" in bp:
            h2 = conv1x1(x2d, bp["expand"]["w"], bp["expand"]["b"], act=act)
            h = h2.reshape(B_, H_, W_, -1)

        stride = 1 if cnf["dilation"] > 1 else cnf["stride"]
        padding = (cnf["kernel"] - 1) // 2 * cnf["dilation"]
        # TODO(synk): dilation > 1 not implemented (all configs here use dilation=1)
        h = depthwise_se_block(h, bp["dw"]["w"], bp["dw"]["b"],
                               stride, padding, act, bp.get("se"))

        Bo, OH_, OW_, Ce = h.shape
        use_res = cnf["stride"] == 1 and cnf["input_channels"] == cnf["out_channels"]
        skip = x2d if use_res else None
        y2 = conv1x1(h.reshape(Bo * OH_ * OW_, Ce),
                     bp["project"]["w"], bp["project"]["b"],
                     act=None, skip=skip)
        x = y2.reshape(Bo, OH_, OW_, -1)

    # head: lastconv 1x1 + BN + HS, AdaptiveAvgPool2d(1), flatten, classifier
    B_, Hh, Wh, C = x.shape
    return head_forward(x.reshape(B_, Hh * Wh, C),
                        params["lastconv"], params["fc1"], params["fc2"])


# --------------------------------- main ---------------------------------------
if __name__ == "__main__":
    # Small MobileNetV3-style config (width_mult=1.0)
    settings = [
        bneck_conf(16, 3, 16, 16, True, "RE", 2, 1),
        bneck_conf(16, 3, 72, 24, False, "RE", 2, 1),
        bneck_conf(24, 3, 88, 24, False, "RE", 1, 1),   # residual block
        bneck_conf(24, 5, 96, 40, True, "HS", 2, 1),
    ]
    last_channel = 64
    num_classes = 10

    kg = KeyGen(0)
    params = init_params(kg, settings, last_channel, num_classes)

    x = jax.random.normal(jax.random.PRNGKey(0), (2, 3, 32, 32), jnp.float32)

    fwd = jax.jit(lambda p, inp: mobilenet_v3_forward(p, settings, inp))
    out = jax.block_until_ready(fwd(params, x))
    assert out.shape == (2, num_classes), out.shape
    assert bool(jnp.all(jnp.isfinite(out)))
    print("KERNEL_OK")
</pallas_src>

<mosaic_0001>
module attributes {stable_mosaic.version = 11 : i64} {
  func.func @_mm_kernel(%arg0: i32, %arg1: memref<256x27xbf16, #tpu.memory_space<vmem>>, %arg2: memref<27x16xbf16, #tpu.memory_space<vmem>>, %arg3: memref<1x16xf32, #tpu.memory_space<vmem>>, %arg4: memref<256x16xbf16, #tpu.memory_space<vmem>>) attributes {dimension_semantics = [#tpu.dimension_semantics<parallel>], iteration_bounds = array<i64: 2>, scalar_prefetch = 0 : i64, scratch_operands = 0 : i64, tpu.core_type = #tpu.core_type<tc>, window_params = [{transform_indices = @transform_0, window_bounds = array<i64: 256, 27>}, {pipeline_mode = #tpu.pipeline_mode<synchronous>, transform_indices = @transform_1, window_bounds = array<i64: 27, 16>}, {pipeline_mode = #tpu.pipeline_mode<synchronous>, transform_indices = @transform_2, window_bounds = array<i64: 1, 16>}, {transform_indices = @transform_3, window_bounds = array<i64: 256, 16>}]} {
    %c0 = arith.constant 0 : index
    %c0_0 = arith.constant 0 : index
    %0 = vector.load %arg1[%c0, %c0_0] : memref<256x27xbf16, #tpu.memory_space<vmem>>, vector<256x27xbf16>
    %c0_1 = arith.constant 0 : index
    %c0_2 = arith.constant 0 : index
    %1 = vector.load %arg2[%c0_1, %c0_2] : memref<27x16xbf16, #tpu.memory_space<vmem>>, vector<27x16xbf16>
    %cst = arith.constant dense<0.000000e+00> : vector<256x16xf32>
    %2 = tpu.matmul %0, %1, %cst {dimension_numbers = #tpu.dot_dimension_numbers<[1], [0], [0], [1], [0, 0, 1, 1], [], []>} : vector<256x27xbf16>, vector<27x16xbf16>, vector<256x16xf32> -> vector<256x16xf32>
    %c0_3 = arith.constant 0 : index
    %c0_4 = arith.constant 0 : index
    %3 = vector.load %arg3[%c0_3, %c0_4] : memref<1x16xf32, #tpu.memory_space<vmem>>, vector<1x16xf32>
    %4 = vector.broadcast %3 : vector<1x16xf32> to vector<256x16xf32>
    %5 = arith.addf %2, %4 : vector<256x16xf32>
    %cst_5 = arith.constant 3.000000e+00 : f32
    %6 = vector.broadcast %cst_5 : f32 to vector<256x16xf32>
    %7 = arith.addf %5, %6 : vector<256x16xf32>
    %cst_6 = arith.constant 0.000000e+00 : f32
    %cst_7 = arith.constant 6.000000e+00 : f32
    %8 = vector.broadcast %cst_6 : f32 to vector<256x16xf32>
    %9 = arith.maximumf %8, %7 : vector<256x16xf32>
    %10 = vector.broadcast %cst_7 : f32 to vector<256x16xf32>
    %11 = arith.minimumf %10, %9 : vector<256x16xf32>
    %12 = arith.mulf %5, %11 : vector<256x16xf32>
    %cst_8 = arith.constant 0.166666672 : f32
    %13 = vector.broadcast %cst_8 : f32 to vector<256x16xf32>
    %14 = arith.mulf %12, %13 : vector<256x16xf32>
    %15 = arith.truncf %14 : vector<256x16xf32> to vector<256x16xbf16>
    %c0_9 = arith.constant 0 : index
    %c0_10 = arith.constant 0 : index
    %16 = vector.load %arg4[%c0_9, %c0_10] : memref<256x16xbf16, #tpu.memory_space<vmem>>, vector<256x16xbf16>
    tpu.vector_store %arg4[%c0_9, %c0_10], %15 {strides = array<i32>} : memref<256x16xbf16, #tpu.memory_space<vmem>>, vector<256x16xbf16>,
    return
  }
  func.func @transform_0(%arg0: i32) -> (i32, i32) {
    %c0_i32 = arith.constant 0 : i32
    %c0_i32_0 = arith.constant 0 : i32
    return %arg0, %c0_i32 : i32, i32
  }
  func.func @transform_1(%arg0: i32) -> (i32, i32) {
    %c0_i32 = arith.constant 0 : i32
    %c0_i32_0 = arith.constant 0 : i32
    %c0_i32_1 = arith.constant 0 : i32
    return %c0_i32, %c0_i32_0 : i32, i32
  }
  func.func @transform_2(%arg0: i32) -> (i32, i32) {
    %c0_i32 = arith.constant 0 : i32
    %c0_i32_0 = arith.constant 0 : i32
    %c0_i32_1 = arith.constant 0 : i32
    return %c0_i32, %c0_i32_0 : i32, i32
  }
  func.func @transform_3(%arg0: i32) -> (i32, i32) {
    %c0_i32 = arith.constant 0 : i32
    %c0_i32_0 = arith.constant 0 : i32
    return %arg0, %c0_i32 : i32, i32
  }
}

module attributes {stable_mosaic.version = 11 : i64} {
  func.func @_dw_kernel_phase(%arg0: i32, %arg1: memref<4x1x9x9x16xbf16, #tpu.memory_space<vmem>>, %arg2: memref<3x3x16xf32, #tpu.memory_space<vmem>>, %arg3: memref<1x16xf32, #tpu.memory_space<vmem>>, %arg4: memref<16x64xf32, #tpu.memory_space<vmem>>, %arg5: memref<1x64xf32, #tpu.memory_space<vmem>>, %arg6: memref<64x16xf32, #tpu.memory_space<vmem>>, %arg7: memref<1x16xf32, #tpu.memory_space<vmem>>, %arg8: memref<1x8x8x16xbf16, #tpu.memory_space<vmem>>) attributes {dimension_semantics = [#tpu.dimension_semantics<parallel>], iteration_bounds = array<i64: 2>, scalar_prefetch = 0 : i64, scratch_operands = 0 : i64, tpu.core_type = #tpu.core_type<tc>, window_params = [{transform_indices = @transform_0, window_bounds = array<i64: 4, 1, 9, 9, 16>}, {pipeline_mode = #tpu.pipeline_mode<synchronous>, transform_indices = @transform_1, window_bounds = array<i64: 3, 3, 16>}, {pipeline_mode = #tpu.pipeline_mode<synchronous>, transform_indices = @transform_2, window_bounds = array<i64: 1, 16>}, {pipeline_mode = #tpu.pipeline_mode<synchronous>, transform_indices = @transform_3, window_bounds = array<i64: 16, 64>}, {pipeline_mode = #tpu.pipeline_mode<synchronous>, transform_indices = @transform_4, window_bounds = array<i64: 1, 64>}, {pipeline_mode = #tpu.pipeline_mode<synchronous>, transform_indices = @transform_5, window_bounds = array<i64: 64, 16>}, {pipeline_mode = #tpu.pipeline_mode<synchronous>, transform_indices = @transform_6, window_bounds = array<i64: 1, 16>}, {transform_indices = @transform_7, window_bounds = array<i64: 1, 8, 8, 16>}]} {
    %cst = arith.constant 0.000000e+00 : f32
    %0 = vector.broadcast %cst : f32 to vector<8x8x16xf32>
    %c0 = arith.constant 0 : index
    %c0_0 = arith.constant 0 : index
    %c0_1 = arith.constant 0 : index
    %c0_2 = arith.constant 0 : index
    %c0_3 = arith.constant 0 : index
    %1 = vector.load %arg1[%c0, %c0_0, %c0_1, %c0_2, %c0_3] : memref<4x1x9x9x16xbf16, #tpu.memory_space<vmem>>, vector<1x1x8x8x16xbf16>
    %2 = vector.shape_cast %1 : vector<1x1x8x8x16xbf16> to vector<8x8x16xbf16>
    %3 = arith.extf %2 : vector<8x8x16xbf16> to vector<8x8x16xf32>
    %c0_4 = arith.constant 0 : index
    %c0_5 = arith.constant 0 : index
    %c0_6 = arith.constant 0 : index
    %4 = vector.load %arg2[%c0_4, %c0_5, %c0_6] : memref<3x3x16xf32, #tpu.memory_space<vmem>>, vector<1x1x16xf32>
    %5 = vector.shape_cast %4 : vector<1x1x16xf32> to vector<16xf32>
    %6 = vector.shape_cast %5 : vector<16xf32> to vector<1x1x16xf32>
    %7 = vector.broadcast %6 : vector<1x1x16xf32> to vector<8x8x16xf32>
    %8 = arith.mulf %3, %7 : vector<8x8x16xf32>
    %9 = arith.addf %0, %8 : vector<8x8x16xf32>
    %c1 = arith.constant 1 : index
    %c0_7 = arith.constant 0 : index
    %c0_8 = arith.constant 0 : index
    %c0_9 = arith.constant 0 : index
    %c0_10 = arith.constant 0 : index
    %10 = vector.load %arg1[%c1, %c0_7, %c0_8, %c0_9, %c0_10] : memref<4x1x9x9x16xbf16, #tpu.memory_space<vmem>>, vector<1x1x8x8x16xbf16>
    %11 = vector.shape_cast %10 : vector<1x1x8x8x16xbf16> to vector<8x8x16xbf16>
    %12 = arith.extf %11 : vector<8x8x16xbf16> to vector<8x8x16xf32>
    %c0_11 = arith.constant 0 : index
    %c1_12 = arith.constant 1 : index
    %c0_13 = arith.constant 0 : index
    %13 = vector.load %arg2[%c0_11, %c1_12, %c0_13] : memref<3x3x16xf32, #tpu.memory_space<vmem>>, vector<1x1x16xf32>
    %14 = vector.shape_cast %13 : vector<1x1x16xf32> to vector<16xf32>
    %15 = vector.shape_cast %14 : vector<16xf32> to vector<1x1x16xf32>
    %16 = vector.broadcast %15 : vector<1x1x16xf32> to vector<8x8x16xf32>
    %17 = arith.mulf %12, %16 : vector<8x8x16xf32>
    %18 = arith.addf %9, %17 : vector<8x8x16xf32>
    %c0_14 = arith.constant 0 : index
    %c0_15 = arith.constant 0 : index
    %c0_16 = arith.constant 0 : index
    %c1_17 = arith.constant 1 : index
    %c0_18 = arith.constant 0 : index
    %19 = vector.load %arg1[%c0_14, %c0_15, %c0_16, %c1_17, %c0_18] : memref<4x1x9x9x16xbf16, #tpu.memory_space<vmem>>, vector<1x1x8x8x16xbf16>
    %20 = vector.shape_cast %19 : vector<1x1x8x8x16xbf16> to vector<8x8x16xbf16>
    %21 = arith.extf %20 : vector<8x8x16xbf16> to vector<8x8x16xf32>
    %c0_19 = arith.constant 0 : index
    %c2 = arith.constant 2 : index
    %c0_20 = arith.constant 0 : index
    %22 = vector.load %arg2[%c0_19, %c2, %c0_20] : memref<3x3x16xf32, #tpu.memory_space<vmem>>, vector<1x1x16xf32>
    %23 = vector.shape_cast %22 : vector<1x1x16xf32> to vector<16xf32>
    %24 = vector.shape_cast %23 : vector<16xf32> to vector<1x1x16xf32>
    %25 = vector.broadcast %24 : vector<1x1x16xf32> to vector<8x8x16xf32>
    %26 = arith.mulf %21, %25 : vector<8x8x16xf32>
    %27 = arith.addf %18, %26 : vector<8x8x16xf32>
    %c2_21 = arith.constant 2 : index
    %c0_22 = arith.constant 0 : index
    %c0_23 = arith.constant 0 : index
    %c0_24 = arith.constant 0 : index
    %c0_25 = arith.constant 0 : index
    %28 = vector.load %arg1[%c2_21, %c0_22, %c0_23, %c0_24, %c0_25] : memref<4x1x9x9x16xbf16, #tpu.memory_space<vmem>>, vector<1x1x8x8x16xbf16>
    %29 = vector.shape_cast %28 : vector<1x1x8x8x16xbf16> to vector<8x8x16xbf16>
    %30 = arith.extf %29 : vector<8x8x16xbf16> to vector<8x8x16xf32>
    %c1_26 = arith.constant 1 : index
    %c0_27 = arith.constant 0 : index
    %c0_28 = arith.constant 0 : index
    %31 = vector.load %arg2[%c1_26, %c0_27, %c0_28] : memref<3x3x16xf32, #tpu.memory_space<vmem>>, vector<1x1x16xf32>
    %32 = vector.shape_cast %31 : vector<1x1x16xf32> to vector<16xf32>
    %33 = vector.shape_cast %32 : vector<16xf32> to vector<1x1x16xf32>
    %34 = vector.broadcast %33 : vector<1x1x16xf32> to vector<8x8x16xf32>
    %35 = arith.mulf %30, %34 : vector<8x8x16xf32>
    %36 = arith.addf %27, %35 : vector<8x8x16xf32>
    %c3 = arith.constant 3 : index
    %c0_29 = arith.constant 0 : index
    %c0_30 = arith.constant 0 : index
    %c0_31 = arith.constant 0 : index
    %c0_32 = arith.constant 0 : index
    %37 = vector.load %arg1[%c3, %c0_29, %c0_30, %c0_31, %c0_32] : memref<4x1x9x9x16xbf16, #tpu.memory_space<vmem>>, vector<1x1x8x8x16xbf16>
    %38 = vector.shape_cast %37 : vector<1x1x8x8x16xbf16> to vector<8x8x16xbf16>
    %39 = arith.extf %38 : vector<8x8x16xbf16> to vector<8x8x16xf32>
    %c1_33 = arith.constant 1 : index
    %c1_34 = arith.constant 1 : index
    %c0_35 = arith.constant 0 : index
    %40 = vector.load %arg2[%c1_33, %c1_34, %c0_35] : memref<3x3x16xf32, #tpu.memory_space<vmem>>, vector<1x1x16xf32>
    %41 = vector.shape_cast %40 : vector<1x1x16xf32> to vector<16xf32>
    %42 = vector.shape_cast %41 : vector<16xf32> to vector<1x1x16xf32>
    %43 = vector.broadcast %42 : vector<1x1x16xf32> to vector<8x8x16xf32>
    %44 = arith.mulf %39, %43 : vector<8x8x16xf32>
    %45 = arith.addf %36, %44 : vector<8x8x16xf32>
    %c2_36 = arith.constant 2 : index
    %c0_37 = arith.constant 0 : index
    %c0_38 = arith.constant 0 : index
    %c1_39 = arith.constant 1 : index
    %c0_40 = arith.constant 0 : index
    %46 = vector.load %arg1[%c2_36, %c0_37, %c0_38, %c1_39, %c0_40] : memref<4x1x9x9x16xbf16, #tpu.memory_space<vmem>>, vector<1x1x8x8x16xbf16>
    %47 = vector.shape_cast %46 : vector<1x1x8x8x16xbf16> to vector<8x8x16xbf16>
    %48 = arith.extf %47 : vector<8x8x16xbf16> to vector<8x8x16xf32>
    %c1_41 = arith.constant 1 : index
    %c2_42 = arith.constant 2 : index
    %c0_43 = arith.constant 0 : index
    %49 = vector.load %arg2[%c1_41, %c2_42, %c0_43] : memref<3x3x16xf32, #tpu.memory_space<vmem>>, vector<1x1x16xf32>
    %50 = vector.shape_cast %49 : vector<1x1x16xf32> to vector<16xf32>
    %51 = vector.shape_cast %50 : vector<16xf32> to vector<1x1x16xf32>
    %52 = vector.broadcast %51 : vector<1x1x16xf32> to vector<8x8x16xf32>
    %53 = arith.mulf %48, %52 : vector<8x8x16xf32>
    %54 = arith.addf %45, %53 : vector<8x8x16xf32>
    %c0_44 = arith.constant 0 : index
    %c0_45 = arith.constant 0 : index
    %c1_46 = arith.constant 1 : index
    %c0_47 = arith.constant 0 : index
    %c0_48 = arith.constant 0 : index
    %55 = vector.load %arg1[%c0_44, %c0_45, %c1_46, %c0_47, %c0_48] : memref<4x1x9x9x16xbf16, #tpu.memory_space<vmem>>, vector<1x1x8x8x16xbf16>
    %56 = vector.shape_cast %55 : vector<1x1x8x8x16xbf16> to vector<8x8x16xbf16>
    %57 = arith.extf %56 : vector<8x8x16xbf16> to vector<8x8x16xf32>
    %c2_49 = arith.constant 2 : index
    %c0_50 = arith.constant 0 : index
    %c0_51 = arith.constant 0 : index
    %58 = vector.load %arg2[%c2_49, %c0_50, %c0_51] : memref<3x3x16xf32, #tpu.memory_space<vmem>>, vector<1x1x16xf32>
    %59 = vector.shape_cast %58 : vector<1x1x16xf32> to vector<16xf32>
    %60 = vector.shape_cast %59 : vector<16xf32> to vector<1x1x16xf32>
    %61 = vector.broadcast %60 : vector<1x1x16xf32> to vector<8x8x16xf32>
    %62 = arith.mulf %57, %61 : vector<8x8x16xf32>
    %63 = arith.addf %54, %62 : vector<8x8x16xf32>
    %c1_52 = arith.constant 1 : index
    %c0_53 = arith.constant 0 : index
    %c1_54 = arith.constant 1 : index
    %c0_55 = arith.constant 0 : index
    %c0_56 = arith.constant 0 : index
    %64 = vector.load %arg1[%c1_52, %c0_53, %c1_54, %c0_55, %c0_56] : memref<4x1x9x9x16xbf16, #tpu.memory_space<vmem>>, vector<1x1x8x8x16xbf16>
    %65 = vector.shape_cast %64 : vector<1x1x8x8x16xbf16> to vector<8x8x16xbf16>
    %66 = arith.extf %65 : vector<8x8x16xbf16> to vector<8x8x16xf32>
    %c2_57 = arith.constant 2 : index
    %c1_58 = arith.constant 1 : index
    %c0_59 = arith.constant 0 : index
    %67 = vector.load %arg2[%c2_57, %c1_58, %c0_59] : memref<3x3x16xf32, #tpu.memory_space<vmem>>, vector<1x1x16xf32>
    %68 = vector.shape_cast %67 : vector<1x1x16xf32> to vector<16xf32>
    %69 = vector.shape_cast %68 : vector<16xf32> to vector<1x1x16xf32>
    %70 = vector.broadcast %69 : vector<1x1x16xf32> to vector<8x8x16xf32>
    %71 = arith.mulf %66, %70 : vector<8x8x16xf32>
    %72 = arith.addf %63, %71 : vector<8x8x16xf32>
    %c0_60 = arith.constant 0 : index
    %c0_61 = arith.constant 0 : index
    %c1_62 = arith.constant 1 : index
    %c1_63 = arith.constant 1 : index
    %c0_64 = arith.constant 0 : index
    %73 = vector.load %arg1[%c0_60, %c0_61, %c1_62, %c1_63, %c0_64] : memref<4x1x9x9x16xbf16, #tpu.memory_space<vmem>>, vector<1x1x8x8x16xbf16>
    %74 = vector.shape_cast %73 : vector<1x1x8x8x16xbf16> to vector<8x8x16xbf16>
    %75 = arith.extf %74 : vector<8x8x16xbf16> to vector<8x8x16xf32>
    %c2_65 = arith.constant 2 : index
    %c2_66 = arith.constant 2 : index
    %c0_67 = arith.constant 0 : index
    %76 = vector.load %arg2[%c2_65, %c2_66, %c0_67] : memref<3x3x16xf32, #tpu.memory_space<vmem>>, vector<1x1x16xf32>
    %77 = vector.shape_cast %76 : vector<1x1x16xf32> to vector<16xf32>
    %78 = vector.shape_cast %77 : vector<16xf32> to vector<1x1x16xf32>
    %79 = vector.broadcast %78 : vector<1x1x16xf32> to vector<8x8x16xf32>
    %80 = arith.mulf %75, %79 : vector<8x8x16xf32>
    %81 = arith.addf %72, %80 : vector<8x8x16xf32>
    %c0_68 = arith.constant 0 : index
    %c0_69 = arith.constant 0 : index
    %82 = vector.load %arg3[%c0_68, %c0_69] : memref<1x16xf32, #tpu.memory_space<vmem>>, vector<1x16xf32>
    %83 = vector.shape_cast %82 : vector<1x16xf32> to vector<1x1x16xf32>
    %84 = vector.broadcast %83 : vector<1x1x16xf32> to vector<8x8x16xf32>
    %85 = arith.addf %81, %84 : vector<8x8x16xf32>
    %cst_70 = arith.constant 0.000000e+00 : f32
    %86 = vector.broadcast %cst_70 : f32 to vector<8x8x16xf32>
    %87 = arith.maximumf %85, %86 : vector<8x8x16xf32>
    %cst_71 = arith.constant dense<0.000000e+00> : vector<16xf32>
    %88 = vector.multi_reduction <add>, %87, %cst_71 [0, 1] : vector<8x8x16xf32> to vector<16xf32>
    %89 = vector.shape_cast %88 : vector<16xf32> to vector<1x1x16xf32>
    %cst_72 = arith.constant 6.400000e+01 : f32
    %90 = vector.broadcast %cst_72 : f32 to vector<1x1x16xf32>
    %91 = arith.divf %89, %90 : vector<1x1x16xf32>
    %92 = vector.shape_cast %91 : vector<1x1x16xf32> to vector<1x16xf32>
    %c0_73 = arith.constant 0 : index
    %c0_74 = arith.constant 0 : index
    %93 = vector.load %arg4[%c0_73, %c0_74] : memref<16x64xf32, #tpu.memory_space<vmem>>, vector<16x64xf32>
    %cst_75 = arith.constant dense<0.000000e+00> : vector<1x64xf32>
    %94 = tpu.matmul %92, %93, %cst_75 {dimension_numbers = #tpu.dot_dimension_numbers<[1], [0], [0], [1], [0, 0, 1, 1], [], []>} : vector<1x16xf32>, vector<16x64xf32>, vector<1x64xf32> -> vector<1x64xf32>
    %c0_76 = arith.constant 0 : index
    %c0_77 = arith.constant 0 : index
    %95 = vector.load %arg5[%c0_76, %c0_77] : memref<1x64xf32, #tpu.memory_space<vmem>>, vector<1x64xf32>
    %96 = arith.addf %94, %95 : vector<1x64xf32>
    %cst_78 = arith.constant 0.000000e+00 : f32
    %97 = vector.broadcast %cst_78 : f32 to vector<1x64xf32>
    %98 = arith.maximumf %96, %97 : vector<1x64xf32>
    %c0_79 = arith.constant 0 : index
    %c0_80 = arith.constant 0 : index
    %99 = vector.load %arg6[%c0_79, %c0_80] : memref<64x16xf32, #tpu.memory_space<vmem>>, vector<64x16xf32>
    %cst_81 = arith.constant dense<0.000000e+00> : vector<1x16xf32>
    %100 = tpu.matmul %98, %99, %cst_81 {dimension_numbers = #tpu.dot_dimension_numbers<[1], [0], [0], [1], [0, 0, 1, 1], [], []>} : vector<1x64xf32>, vector<64x16xf32>, vector<1x16xf32> -> vector<1x16xf32>
    %c0_82 = arith.constant 0 : index
    %c0_83 = arith.constant 0 : index
    %101 = vector.load %arg7[%c0_82, %c0_83] : memref<1x16xf32, #tpu.memory_space<vmem>>, vector<1x16xf32>
    %102 = arith.addf %100, %101 : vector<1x16xf32>
    %cst_84 = arith.constant 3.000000e+00 : f32
    %103 = vector.broadcast %cst_84 : f32 to vector<1x16xf32>
    %104 = arith.addf %102, %103 : vector<1x16xf32>
    %cst_85 = arith.constant 0.000000e+00 : f32
    %cst_86 = arith.constant 6.000000e+00 : f32
    %105 = vector.broadcast %cst_85 : f32 to vector<1x16xf32>
    %106 = arith.maximumf %105, %104 : vector<1x16xf32>
    %107 = vector.broadcast %cst_86 : f32 to vector<1x16xf32>
    %108 = arith.minimumf %107, %106 : vector<1x16xf32>
    %cst_87 = arith.constant 0.166666672 : f32
    %109 = vector.broadcast %cst_87 : f32 to vector<1x16xf32>
    %110 = arith.mulf %108, %109 : vector<1x16xf32>
    %111 = vector.shape_cast %110 : vector<1x16xf32> to vector<1x1x16xf32>
    %112 = vector.broadcast %111 : vector<1x1x16xf32> to vector<8x8x16xf32>
    %113 = arith.mulf %87, %112 : vector<8x8x16xf32>
    %114 = arith.truncf %113 : vector<8x8x16xf32> to vector<8x8x16xbf16>
    %c0_88 = arith.constant 0 : index
    %c0_89 = arith.constant 0 : index
    %c0_90 = arith.constant 0 : index
    %c0_91 = arith.constant 0 : index
    %115 = vector.load %arg8[%c0_88, %c0_89, %c0_90, %c0_91] : memref<1x8x8x16xbf16, #tpu.memory_space<vmem>>, vector<1x8x8x16xbf16>
    %116 = vector.shape_cast %115 : vector<1x8x8x16xbf16> to vector<8x8x16xbf16>
    %117 = vector.shape_cast %114 : vector<8x8x16xbf16> to vector<1x8x8x16xbf16>
    tpu.vector_store %arg8[%c0_88, %c0_89, %c0_90, %c0_91], %117 {strides = array<i32>} : memref<1x8x8x16xbf16, #tpu.memory_space<vmem>>, vector<1x8x8x16xbf16>,
    return
  }
  func.func @transform_0(%arg0: i32) -> (i32, i32, i32, i32, i32) {
    %c0_i32 = arith.constant 0 : i32
    %c0_i32_0 = arith.constant 0 : i32
    %c0_i32_1 = arith.constant 0 : i32
    %c0_i32_2 = arith.constant 0 : i32
    %c0_i32_3 = arith.constant 0 : i32
    return %c0_i32, %arg0, %c0_i32_0, %c0_i32_1, %c0_i32_2 : i32, i32, i32, i32, i32
  }
  func.func @transform_1(%arg0: i32) -> (i32, i32, i32) {
    %c0_i32 = arith.constant 0 : i32
    %c0_i32_0 = arith.constant 0 : i32
    %c0_i32_1 = arith.constant 0 : i32
    %c0_i32_2 = arith.constant 0 : i32
    return %c0_i32, %c0_i32_0, %c0_i32_1 : i32, i32, i32
  }
  func.func @transform_2(%arg0: i32) -> (i32, i32) {
    %c0_i32 = arith.constant 0 : i32
    %c0_i32_0 = arith.constant 0 : i32
    %c0_i32_1 = arith.constant 0 : i32
    return %c0_i32, %c0_i32_0 : i32, i32
  }
  func.func @transform_3(%arg0: i32) -> (i32, i32) {
    %c0_i32 = arith.constant 0 : i32
    %c0_i32_0 = arith.constant 0 : i32
    %c0_i32_1 = arith.constant 0 : i32
    return %c0_i32, %c0_i32_0 : i32, i32
  }
  func.func @transform_4(%arg0: i32) -> (i32, i32) {
    %c0_i32 = arith.constant 0 : i32
    %c0_i32_0 = arith.constant 0 : i32
    %c0_i32_1 = arith.constant 0 : i32
    return %c0_i32, %c0_i32_0 : i32, i32
  }
  func.func @transform_5(%arg0: i32) -> (i32, i32) {
    %c0_i32 = arith.constant 0 : i32
    %c0_i32_0 = arith.constant 0 : i32
    %c0_i32_1 = arith.constant 0 : i32
    return %c0_i32, %c0_i32_0 : i32, i32
  }
  func.func @transform_6(%arg0: i32) -> (i32, i32) {
    %c0_i32 = arith.constant 0 : i32
    %c0_i32_0 = arith.constant 0 : i32
    %c0_i32_1 = arith.constant 0 : i32
    return %c0_i32, %c0_i32_0 : i32, i32
  }
  func.func @transform_7(%arg0: i32) -> (i32, i32, i32, i32) {
    %c0_i32 = arith.constant 0 : i32
    %c0_i32_0 = arith.constant 0 : i32
    %c0_i32_1 = arith.constant 0 : i32
    %c0_i32_2 = arith.constant 0 : i32
    return %arg0, %c0_i32, %c0_i32_0, %c0_i32_1 : i32, i32, i32, i32
  }
}

module attributes {stable_mosaic.version = 11 : i64} {
  func.func @_mm_kernel(%arg0: i32, %arg1: memref<64x16xbf16, #tpu.memory_space<vmem>>, %arg2: memref<16x16xbf16, #tpu.memory_space<vmem>>, %arg3: memref<1x16xf32, #tpu.memory_space<vmem>>, %arg4: memref<64x16xbf16, #tpu.memory_space<vmem>>) attributes {dimension_semantics = [#tpu.dimension_semantics<parallel>], iteration_bounds = array<i64: 2>, scalar_prefetch = 0 : i64, scratch_operands = 0 : i64, tpu.core_type = #tpu.core_type<tc>, window_params = [{transform_indices = @transform_0, window_bounds = array<i64: 64, 16>}, {pipeline_mode = #tpu.pipeline_mode<synchronous>, transform_indices = @transform_1, window_bounds = array<i64: 16, 16>}, {pipeline_mode = #tpu.pipeline_mode<synchronous>, transform_indices = @transform_2, window_bounds = array<i64: 1, 16>}, {transform_indices = @transform_3, window_bounds = array<i64: 64, 16>}]} {
    %c0 = arith.constant 0 : index
    %c0_0 = arith.constant 0 : index
    %0 = vector.load %arg1[%c0, %c0_0] : memref<64x16xbf16, #tpu.memory_space<vmem>>, vector<64x16xbf16>
    %c0_1 = arith.constant 0 : index
    %c0_2 = arith.constant 0 : index
    %1 = vector.load %arg2[%c0_1, %c0_2] : memref<16x16xbf16, #tpu.memory_space<vmem>>, vector<16x16xbf16>
    %cst = arith.constant dense<0.000000e+00> : vector<64x16xf32>
    %2 = tpu.matmul %0, %1, %cst {dimension_numbers = #tpu.dot_dimension_numbers<[1], [0], [0], [1], [0, 0, 1, 1], [], []>} : vector<64x16xbf16>, vector<16x16xbf16>, vector<64x16xf32> -> vector<64x16xf32>
    %c0_3 = arith.constant 0 : index
    %c0_4 = arith.constant 0 : index
    %3 = vector.load %arg3[%c0_3, %c0_4] : memref<1x16xf32, #tpu.memory_space<vmem>>, vector<1x16xf32>
    %4 = vector.broadcast %3 : vector<1x16xf32> to vector<64x16xf32>
    %5 = arith.addf %2, %4 : vector<64x16xf32>
    %6 = arith.truncf %5 : vector<64x16xf32> to vector<64x16xbf16>
    %c0_5 = arith.constant 0 : index
    %c0_6 = arith.constant 0 : index
    %7 = vector.load %arg4[%c0_5, %c0_6] : memref<64x16xbf16, #tpu.memory_space<vmem>>, vector<64x16xbf16>
    tpu.vector_store %arg4[%c0_5, %c0_6], %6 {strides = array<i32>} : memref<64x16xbf16, #tpu.memory_space<vmem>>, vector<64x16xbf16>,
    return
  }
  func.func @transform_0(%arg0: i32) -> (i32, i32) {
    %c0_i32 = arith.constant 0 : i32
    %c0_i32_0 = arith.constant 0 : i32
    return %arg0, %c0_i32 : i32, i32
  }
  func.func @transform_1(%arg0: i32) -> (i32, i32) {
    %c0_i32 = arith.constant 0 : i32
    %c0_i32_0 = arith.constant 0 : i32
    %c0_i32_1 = arith.constant 0 : i32
    return %c0_i32, %c0_i32_0 : i32, i32
  }
  func.func @transform_2(%arg0: i32) -> (i32, i32) {
    %c0_i32 = arith.constant 0 : i32
    %c0_i32_0 = arith.constant 0 : i32
    %c0_i32_1 = arith.constant 0 : i32
    return %c0_i32, %c0_i32_0 : i32, i32
  }
  func.func @transform_3(%arg0: i32) -> (i32, i32) {
    %c0_i32 = arith.constant 0 : i32
    %c0_i32_0 = arith.constant 0 : i32
    return %arg0, %c0_i32 : i32, i32
  }
}

module attributes {stable_mosaic.version = 11 : i64} {
  func.func @_mm_kernel(%arg0: i32, %arg1: memref<64x16xbf16, #tpu.memory_space<vmem>>, %arg2: memref<16x72xbf16, #tpu.memory_space<vmem>>, %arg3: memref<1x72xf32, #tpu.memory_space<vmem>>, %arg4: memref<64x72xbf16, #tpu.memory_space<vmem>>) attributes {dimension_semantics = [#tpu.dimension_semantics<parallel>], iteration_bounds = array<i64: 2>, scalar_prefetch = 0 : i64, scratch_operands = 0 : i64, tpu.core_type = #tpu.core_type<tc>, window_params = [{transform_indices = @transform_0, window_bounds = array<i64: 64, 16>}, {pipeline_mode = #tpu.pipeline_mode<synchronous>, transform_indices = @transform_1, window_bounds = array<i64: 16, 72>}, {pipeline_mode = #tpu.pipeline_mode<synchronous>, transform_indices = @transform_2, window_bounds = array<i64: 1, 72>}, {transform_indices = @transform_3, window_bounds = array<i64: 64, 72>}]} {
    %c0 = arith.constant 0 : index
    %c0_0 = arith.constant 0 : index
    %0 = vector.load %arg1[%c0, %c0_0] : memref<64x16xbf16, #tpu.memory_space<vmem>>, vector<64x16xbf16>
    %c0_1 = arith.constant 0 : index
    %c0_2 = arith.constant 0 : index
    %1 = vector.load %arg2[%c0_1, %c0_2] : memref<16x72xbf16, #tpu.memory_space<vmem>>, vector<16x72xbf16>
    %cst = arith.constant dense<0.000000e+00> : vector<64x72xf32>
    %2 = tpu.matmul %0, %1, %cst {dimension_numbers = #tpu.dot_dimension_numbers<[1], [0], [0], [1], [0, 0, 1, 1], [], []>} : vector<64x16xbf16>, vector<16x72xbf16>, vector<64x72xf32> -> vector<64x72xf32>
    %c0_3 = arith.constant 0 : index
    %c0_4 = arith.constant 0 : index
    %3 = vector.load %arg3[%c0_3, %c0_4] : memref<1x72xf32, #tpu.memory_space<vmem>>, vector<1x72xf32>
    %4 = vector.broadcast %3 : vector<1x72xf32> to vector<64x72xf32>
    %5 = arith.addf %2, %4 : vector<64x72xf32>
    %cst_5 = arith.constant 0.000000e+00 : f32
    %6 = vector.broadcast %cst_5 : f32 to vector<64x72xf32>
    %7 = arith.maximumf %5, %6 : vector<64x72xf32>
    %8 = arith.truncf %7 : vector<64x72xf32> to vector<64x72xbf16>
    %c0_6 = arith.constant 0 : index
    %c0_7 = arith.constant 0 : index
    %9 = vector.load %arg4[%c0_6, %c0_7] : memref<64x72xbf16, #tpu.memory_space<vmem>>, vector<64x72xbf16>
    tpu.vector_store %arg4[%c0_6, %c0_7], %8 {strides = array<i32>} : memref<64x72xbf16, #tpu.memory_space<vmem>>, vector<64x72xbf16>,
    return
  }
  func.func @transform_0(%arg0: i32) -> (i32, i32) {
    %c0_i32 = arith.constant 0 : i32
    %c0_i32_0 = arith.constant 0 : i32
    return %arg0, %c0_i32 : i32, i32
  }
  func.func @transform_1(%arg0: i32) -> (i32, i32) {
    %c0_i32 = arith.constant 0 : i32
    %c0_i32_0 = arith.constant 0 : i32
    %c0_i32_1 = arith.constant 0 : i32
    return %c0_i32, %c0_i32_0 : i32, i32
  }
  func.func @transform_2(%arg0: i32) -> (i32, i32) {
    %c0_i32 = arith.constant 0 : i32
    %c0_i32_0 = arith.constant 0 : i32
    %c0_i32_1 = arith.constant 0 : i32
    return %c0_i32, %c0_i32_0 : i32, i32
  }
  func.func @transform_3(%arg0: i32) -> (i32, i32) {
    %c0_i32 = arith.constant 0 : i32
    %c0_i32_0 = arith.constant 0 : i32
    return %arg0, %c0_i32 : i32, i32
  }
}

module attributes {stable_mosaic.version = 11 : i64} {
  func.func @_dw_kernel_phase(%arg0: i32, %arg1: memref<4x1x5x5x72xbf16, #tpu.memory_space<vmem>>, %arg2: memref<3x3x72xf32, #tpu.memory_space<vmem>>, %arg3: memref<1x72xf32, #tpu.memory_space<vmem>>, %arg4: memref<1x4x4x72xbf16, #tpu.memory_space<vmem>>) attributes {dimension_semantics = [#tpu.dimension_semantics<parallel>], iteration_bounds = array<i64: 2>, scalar_prefetch = 0 : i64, scratch_operands = 0 : i64, tpu.core_type = #tpu.core_type<tc>, window_params = [{transform_indices = @transform_0, window_bounds = array<i64: 4, 1, 5, 5, 72>}, {pipeline_mode = #tpu.pipeline_mode<synchronous>, transform_indices = @transform_1, window_bounds = array<i64: 3, 3, 72>}, {pipeline_mode = #tpu.pipeline_mode<synchronous>, transform_indices = @transform_2, window_bounds = array<i64: 1, 72>}, {transform_indices = @transform_3, window_bounds = array<i64: 1, 4, 4, 72>}]} {
    %cst = arith.constant 0.000000e+00 : f32
    %0 = vector.broadcast %cst : f32 to vector<4x4x72xf32>
    %c0 = arith.constant 0 : index
    %c0_0 = arith.constant 0 : index
    %c0_1 = arith.constant 0 : index
    %c0_2 = arith.constant 0 : index
    %c0_3 = arith.constant 0 : index
    %1 = vector.load %arg1[%c0, %c0_0, %c0_1, %c0_2, %c0_3] : memref<4x1x5x5x72xbf16, #tpu.memory_space<vmem>>, vector<1x1x4x4x72xbf16>
    %2 = vector.shape_cast %1 : vector<1x1x4x4x72xbf16> to vector<4x4x72xbf16>
    %3 = arith.extf %2 : vector<4x4x72xbf16> to vector<4x4x72xf32>
    %c0_4 = arith.constant 0 : index
    %c0_5 = arith.constant 0 : index
    %c0_6 = arith.constant 0 : index
    %4 = vector.load %arg2[%c0_4, %c0_5, %c0_6] : memref<3x3x72xf32, #tpu.memory_space<vmem>>, vector<1x1x72xf32>
    %5 = vector.shape_cast %4 : vector<1x1x72xf32> to vector<72xf32>
    %6 = vector.shape_cast %5 : vector<72xf32> to vector<1x1x72xf32>
    %7 = vector.broadcast %6 : vector<1x1x72xf32> to vector<4x4x72xf32>
    %8 = arith.mulf %3, %7 : vector<4x4x72xf32>
    %9 = arith.addf %0, %8 : vector<4x4x72xf32>
    %c1 = arith.constant 1 : index
    %c0_7 = arith.constant 0 : index
    %c0_8 = arith.constant 0 : index
    %c0_9 = arith.constant 0 : index
    %c0_10 = arith.constant 0 : index
    %10 = vector.load %arg1[%c1, %c0_7, %c0_8, %c0_9, %c0_10] : memref<4x1x5x5x72xbf16, #tpu.memory_space<vmem>>, vector<1x1x4x4x72xbf16>
    %11 = vector.shape_cast %10 : vector<1x1x4x4x72xbf16> to vector<4x4x72xbf16>
    %12 = arith.extf %11 : vector<4x4x72xbf16> to vector<4x4x72xf32>
    %c0_11 = arith.constant 0 : index
    %c1_12 = arith.constant 1 : index
    %c0_13 = arith.constant 0 : index
    %13 = vector.load %arg2[%c0_11, %c1_12, %c0_13] : memref<3x3x72xf32, #tpu.memory_space<vmem>>, vector<1x1x72xf32>
    %14 = vector.shape_cast %13 : vector<1x1x72xf32> to vector<72xf32>
    %15 = vector.shape_cast %14 : vector<72xf32> to vector<1x1x72xf32>
    %16 = vector.broadcast %15 : vector<1x1x72xf32> to vector<4x4x72xf32>
    %17 = arith.mulf %12, %16 : vector<4x4x72xf32>
    %18 = arith.addf %9, %17 : vector<4x4x72xf32>
    %c0_14 = arith.constant 0 : index
    %c0_15 = arith.constant 0 : index
    %c0_16 = arith.constant 0 : index
    %c1_17 = arith.constant 1 : index
    %c0_18 = arith.constant 0 : index
    %19 = vector.load %arg1[%c0_14, %c0_15, %c0_16, %c1_17, %c0_18] : memref<4x1x5x5x72xbf16, #tpu.memory_space<vmem>>, vector<1x1x4x4x72xbf16>
    %20 = vector.shape_cast %19 : vector<1x1x4x4x72xbf16> to vector<4x4x72xbf16>
    %21 = arith.extf %20 : vector<4x4x72xbf16> to vector<4x4x72xf32>
    %c0_19 = arith.constant 0 : index
    %c2 = arith.constant 2 : index
    %c0_20 = arith.constant 0 : index
    %22 = vector.load %arg2[%c0_19, %c2, %c0_20] : memref<3x3x72xf32, #tpu.memory_space<vmem>>, vector<1x1x72xf32>
    %23 = vector.shape_cast %22 : vector<1x1x72xf32> to vector<72xf32>
    %24 = vector.shape_cast %23 : vector<72xf32> to vector<1x1x72xf32>
    %25 = vector.broadcast %24 : vector<1x1x72xf32> to vector<4x4x72xf32>
    %26 = arith.mulf %21, %25 : vector<4x4x72xf32>
    %27 = arith.addf %18, %26 : vector<4x4x72xf32>
    %c2_21 = arith.constant 2 : index
    %c0_22 = arith.constant 0 : index
    %c0_23 = arith.constant 0 : index
    %c0_24 = arith.constant 0 : index
    %c0_25 = arith.constant 0 : index
    %28 = vector.load %arg1[%c2_21, %c0_22, %c0_23, %c0_24, %c0_25] : memref<4x1x5x5x72xbf16, #tpu.memory_space<vmem>>, vector<1x1x4x4x72xbf16>
    %29 = vector.shape_cast %28 : vector<1x1x4x4x72xbf16> to vector<4x4x72xbf16>
    %30 = arith.extf %29 : vector<4x4x72xbf16> to vector<4x4x72xf32>
    %c1_26 = arith.constant 1 : index
    %c0_27 = arith.constant 0 : index
    %c0_28 = arith.constant 0 : index
    %31 = vector.load %arg2[%c1_26, %c0_27, %c0_28] : memref<3x3x72xf32, #tpu.memory_space<vmem>>, vector<1x1x72xf32>
    %32 = vector.shape_cast %31 : vector<1x1x72xf32> to vector<72xf32>
    %33 = vector.shape_cast %32 : vector<72xf32> to vector<1x1x72xf32>
    %34 = vector.broadcast %33 : vector<1x1x72xf32> to vector<4x4x72xf32>
    %35 = arith.mulf %30, %34 : vector<4x4x72xf32>
    %36 = arith.addf %27, %35 : vector<4x4x72xf32>
    %c3 = arith.constant 3 : index
    %c0_29 = arith.constant 0 : index
    %c0_30 = arith.constant 0 : index
    %c0_31 = arith.constant 0 : index
    %c0_32 = arith.constant 0 : index
    %37 = vector.load %arg1[%c3, %c0_29, %c0_30, %c0_31, %c0_32] : memref<4x1x5x5x72xbf16, #tpu.memory_space<vmem>>, vector<1x1x4x4x72xbf16>
    %38 = vector.shape_cast %37 : vector<1x1x4x4x72xbf16> to vector<4x4x72xbf16>
    %39 = arith.extf %38 : vector<4x4x72xbf16> to vector<4x4x72xf32>
    %c1_33 = arith.constant 1 : index
    %c1_34 = arith.constant 1 : index
    %c0_35 = arith.constant 0 : index
    %40 = vector.load %arg2[%c1_33, %c1_34, %c0_35] : memref<3x3x72xf32, #tpu.memory_space<vmem>>, vector<1x1x72xf32>
    %41 = vector.shape_cast %40 : vector<1x1x72xf32> to vector<72xf32>
    %42 = vector.shape_cast %41 : vector<72xf32> to vector<1x1x72xf32>
    %43 = vector.broadcast %42 : vector<1x1x72xf32> to vector<4x4x72xf32>
    %44 = arith.mulf %39, %43 : vector<4x4x72xf32>
    %45 = arith.addf %36, %44 : vector<4x4x72xf32>
    %c2_36 = arith.constant 2 : index
    %c0_37 = arith.constant 0 : index
    %c0_38 = arith.constant 0 : index
    %c1_39 = arith.constant 1 : index
    %c0_40 = arith.constant 0 : index
    %46 = vector.load %arg1[%c2_36, %c0_37, %c0_38, %c1_39, %c0_40] : memref<4x1x5x5x72xbf16, #tpu.memory_space<vmem>>, vector<1x1x4x4x72xbf16>
    %47 = vector.shape_cast %46 : vector<1x1x4x4x72xbf16> to vector<4x4x72xbf16>
    %48 = arith.extf %47 : vector<4x4x72xbf16> to vector<4x4x72xf32>
    %c1_41 = arith.constant 1 : index
    %c2_42 = arith.constant 2 : index
    %c0_43 = arith.constant 0 : index
    %49 = vector.load %arg2[%c1_41, %c2_42, %c0_43] : memref<3x3x72xf32, #tpu.memory_space<vmem>>, vector<1x1x72xf32>
    %50 = vector.shape_cast %49 : vector<1x1x72xf32> to vector<72xf32>
    %51 = vector.shape_cast %50 : vector<72xf32> to vector<1x1x72xf32>
    %52 = vector.broadcast %51 : vector<1x1x72xf32> to vector<4x4x72xf32>
    %53 = arith.mulf %48, %52 : vector<4x4x72xf32>
    %54 = arith.addf %45, %53 : vector<4x4x72xf32>
    %c0_44 = arith.constant 0 : index
    %c0_45 = arith.constant 0 : index
    %c1_46 = arith.constant 1 : index
    %c0_47 = arith.constant 0 : index
    %c0_48 = arith.constant 0 : index
    %55 = vector.load %arg1[%c0_44, %c0_45, %c1_46, %c0_47, %c0_48] : memref<4x1x5x5x72xbf16, #tpu.memory_space<vmem>>, vector<1x1x4x4x72xbf16>
    %56 = vector.shape_cast %55 : vector<1x1x4x4x72xbf16> to vector<4x4x72xbf16>
    %57 = arith.extf %56 : vector<4x4x72xbf16> to vector<4x4x72xf32>
    %c2_49 = arith.constant 2 : index
    %c0_50 = arith.constant 0 : index
    %c0_51 = arith.constant 0 : index
    %58 = vector.load %arg2[%c2_49, %c0_50, %c0_51] : memref<3x3x72xf32, #tpu.memory_space<vmem>>, vector<1x1x72xf32>
    %59 = vector.shape_cast %58 : vector<1x1x72xf32> to vector<72xf32>
    %60 = vector.shape_cast %59 : vector<72xf32> to vector<1x1x72xf32>
    %61 = vector.broadcast %60 : vector<1x1x72xf32> to vector<4x4x72xf32>
    %62 = arith.mulf %57, %61 : vector<4x4x72xf32>
    %63 = arith.addf %54, %62 : vector<4x4x72xf32>
    %c1_52 = arith.constant 1 : index
    %c0_53 = arith.constant 0 : index
    %c1_54 = arith.constant 1 : index
    %c0_55 = arith.constant 0 : index
    %c0_56 = arith.constant 0 : index
    %64 = vector.load %arg1[%c1_52, %c0_53, %c1_54, %c0_55, %c0_56] : memref<4x1x5x5x72xbf16, #tpu.memory_space<vmem>>, vector<1x1x4x4x72xbf16>
    %65 = vector.shape_cast %64 : vector<1x1x4x4x72xbf16> to vector<4x4x72xbf16>
    %66 = arith.extf %65 : vector<4x4x72xbf16> to vector<4x4x72xf32>
    %c2_57 = arith.constant 2 : index
    %c1_58 = arith.constant 1 : index
    %c0_59 = arith.constant 0 : index
    %67 = vector.load %arg2[%c2_57, %c1_58, %c0_59] : memref<3x3x72xf32, #tpu.memory_space<vmem>>, vector<1x1x72xf32>
    %68 = vector.shape_cast %67 : vector<1x1x72xf32> to vector<72xf32>
    %69 = vector.shape_cast %68 : vector<72xf32> to vector<1x1x72xf32>
    %70 = vector.broadcast %69 : vector<1x1x72xf32> to vector<4x4x72xf32>
    %71 = arith.mulf %66, %70 : vector<4x4x72xf32>
    %72 = arith.addf %63, %71 : vector<4x4x72xf32>
    %c0_60 = arith.constant 0 : index
    %c0_61 = arith.constant 0 : index
    %c1_62 = arith.constant 1 : index
    %c1_63 = arith.constant 1 : index
    %c0_64 = arith.constant 0 : index
    %73 = vector.load %arg1[%c0_60, %c0_61, %c1_62, %c1_63, %c0_64] : memref<4x1x5x5x72xbf16, #tpu.memory_space<vmem>>, vector<1x1x4x4x72xbf16>
    %74 = vector.shape_cast %73 : vector<1x1x4x4x72xbf16> to vector<4x4x72xbf16>
    %75 = arith.extf %74 : vector<4x4x72xbf16> to vector<4x4x72xf32>
    %c2_65 = arith.constant 2 : index
    %c2_66 = arith.constant 2 : index
    %c0_67 = arith.constant 0 : index
    %76 = vector.load %arg2[%c2_65, %c2_66, %c0_67] : memref<3x3x72xf32, #tpu.memory_space<vmem>>, vector<1x1x72xf32>
    %77 = vector.shape_cast %76 : vector<1x1x72xf32> to vector<72xf32>
    %78 = vector.shape_cast %77 : vector<72xf32> to vector<1x1x72xf32>
    %79 = vector.broadcast %78 : vector<1x1x72xf32> to vector<4x4x72xf32>
    %80 = arith.mulf %75, %79 : vector<4x4x72xf32>
    %81 = arith.addf %72, %80 : vector<4x4x72xf32>
    %c0_68 = arith.constant 0 : index
    %c0_69 = arith.constant 0 : index
    %82 = vector.load %arg3[%c0_68, %c0_69] : memref<1x72xf32, #tpu.memory_space<vmem>>, vector<1x72xf32>
    %83 = vector.shape_cast %82 : vector<1x72xf32> to vector<1x1x72xf32>
    %84 = vector.broadcast %83 : vector<1x1x72xf32> to vector<4x4x72xf32>
    %85 = arith.addf %81, %84 : vector<4x4x72xf32>
    %cst_70 = arith.constant 0.000000e+00 : f32
    %86 = vector.broadcast %cst_70 : f32 to vector<4x4x72xf32>
    %87 = arith.maximumf %85, %86 : vector<4x4x72xf32>
    %88 = arith.truncf %87 : vector<4x4x72xf32> to vector<4x4x72xbf16>
    %c0_71 = arith.constant 0 : index
    %c0_72 = arith.constant 0 : index
    %c0_73 = arith.constant 0 : index
    %c0_74 = arith.constant 0 : index
    %89 = vector.load %arg4[%c0_71, %c0_72, %c0_73, %c0_74] : memref<1x4x4x72xbf16, #tpu.memory_space<vmem>>, vector<1x4x4x72xbf16>
    %90 = vector.shape_cast %89 : vector<1x4x4x72xbf16> to vector<4x4x72xbf16>
    %91 = vector.shape_cast %88 : vector<4x4x72xbf16> to vector<1x4x4x72xbf16>
    tpu.vector_store %arg4[%c0_71, %c0_72, %c0_73, %c0_74], %91 {strides = array<i32>} : memref<1x4x4x72xbf16, #tpu.memory_space<vmem>>, vector<1x4x4x72xbf16>,
    return
  }
  func.func @transform_0(%arg0: i32) -> (i32, i32, i32, i32, i32) {
    %c0_i32 = arith.constant 0 : i32
    %c0_i32_0 = arith.constant 0 : i32
    %c0_i32_1 = arith.constant 0 : i32
    %c0_i32_2 = arith.constant 0 : i32
    %c0_i32_3 = arith.constant 0 : i32
    return %c0_i32, %arg0, %c0_i32_0, %c0_i32_1, %c0_i32_2 : i32, i32, i32, i32, i32
  }
  func.func @transform_1(%arg0: i32) -> (i32, i32, i32) {
    %c0_i32 = arith.constant 0 : i32
    %c0_i32_0 = arith.constant 0 : i32
    %c0_i32_1 = arith.constant 0 : i32
    %c0_i32_2 = arith.constant 0 : i32
    return %c0_i32, %c0_i32_0, %c0_i32_1 : i32, i32, i32
  }
  func.func @transform_2(%arg0: i32) -> (i32, i32) {
    %c0_i32 = arith.constant 0 : i32
    %c0_i32_0 = arith.constant 0 : i32
    %c0_i32_1 = arith.constant 0 : i32
    return %c0_i32, %c0_i32_0 : i32, i32
  }
  func.func @transform_3(%arg0: i32) -> (i32, i32, i32, i32) {
    %c0_i32 = arith.constant 0 : i32
    %c0_i32_0 = arith.constant 0 : i32
    %c0_i32_1 = arith.constant 0 : i32
    %c0_i32_2 = arith.constant 0 : i32
    return %arg0, %c0_i32, %c0_i32_0, %c0_i32_1 : i32, i32, i32, i32
  }
}

module attributes {stable_mosaic.version = 11 : i64} {
  func.func @_dw_kernel_pad(%arg0: i32, %arg1: memref<1x4x4x88xbf16, #tpu.memory_space<vmem>>, %arg2: memref<3x3x88xf32, #tpu.memory_space<vmem>>, %arg3: memref<1x88xf32, #tpu.memory_space<vmem>>, %arg4: memref<1x4x4x88xbf16, #tpu.memory_space<vmem>>, %arg5: memref<6x6x88xf32, #tpu.memory_space<vmem>>) attributes {dimension_semantics = [#tpu.dimension_semantics<parallel>], iteration_bounds = array<i64: 2>, scalar_prefetch = 0 : i64, scratch_operands = 1 : i64, tpu.core_type = #tpu.core_type<tc>, window_params = [{transform_indices = @transform_0, window_bounds = array<i64: 1, 4, 4, 88>}, {pipeline_mode = #tpu.pipeline_mode<synchronous>, transform_indices = @transform_1, window_bounds = array<i64: 3, 3, 88>}, {pipeline_mode = #tpu.pipeline_mode<synchronous>, transform_indices = @transform_2, window_bounds = array<i64: 1, 88>}, {transform_indices = @transform_3, window_bounds = array<i64: 1, 4, 4, 88>}]} {
    %cst = arith.constant 0.000000e+00 : f32
    %0 = vector.broadcast %cst : f32 to vector<6x6x88xf32>
    %c0 = arith.constant 0 : index
    %c0_0 = arith.constant 0 : index
    %c0_1 = arith.constant 0 : index
    %1 = vector.load %arg5[%c0, %c0_0, %c0_1] : memref<6x6x88xf32, #tpu.memory_space<vmem>>, vector<6x6x88xf32>
    tpu.vector_store %arg5[%c0, %c0_0, %c0_1], %0 {strides = array<i32>} : memref<6x6x88xf32, #tpu.memory_space<vmem>>, vector<6x6x88xf32>,
    %c0_2 = arith.constant 0 : index
    %c0_3 = arith.constant 0 : index
    %c0_4 = arith.constant 0 : index
    %c0_5 = arith.constant 0 : index
    %2 = vector.load %arg1[%c0_2, %c0_3, %c0_4, %c0_5] : memref<1x4x4x88xbf16, #tpu.memory_space<vmem>>, vector<1x4x4x88xbf16>
    %3 = vector.shape_cast %2 : vector<1x4x4x88xbf16> to vector<4x4x88xbf16>
    %4 = arith.extf %3 : vector<4x4x88xbf16> to vector<4x4x88xf32>
    %c1 = arith.constant 1 : index
    %c1_6 = arith.constant 1 : index
    %c0_7 = arith.constant 0 : index
    %5 = vector.load %arg5[%c1, %c1_6, %c0_7] : memref<6x6x88xf32, #tpu.memory_space<vmem>>, vector<4x4x88xf32>
    tpu.vector_store %arg5[%c1, %c1_6, %c0_7], %4 {strides = array<i32>} : memref<6x6x88xf32, #tpu.memory_space<vmem>>, vector<4x4x88xf32>,
    %cst_8 = arith.constant 0.000000e+00 : f32
    %6 = vector.broadcast %cst_8 : f32 to vector<4x4x88xf32>
    %c0_9 = arith.constant 0 : index
    %c0_10 = arith.constant 0 : index
    %c0_11 = arith.constant 0 : index
    %7 = vector.load %arg5[%c0_9, %c0_10, %c0_11] : memref<6x6x88xf32, #tpu.memory_space<vmem>>, vector<4x4x88xf32>
    %c0_12 = arith.constant 0 : index
    %c0_13 = arith.constant 0 : index
    %c0_14 = arith.constant 0 : index
    %8 = vector.load %arg2[%c0_12, %c0_13, %c0_14] : memref<3x3x88xf32, #tpu.memory_space<vmem>>, vector<1x1x88xf32>
    %9 = vector.shape_cast %8 : vector<1x1x88xf32> to vector<88xf32>
    %10 = vector.shape_cast %9 : vector<88xf32> to vector<1x1x88xf32>
    %11 = vector.broadcast %10 : vector<1x1x88xf32> to vector<4x4x88xf32>
    %12 = arith.mulf %7, %11 : vector<4x4x88xf32>
    %13 = arith.addf %6, %12 : vector<4x4x88xf32>
    %c0_15 = arith.constant 0 : index
    %c1_16 = arith.constant 1 : index
    %c0_17 = arith.constant 0 : index
    %14 = vector.load %arg5[%c0_15, %c1_16, %c0_17] : memref<6x6x88xf32, #tpu.memory_space<vmem>>, vector<4x4x88xf32>
    %c0_18 = arith.constant 0 : index
    %c1_19 = arith.constant 1 : index
    %c0_20 = arith.constant 0 : index
    %15 = vector.load %arg2[%c0_18, %c1_19, %c0_20] : memref<3x3x88xf32, #tpu.memory_space<vmem>>, vector<1x1x88xf32>
    %16 = vector.shape_cast %15 : vector<1x1x88xf32> to vector<88xf32>
    %17 = vector.shape_cast %16 : vector<88xf32> to vector<1x1x88xf32>
    %18 = vector.broadcast %17 : vector<1x1x88xf32> to vector<4x4x88xf32>
    %19 = arith.mulf %14, %18 : vector<4x4x88xf32>
    %20 = arith.addf %13, %19 : vector<4x4x88xf32>
    %c0_21 = arith.constant 0 : index
    %c2 = arith.constant 2 : index
    %c0_22 = arith.constant 0 : index
    %21 = vector.load %arg5[%c0_21, %c2, %c0_22] : memref<6x6x88xf32, #tpu.memory_space<vmem>>, vector<4x4x88xf32>
    %c0_23 = arith.constant 0 : index
    %c2_24 = arith.constant 2 : index
    %c0_25 = arith.constant 0 : index
    %22 = vector.load %arg2[%c0_23, %c2_24, %c0_25] : memref<3x3x88xf32, #tpu.memory_space<vmem>>, vector<1x1x88xf32>
    %23 = vector.shape_cast %22 : vector<1x1x88xf32> to vector<88xf32>
    %24 = vector.shape_cast %23 : vector<88xf32> to vector<1x1x88xf32>
    %25 = vector.broadcast %24 : vector<1x1x88xf32> to vector<4x4x88xf32>
    %26 = arith.mulf %21, %25 : vector<4x4x88xf32>
    %27 = arith.addf %20, %26 : vector<4x4x88xf32>
    %c1_26 = arith.constant 1 : index
    %c0_27 = arith.constant 0 : index
    %c0_28 = arith.constant 0 : index
    %28 = vector.load %arg5[%c1_26, %c0_27, %c0_28] : memref<6x6x88xf32, #tpu.memory_space<vmem>>, vector<4x4x88xf32>
    %c1_29 = arith.constant 1 : index
    %c0_30 = arith.constant 0 : index
    %c0_31 = arith.constant 0 : index
    %29 = vector.load %arg2[%c1_29, %c0_30, %c0_31] : memref<3x3x88xf32, #tpu.memory_space<vmem>>, vector<1x1x88xf32>
    %30 = vector.shape_cast %29 : vector<1x1x88xf32> to vector<88xf32>
    %31 = vector.shape_cast %30 : vector<88xf32> to vector<1x1x88xf32>
    %32 = vector.broadcast %31 : vector<1x1x88xf32> to vector<4x4x88xf32>
    %33 = arith.mulf %28, %32 : vector<4x4x88xf32>
    %34 = arith.addf %27, %33 : vector<4x4x88xf32>
    %c1_32 = arith.constant 1 : index
    %c1_33 = arith.constant 1 : index
    %c0_34 = arith.constant 0 : index
    %35 = vector.load %arg5[%c1_32, %c1_33, %c0_34] : memref<6x6x88xf32, #tpu.memory_space<vmem>>, vector<4x4x88xf32>
    %c1_35 = arith.constant 1 : index
    %c1_36 = arith.constant 1 : index
    %c0_37 = arith.constant 0 : index
    %36 = vector.load %arg2[%c1_35, %c1_36, %c0_37] : memref<3x3x88xf32, #tpu.memory_space<vmem>>, vector<1x1x88xf32>
    %37 = vector.shape_cast %36 : vector<1x1x88xf32> to vector<88xf32>
    %38 = vector.shape_cast %37 : vector<88xf32> to vector<1x1x88xf32>
    %39 = vector.broadcast %38 : vector<1x1x88xf32> to vector<4x4x88xf32>
    %40 = arith.mulf %35, %39 : vector<4x4x88xf32>
    %41 = arith.addf %34, %40 : vector<4x4x88xf32>
    %c1_38 = arith.constant 1 : index
    %c2_39 = arith.constant 2 : index
    %c0_40 = arith.constant 0 : index
    %42 = vector.load %arg5[%c1_38, %c2_39, %c0_40] : memref<6x6x88xf32, #tpu.memory_space<vmem>>, vector<4x4x88xf32>
    %c1_41 = arith.constant 1 : index
    %c2_42 = arith.constant 2 : index
    %c0_43 = arith.constant 0 : index
    %43 = vector.load %arg2[%c1_41, %c2_42, %c0_43] : memref<3x3x88xf32, #tpu.memory_space<vmem>>, vector<1x1x88xf32>
    %44 = vector.shape_cast %43 : vector<1x1x88xf32> to vector<88xf32>
    %45 = vector.shape_cast %44 : vector<88xf32> to vector<1x1x88xf32>
    %46 = vector.broadcast %45 : vector<1x1x88xf32> to vector<4x4x88xf32>
    %47 = arith.mulf %42, %46 : vector<4x4x88xf32>
    %48 = arith.addf %41, %47 : vector<4x4x88xf32>
    %c2_44 = arith.constant 2 : index
    %c0_45 = arith.constant 0 : index
    %c0_46 = arith.constant 0 : index
    %49 = vector.load %arg5[%c2_44, %c0_45, %c0_46] : memref<6x6x88xf32, #tpu.memory_space<vmem>>, vector<4x4x88xf32>
    %c2_47 = arith.constant 2 : index
    %c0_48 = arith.constant 0 : index
    %c0_49 = arith.constant 0 : index
    %50 = vector.load %arg2[%c2_47, %c0_48, %c0_49] : memref<3x3x88xf32, #tpu.memory_space<vmem>>, vector<1x1x88xf32>
    %51 = vector.shape_cast %50 : vector<1x1x88xf32> to vector<88xf32>
    %52 = vector.shape_cast %51 : vector<88xf32> to vector<1x1x88xf32>
    %53 = vector.broadcast %52 : vector<1x1x88xf32> to vector<4x4x88xf32>
    %54 = arith.mulf %49, %53 : vector<4x4x88xf32>
    %55 = arith.addf %48, %54 : vector<4x4x88xf32>
    %c2_50 = arith.constant 2 : index
    %c1_51 = arith.constant 1 : index
    %c0_52 = arith.constant 0 : index
    %56 = vector.load %arg5[%c2_50, %c1_51, %c0_52] : memref<6x6x88xf32, #tpu.memory_space<vmem>>, vector<4x4x88xf32>
    %c2_53 = arith.constant 2 : index
    %c1_54 = arith.constant 1 : index
    %c0_55 = arith.constant 0 : index
    %57 = vector.load %arg2[%c2_53, %c1_54, %c0_55] : memref<3x3x88xf32, #tpu.memory_space<vmem>>, vector<1x1x88xf32>
    %58 = vector.shape_cast %57 : vector<1x1x88xf32> to vector<88xf32>
    %59 = vector.shape_cast %58 : vector<88xf32> to vector<1x1x88xf32>
    %60 = vector.broadcast %59 : vector<1x1x88xf32> to vector<4x4x88xf32>
    %61 = arith.mulf %56, %60 : vector<4x4x88xf32>
    %62 = arith.addf %55, %61 : vector<4x4x88xf32>
    %c2_56 = arith.constant 2 : index
    %c2_57 = arith.constant 2 : index
    %c0_58 = arith.constant 0 : index
    %63 = vector.load %arg5[%c2_56, %c2_57, %c0_58] : memref<6x6x88xf32, #tpu.memory_space<vmem>>, vector<4x4x88xf32>
    %c2_59 = arith.constant 2 : index
    %c2_60 = arith.constant 2 : index
    %c0_61 = arith.constant 0 : index
    %64 = vector.load %arg2[%c2_59, %c2_60, %c0_61] : memref<3x3x88xf32, #tpu.memory_space<vmem>>, vector<1x1x88xf32>
    %65 = vector.shape_cast %64 : vector<1x1x88xf32> to vector<88xf32>
    %66 = vector.shape_cast %65 : vector<88xf32> to vector<1x1x88xf32>
    %67 = vector.broadcast %66 : vector<1x1x88xf32> to vector<4x4x88xf32>
    %68 = arith.mulf %63, %67 : vector<4x4x88xf32>
    %69 = arith.addf %62, %68 : vector<4x4x88xf32>
    %c0_62 = arith.constant 0 : index
    %c0_63 = arith.constant 0 : index
    %70 = vector.load %arg3[%c0_62, %c0_63] : memref<1x88xf32, #tpu.memory_space<vmem>>, vector<1x88xf32>
    %71 = vector.shape_cast %70 : vector<1x88xf32> to vector<1x1x88xf32>
    %72 = vector.broadcast %71 : vector<1x1x88xf32> to vector<4x4x88xf32>
    %73 = arith.addf %69, %72 : vector<4x4x88xf32>
    %cst_64 = arith.constant 0.000000e+00 : f32
    %74 = vector.broadcast %cst_64 : f32 to vector<4x4x88xf32>
    %75 = arith.maximumf %73, %74 : vector<4x4x88xf32>
    %76 = arith.truncf %75 : vector<4x4x88xf32> to vector<4x4x88xbf16>
    %c0_65 = arith.constant 0 : index
    %c0_66 = arith.constant 0 : index
    %c0_67 = arith.constant 0 : index
    %c0_68 = arith.constant 0 : index
    %77 = vector.load %arg4[%c0_65, %c0_66, %c0_67, %c0_68] : memref<1x4x4x88xbf16, #tpu.memory_space<vmem>>, vector<1x4x4x88xbf16>
    %78 = vector.shape_cast %77 : vector<1x4x4x88xbf16> to vector<4x4x88xbf16>
    %79 = vector.shape_cast %76 : vector<4x4x88xbf16> to vector<1x4x4x88xbf16>
    tpu.vector_store %arg4[%c0_65, %c0_66, %c0_67, %c0_68], %79 {strides = array<i32>} : memref<1x4x4x88xbf16, #tpu.memory_space<vmem>>, vector<1x4x4x88xbf16>,
    return
  }
  func.func @transform_0(%arg0: i32) -> (i32, i32, i32, i32) {
    %c0_i32 = arith.constant 0 : i32
    %c0_i32_0 = arith.constant 0 : i32
    %c0_i32_1 = arith.constant 0 : i32
    %c0_i32_2 = arith.constant 0 : i32
    return %arg0, %c0_i32, %c0_i32_0, %c0_i32_1 : i32, i32, i32, i32
  }
  func.func @transform_1(%arg0: i32) -> (i32, i32, i32) {
    %c0_i32 = arith.constant 0 : i32
    %c0_i32_0 = arith.constant 0 : i32
    %c0_i32_1 = arith.constant 0 : i32
    %c0_i32_2 = arith.constant 0 : i32
    return %c0_i32, %c0_i32_0, %c0_i32_1 : i32, i32, i32
  }
  func.func @transform_2(%arg0: i32) -> (i32, i32) {
    %c0_i32 = arith.constant 0 : i32
    %c0_i32_0 = arith.constant 0 : i32
    %c0_i32_1 = arith.constant 0 : i32
    return %c0_i32, %c0_i32_0 : i32, i32
  }
  func.func @transform_3(%arg0: i32) -> (i32, i32, i32, i32) {
    %c0_i32 = arith.constant 0 : i32
    %c0_i32_0 = arith.constant 0 : i32
    %c0_i32_1 = arith.constant 0 : i32
    %c0_i32_2 = arith.constant 0 : i32
    return %arg0, %c0_i32, %c0_i32_0, %c0_i32_1 : i32, i32, i32, i32
  }
}

module attributes {stable_mosaic.version = 11 : i64} {
  func.func @_mm_kernel(%arg0: i32, %arg1: memref<32x72xbf16, #tpu.memory_space<vmem>>, %arg2: memref<72x24xbf16, #tpu.memory_space<vmem>>, %arg3: memref<1x24xf32, #tpu.memory_space<vmem>>, %arg4: memref<32x24xbf16, #tpu.memory_space<vmem>>) attributes {dimension_semantics = [#tpu.dimension_semantics<parallel>], iteration_bounds = array<i64: 1>, scalar_prefetch = 0 : i64, scratch_operands = 0 : i64, tpu.core_type = #tpu.core_type<tc>, window_params = [{transform_indices = @transform_0, window_bounds = array<i64: 32, 72>}, {pipeline_mode = #tpu.pipeline_mode<synchronous>, transform_indices = @transform_1, window_bounds = array<i64: 72, 24>}, {pipeline_mode = #tpu.pipeline_mode<synchronous>, transform_indices = @transform_2, window_bounds = array<i64: 1, 24>}, {transform_indices = @transform_3, window_bounds = array<i64: 32, 24>}]} {
    %c0 = arith.constant 0 : index
    %c0_0 = arith.constant 0 : index
    %0 = vector.load %arg1[%c0, %c0_0] : memref<32x72xbf16, #tpu.memory_space<vmem>>, vector<32x72xbf16>
    %c0_1 = arith.constant 0 : index
    %c0_2 = arith.constant 0 : index
    %1 = vector.load %arg2[%c0_1, %c0_2] : memref<72x24xbf16, #tpu.memory_space<vmem>>, vector<72x24xbf16>
    %cst = arith.constant dense<0.000000e+00> : vector<32x24xf32>
    %2 = tpu.matmul %0, %1, %cst {dimension_numbers = #tpu.dot_dimension_numbers<[1], [0], [0], [1], [0, 0, 1, 1], [], []>} : vector<32x72xbf16>, vector<72x24xbf16>, vector<32x24xf32> -> vector<32x24xf32>
    %c0_3 = arith.constant 0 : index
    %c0_4 = arith.constant 0 : index
    %3 = vector.load %arg3[%c0_3, %c0_4] : memref<1x24xf32, #tpu.memory_space<vmem>>, vector<1x24xf32>
    %4 = vector.broadcast %3 : vector<1x24xf32> to vector<32x24xf32>
    %5 = arith.addf %2, %4 : vector<32x24xf32>
    %6 = arith.truncf %5 : vector<32x24xf32> to vector<32x24xbf16>
    %c0_5 = arith.constant 0 : index
    %c0_6 = arith.constant 0 : index
    %7 = vector.load %arg4[%c0_5, %c0_6] : memref<32x24xbf16, #tpu.memory_space<vmem>>, vector<32x24xbf16>
    tpu.vector_store %arg4[%c0_5, %c0_6], %6 {strides = array<i32>} : memref<32x24xbf16, #tpu.memory_space<vmem>>, vector<32x24xbf16>,
    return
  }
  func.func @transform_0(%arg0: i32) -> (i32, i32) {
    %c0_i32 = arith.constant 0 : i32
    %c0_i32_0 = arith.constant 0 : i32
    return %arg0, %c0_i32 : i32, i32
  }
  func.func @transform_1(%arg0: i32) -> (i32, i32) {
    %c0_i32 = arith.constant 0 : i32
    %c0_i32_0 = arith.constant 0 : i32
    %c0_i32_1 = arith.constant 0 : i32
    return %c0_i32, %c0_i32_0 : i32, i32
  }
  func.func @transform_2(%arg0: i32) -> (i32, i32) {
    %c0_i32 = arith.constant 0 : i32
    %c0_i32_0 = arith.constant 0 : i32
    %c0_i32_1 = arith.constant 0 : i32
    return %c0_i32, %c0_i32_0 : i32, i32
  }
  func.func @transform_3(%arg0: i32) -> (i32, i32) {
    %c0_i32 = arith.constant 0 : i32
    %c0_i32_0 = arith.constant 0 : i32
    return %arg0, %c0_i32 : i32, i32
  }
}

module attributes {stable_mosaic.version = 11 : i64} {
  func.func @_mm_kernel(%arg0: i32, %arg1: memref<32x24xbf16, #tpu.memory_space<vmem>>, %arg2: memref<24x88xbf16, #tpu.memory_space<vmem>>, %arg3: memref<1x88xf32, #tpu.memory_space<vmem>>, %arg4: memref<32x88xbf16, #tpu.memory_space<vmem>>) attributes {dimension_semantics = [#tpu.dimension_semantics<parallel>], iteration_bounds = array<i64: 1>, scalar_prefetch = 0 : i64, scratch_operands = 0 : i64, tpu.core_type = #tpu.core_type<tc>, window_params = [{transform_indices = @transform_0, window_bounds = array<i64: 32, 24>}, {pipeline_mode = #tpu.pipeline_mode<synchronous>, transform_indices = @transform_1, window_bounds = array<i64: 24, 88>}, {pipeline_mode = #tpu.pipeline_mode<synchronous>, transform_indices = @transform_2, window_bounds = array<i64: 1, 88>}, {transform_indices = @transform_3, window_bounds = array<i64: 32, 88>}]} {
    %c0 = arith.constant 0 : index
    %c0_0 = arith.constant 0 : index
    %0 = vector.load %arg1[%c0, %c0_0] : memref<32x24xbf16, #tpu.memory_space<vmem>>, vector<32x24xbf16>
    %c0_1 = arith.constant 0 : index
    %c0_2 = arith.constant 0 : index
    %1 = vector.load %arg2[%c0_1, %c0_2] : memref<24x88xbf16, #tpu.memory_space<vmem>>, vector<24x88xbf16>
    %cst = arith.constant dense<0.000000e+00> : vector<32x88xf32>
    %2 = tpu.matmul %0, %1, %cst {dimension_numbers = #tpu.dot_dimension_numbers<[1], [0], [0], [1], [0, 0, 1, 1], [], []>} : vector<32x24xbf16>, vector<24x88xbf16>, vector<32x88xf32> -> vector<32x88xf32>
    %c0_3 = arith.constant 0 : index
    %c0_4 = arith.constant 0 : index
    %3 = vector.load %arg3[%c0_3, %c0_4] : memref<1x88xf32, #tpu.memory_space<vmem>>, vector<1x88xf32>
    %4 = vector.broadcast %3 : vector<1x88xf32> to vector<32x88xf32>
    %5 = arith.addf %2, %4 : vector<32x88xf32>
    %cst_5 = arith.constant 0.000000e+00 : f32
    %6 = vector.broadcast %cst_5 : f32 to vector<32x88xf32>
    %7 = arith.maximumf %5, %6 : vector<32x88xf32>
    %8 = arith.truncf %7 : vector<32x88xf32> to vector<32x88xbf16>
    %c0_6 = arith.constant 0 : index
    %c0_7 = arith.constant 0 : index
    %9 = vector.load %arg4[%c0_6, %c0_7] : memref<32x88xbf16, #tpu.memory_space<vmem>>, vector<32x88xbf16>
    tpu.vector_store %arg4[%c0_6, %c0_7], %8 {strides = array<i32>} : memref<32x88xbf16, #tpu.memory_space<vmem>>, vector<32x88xbf16>,
    return
  }
  func.func @transform_0(%arg0: i32) -> (i32, i32) {
    %c0_i32 = arith.constant 0 : i32
    %c0_i32_0 = arith.constant 0 : i32
    return %arg0, %c0_i32 : i32, i32
  }
  func.func @transform_1(%arg0: i32) -> (i32, i32) {
    %c0_i32 = arith.constant 0 : i32
    %c0_i32_0 = arith.constant 0 : i32
    %c0_i32_1 = arith.constant 0 : i32
    return %c0_i32, %c0_i32_0 : i32, i32
  }
  func.func @transform_2(%arg0: i32) -> (i32, i32) {
    %c0_i32 = arith.constant 0 : i32
    %c0_i32_0 = arith.constant 0 : i32
    %c0_i32_1 = arith.constant 0 : i32
    return %c0_i32, %c0_i32_0 : i32, i32
  }
  func.func @transform_3(%arg0: i32) -> (i32, i32) {
    %c0_i32 = arith.constant 0 : i32
    %c0_i32_0 = arith.constant 0 : i32
    return %arg0, %c0_i32 : i32, i32
  }
}

module attributes {stable_mosaic.version = 11 : i64} {
  func.func @_mm_kernel(%arg0: i32, %arg1: memref<32x24xbf16, #tpu.memory_space<vmem>>, %arg2: memref<24x96xbf16, #tpu.memory_space<vmem>>, %arg3: memref<1x96xf32, #tpu.memory_space<vmem>>, %arg4: memref<32x96xbf16, #tpu.memory_space<vmem>>) attributes {dimension_semantics = [#tpu.dimension_semantics<parallel>], iteration_bounds = array<i64: 1>, scalar_prefetch = 0 : i64, scratch_operands = 0 : i64, tpu.core_type = #tpu.core_type<tc>, window_params = [{transform_indices = @transform_0, window_bounds = array<i64: 32, 24>}, {pipeline_mode = #tpu.pipeline_mode<synchronous>, transform_indices = @transform_1, window_bounds = array<i64: 24, 96>}, {pipeline_mode = #tpu.pipeline_mode<synchronous>, transform_indices = @transform_2, window_bounds = array<i64: 1, 96>}, {transform_indices = @transform_3, window_bounds = array<i64: 32, 96>}]} {
    %c0 = arith.constant 0 : index
    %c0_0 = arith.constant 0 : index
    %0 = vector.load %arg1[%c0, %c0_0] : memref<32x24xbf16, #tpu.memory_space<vmem>>, vector<32x24xbf16>
    %c0_1 = arith.constant 0 : index
    %c0_2 = arith.constant 0 : index
    %1 = vector.load %arg2[%c0_1, %c0_2] : memref<24x96xbf16, #tpu.memory_space<vmem>>, vector<24x96xbf16>
    %cst = arith.constant dense<0.000000e+00> : vector<32x96xf32>
    %2 = tpu.matmul %0, %1, %cst {dimension_numbers = #tpu.dot_dimension_numbers<[1], [0], [0], [1], [0, 0, 1, 1], [], []>} : vector<32x24xbf16>, vector<24x96xbf16>, vector<32x96xf32> -> vector<32x96xf32>
    %c0_3 = arith.constant 0 : index
    %c0_4 = arith.constant 0 : index
    %3 = vector.load %arg3[%c0_3, %c0_4] : memref<1x96xf32, #tpu.memory_space<vmem>>, vector<1x96xf32>
    %4 = vector.broadcast %3 : vector<1x96xf32> to vector<32x96xf32>
    %5 = arith.addf %2, %4 : vector<32x96xf32>
    %cst_5 = arith.constant 3.000000e+00 : f32
    %6 = vector.broadcast %cst_5 : f32 to vector<32x96xf32>
    %7 = arith.addf %5, %6 : vector<32x96xf32>
    %cst_6 = arith.constant 0.000000e+00 : f32
    %cst_7 = arith.constant 6.000000e+00 : f32
    %8 = vector.broadcast %cst_6 : f32 to vector<32x96xf32>
    %9 = arith.maximumf %8, %7 : vector<32x96xf32>
    %10 = vector.broadcast %cst_7 : f32 to vector<32x96xf32>
    %11 = arith.minimumf %10, %9 : vector<32x96xf32>
    %12 = arith.mulf %5, %11 : vector<32x96xf32>
    %cst_8 = arith.constant 0.166666672 : f32
    %13 = vector.broadcast %cst_8 : f32 to vector<32x96xf32>
    %14 = arith.mulf %12, %13 : vector<32x96xf32>
    %15 = arith.truncf %14 : vector<32x96xf32> to vector<32x96xbf16>
    %c0_9 = arith.constant 0 : index
    %c0_10 = arith.constant 0 : index
    %16 = vector.load %arg4[%c0_9, %c0_10] : memref<32x96xbf16, #tpu.memory_space<vmem>>, vector<32x96xbf16>
    tpu.vector_store %arg4[%c0_9, %c0_10], %15 {strides = array<i32>} : memref<32x96xbf16, #tpu.memory_space<vmem>>, vector<32x96xbf16>,
    return
  }
  func.func @transform_0(%arg0: i32) -> (i32, i32) {
    %c0_i32 = arith.constant 0 : i32
    %c0_i32_0 = arith.constant 0 : i32
    return %arg0, %c0_i32 : i32, i32
  }
  func.func @transform_1(%arg0: i32) -> (i32, i32) {
    %c0_i32 = arith.constant 0 : i32
    %c0_i32_0 = arith.constant 0 : i32
    %c0_i32_1 = arith.constant 0 : i32
    return %c0_i32, %c0_i32_0 : i32, i32
  }
  func.func @transform_2(%arg0: i32) -> (i32, i32) {
    %c0_i32 = arith.constant 0 : i32
    %c0_i32_0 = arith.constant 0 : i32
    %c0_i32_1 = arith.constant 0 : i32
    return %c0_i32, %c0_i32_0 : i32, i32
  }
  func.func @transform_3(%arg0: i32) -> (i32, i32) {
    %c0_i32 = arith.constant 0 : i32
    %c0_i32_0 = arith.constant 0 : i32
    return %arg0, %c0_i32 : i32, i32
  }
}

module attributes {stable_mosaic.version = 11 : i64} {
  func.func @_mm_kernel(%arg0: i32, %arg1: memref<32x88xbf16, #tpu.memory_space<vmem>>, %arg2: memref<88x24xbf16, #tpu.memory_space<vmem>>, %arg3: memref<1x24xf32, #tpu.memory_space<vmem>>, %arg4: memref<32x24xbf16, #tpu.memory_space<vmem>>, %arg5: memref<32x24xbf16, #tpu.memory_space<vmem>>) attributes {dimension_semantics = [#tpu.dimension_semantics<parallel>], iteration_bounds = array<i64: 1>, scalar_prefetch = 0 : i64, scratch_operands = 0 : i64, tpu.core_type = #tpu.core_type<tc>, window_params = [{transform_indices = @transform_0, window_bounds = array<i64: 32, 88>}, {pipeline_mode = #tpu.pipeline_mode<synchronous>, transform_indices = @transform_1, window_bounds = array<i64: 88, 24>}, {pipeline_mode = #tpu.pipeline_mode<synchronous>, transform_indices = @transform_2, window_bounds = array<i64: 1, 24>}, {transform_indices = @transform_3, window_bounds = array<i64: 32, 24>}, {transform_indices = @transform_4, window_bounds = array<i64: 32, 24>}]} {
    %c0 = arith.constant 0 : index
    %c0_0 = arith.constant 0 : index
    %0 = vector.load %arg1[%c0, %c0_0] : memref<32x88xbf16, #tpu.memory_space<vmem>>, vector<32x88xbf16>
    %c0_1 = arith.constant 0 : index
    %c0_2 = arith.constant 0 : index
    %1 = vector.load %arg2[%c0_1, %c0_2] : memref<88x24xbf16, #tpu.memory_space<vmem>>, vector<88x24xbf16>
    %cst = arith.constant dense<0.000000e+00> : vector<32x24xf32>
    %2 = tpu.matmul %0, %1, %cst {dimension_numbers = #tpu.dot_dimension_numbers<[1], [0], [0], [1], [0, 0, 1, 1], [], []>} : vector<32x88xbf16>, vector<88x24xbf16>, vector<32x24xf32> -> vector<32x24xf32>
    %c0_3 = arith.constant 0 : index
    %c0_4 = arith.constant 0 : index
    %3 = vector.load %arg3[%c0_3, %c0_4] : memref<1x24xf32, #tpu.memory_space<vmem>>, vector<1x24xf32>
    %4 = vector.broadcast %3 : vector<1x24xf32> to vector<32x24xf32>
    %5 = arith.addf %2, %4 : vector<32x24xf32>
    %c0_5 = arith.constant 0 : index
    %c0_6 = arith.constant 0 : index
    %6 = vector.load %arg4[%c0_5, %c0_6] : memref<32x24xbf16, #tpu.memory_space<vmem>>, vector<32x24xbf16>
    %7 = arith.extf %6 : vector<32x24xbf16> to vector<32x24xf32>
    %8 = arith.addf %5, %7 : vector<32x24xf32>
    %9 = arith.truncf %8 : vector<32x24xf32> to vector<32x24xbf16>
    %c0_7 = arith.constant 0 : index
    %c0_8 = arith.constant 0 : index
    %10 = vector.load %arg5[%c0_7, %c0_8] : memref<32x24xbf16, #tpu.memory_space<vmem>>, vector<32x24xbf16>
    tpu.vector_store %arg5[%c0_7, %c0_8], %9 {strides = array<i32>} : memref<32x24xbf16, #tpu.memory_space<vmem>>, vector<32x24xbf16>,
    return
  }
  func.func @transform_0(%arg0: i32) -> (i32, i32) {
    %c0_i32 = arith.constant 0 : i32
    %c0_i32_0 = arith.constant 0 : i32
    return %arg0, %c0_i32 : i32, i32
  }
  func.func @transform_1(%arg0: i32) -> (i32, i32) {
    %c0_i32 = arith.constant 0 : i32
    %c0_i32_0 = arith.constant 0 : i32
    %c0_i32_1 = arith.constant 0 : i32
    return %c0_i32, %c0_i32_0 : i32, i32
  }
  func.func @transform_2(%arg0: i32) -> (i32, i32) {
    %c0_i32 = arith.constant 0 : i32
    %c0_i32_0 = arith.constant 0 : i32
    %c0_i32_1 = arith.constant 0 : i32
    return %c0_i32, %c0_i32_0 : i32, i32
  }
  func.func @transform_3(%arg0: i32) -> (i32, i32) {
    %c0_i32 = arith.constant 0 : i32
    %c0_i32_0 = arith.constant 0 : i32
    return %arg0, %c0_i32 : i32, i32
  }
  func.func @transform_4(%arg0: i32) -> (i32, i32) {
    %c0_i32 = arith.constant 0 : i32
    %c0_i32_0 = arith.constant 0 : i32
    return %arg0, %c0_i32 : i32, i32
  }
}

module attributes {stable_mosaic.version = 11 : i64} {
  func.func @_dw_kernel_phase(%arg0: i32, %arg1: memref<4x1x4x4x96xbf16, #tpu.memory_space<vmem>>, %arg2: memref<5x5x96xf32, #tpu.memory_space<vmem>>, %arg3: memref<1x96xf32, #tpu.memory_space<vmem>>, %arg4: memref<96x96xf32, #tpu.memory_space<vmem>>, %arg5: memref<1x96xf32, #tpu.memory_space<vmem>>, %arg6: memref<96x96xf32, #tpu.memory_space<vmem>>, %arg7: memref<1x96xf32, #tpu.memory_space<vmem>>, %arg8: memref<1x2x2x96xbf16, #tpu.memory_space<vmem>>) attributes {dimension_semantics = [#tpu.dimension_semantics<parallel>], iteration_bounds = array<i64: 2>, scalar_prefetch = 0 : i64, scratch_operands = 0 : i64, tpu.core_type = #tpu.core_type<tc>, window_params = [{transform_indices = @transform_0, window_bounds = array<i64: 4, 1, 4, 4, 96>}, {pipeline_mode = #tpu.pipeline_mode<synchronous>, transform_indices = @transform_1, window_bounds = array<i64: 5, 5, 96>}, {pipeline_mode = #tpu.pipeline_mode<synchronous>, transform_indices = @transform_2, window_bounds = array<i64: 1, 96>}, {pipeline_mode = #tpu.pipeline_mode<synchronous>, transform_indices = @transform_3, window_bounds = array<i64: 96, 96>}, {pipeline_mode = #tpu.pipeline_mode<synchronous>, transform_indices = @transform_4, window_bounds = array<i64: 1, 96>}, {pipeline_mode = #tpu.pipeline_mode<synchronous>, transform_indices = @transform_5, window_bounds = array<i64: 96, 96>}, {pipeline_mode = #tpu.pipeline_mode<synchronous>, transform_indices = @transform_6, window_bounds = array<i64: 1, 96>}, {transform_indices = @transform_7, window_bounds = array<i64: 1, 2, 2, 96>}]} {
    %cst = arith.constant 0.000000e+00 : f32
    %0 = vector.broadcast %cst : f32 to vector<2x2x96xf32>
    %c0 = arith.constant 0 : index
    %c0_0 = arith.constant 0 : index
    %c0_1 = arith.constant 0 : index
    %c0_2 = arith.constant 0 : index
    %c0_3 = arith.constant 0 : index
    %1 = vector.load %arg1[%c0, %c0_0, %c0_1, %c0_2, %c0_3] : memref<4x1x4x4x96xbf16, #tpu.memory_space<vmem>>, vector<1x1x2x2x96xbf16>
    %2 = vector.shape_cast %1 : vector<1x1x2x2x96xbf16> to vector<2x2x96xbf16>
    %3 = arith.extf %2 : vector<2x2x96xbf16> to vector<2x2x96xf32>
    %c0_4 = arith.constant 0 : index
    %c0_5 = arith.constant 0 : index
    %c0_6 = arith.constant 0 : index
    %4 = vector.load %arg2[%c0_4, %c0_5, %c0_6] : memref<5x5x96xf32, #tpu.memory_space<vmem>>, vector<1x1x96xf32>
    %5 = vector.shape_cast %4 : vector<1x1x96xf32> to vector<96xf32>
    %6 = vector.shape_cast %5 : vector<96xf32> to vector<1x1x96xf32>
    %7 = vector.broadcast %6 : vector<1x1x96xf32> to vector<2x2x96xf32>
    %8 = arith.mulf %3, %7 : vector<2x2x96xf32>
    %9 = arith.addf %0, %8 : vector<2x2x96xf32>
    %c1 = arith.constant 1 : index
    %c0_7 = arith.constant 0 : index
    %c0_8 = arith.constant 0 : index
    %c0_9 = arith.constant 0 : index
    %c0_10 = arith.constant 0 : index
    %10 = vector.load %arg1[%c1, %c0_7, %c0_8, %c0_9, %c0_10] : memref<4x1x4x4x96xbf16, #tpu.memory_space<vmem>>, vector<1x1x2x2x96xbf16>
    %11 = vector.shape_cast %10 : vector<1x1x2x2x96xbf16> to vector<2x2x96xbf16>
    %12 = arith.extf %11 : vector<2x2x96xbf16> to vector<2x2x96xf32>
    %c0_11 = arith.constant 0 : index
    %c1_12 = arith.constant 1 : index
    %c0_13 = arith.constant 0 : index
    %13 = vector.load %arg2[%c0_11, %c1_12, %c0_13] : memref<5x5x96xf32, #tpu.memory_space<vmem>>, vector<1x1x96xf32>
    %14 = vector.shape_cast %13 : vector<1x1x96xf32> to vector<96xf32>
    %15 = vector.shape_cast %14 : vector<96xf32> to vector<1x1x96xf32>
    %16 = vector.broadcast %15 : vector<1x1x96xf32> to vector<2x2x96xf32>
    %17 = arith.mulf %12, %16 : vector<2x2x96xf32>
    %18 = arith.addf %9, %17 : vector<2x2x96xf32>
    %c0_14 = arith.constant 0 : index
    %c0_15 = arith.constant 0 : index
    %c0_16 = arith.constant 0 : index
    %c1_17 = arith.constant 1 : index
    %c0_18 = arith.constant 0 : index
    %19 = vector.load %arg1[%c0_14, %c0_15, %c0_16, %c1_17, %c0_18] : memref<4x1x4x4x96xbf16, #tpu.memory_space<vmem>>, vector<1x1x2x2x96xbf16>
    %20 = vector.shape_cast %19 : vector<1x1x2x2x96xbf16> to vector<2x2x96xbf16>
    %21 = arith.extf %20 : vector<2x2x96xbf16> to vector<2x2x96xf32>
    %c0_19 = arith.constant 0 : index
    %c2 = arith.constant 2 : index
    %c0_20 = arith.constant 0 : index
    %22 = vector.load %arg2[%c0_19, %c2, %c0_20] : memref<5x5x96xf32, #tpu.memory_space<vmem>>, vector<1x1x96xf32>
    %23 = vector.shape_cast %22 : vector<1x1x96xf32> to vector<96xf32>
    %24 = vector.shape_cast %23 : vector<96xf32> to vector<1x1x96xf32>
    %25 = vector.broadcast %24 : vector<1x1x96xf32> to vector<2x2x96xf32>
    %26 = arith.mulf %21, %25 : vector<2x2x96xf32>
    %27 = arith.addf %18, %26 : vector<2x2x96xf32>
    %c1_21 = arith.constant 1 : index
    %c0_22 = arith.constant 0 : index
    %c0_23 = arith.constant 0 : index
    %c1_24 = arith.constant 1 : index
    %c0_25 = arith.constant 0 : index
    %28 = vector.load %arg1[%c1_21, %c0_22, %c0_23, %c1_24, %c0_25] : memref<4x1x4x4x96xbf16, #tpu.memory_space<vmem>>, vector<1x1x2x2x96xbf16>
    %29 = vector.shape_cast %28 : vector<1x1x2x2x96xbf16> to vector<2x2x96xbf16>
    %30 = arith.extf %29 : vector<2x2x96xbf16> to vector<2x2x96xf32>
    %c0_26 = arith.constant 0 : index
    %c3 = arith.constant 3 : index
    %c0_27 = arith.constant 0 : index
    %31 = vector.load %arg2[%c0_26, %c3, %c0_27] : memref<5x5x96xf32, #tpu.memory_space<vmem>>, vector<1x1x96xf32>
    %32 = vector.shape_cast %31 : vector<1x1x96xf32> to vector<96xf32>
    %33 = vector.shape_cast %32 : vector<96xf32> to vector<1x1x96xf32>
    %34 = vector.broadcast %33 : vector<1x1x96xf32> to vector<2x2x96xf32>
    %35 = arith.mulf %30, %34 : vector<2x2x96xf32>
    %36 = arith.addf %27, %35 : vector<2x2x96xf32>
    %c0_28 = arith.constant 0 : index
    %c0_29 = arith.constant 0 : index
    %c0_30 = arith.constant 0 : index
    %c2_31 = arith.constant 2 : index
    %c0_32 = arith.constant 0 : index
    %37 = vector.load %arg1[%c0_28, %c0_29, %c0_30, %c2_31, %c0_32] : memref<4x1x4x4x96xbf16, #tpu.memory_space<vmem>>, vector<1x1x2x2x96xbf16>
    %38 = vector.shape_cast %37 : vector<1x1x2x2x96xbf16> to vector<2x2x96xbf16>
    %39 = arith.extf %38 : vector<2x2x96xbf16> to vector<2x2x96xf32>
    %c0_33 = arith.constant 0 : index
    %c4 = arith.constant 4 : index
    %c0_34 = arith.constant 0 : index
    %40 = vector.load %arg2[%c0_33, %c4, %c0_34] : memref<5x5x96xf32, #tpu.memory_space<vmem>>, vector<1x1x96xf32>
    %41 = vector.shape_cast %40 : vector<1x1x96xf32> to vector<96xf32>
    %42 = vector.shape_cast %41 : vector<96xf32> to vector<1x1x96xf32>
    %43 = vector.broadcast %42 : vector<1x1x96xf32> to vector<2x2x96xf32>
    %44 = arith.mulf %39, %43 : vector<2x2x96xf32>
    %45 = arith.addf %36, %44 : vector<2x2x96xf32>
    %c2_35 = arith.constant 2 : index
    %c0_36 = arith.constant 0 : index
    %c0_37 = arith.constant 0 : index
    %c0_38 = arith.constant 0 : index
    %c0_39 = arith.constant 0 : index
    %46 = vector.load %arg1[%c2_35, %c0_36, %c0_37, %c0_38, %c0_39] : memref<4x1x4x4x96xbf16, #tpu.memory_space<vmem>>, vector<1x1x2x2x96xbf16>
    %47 = vector.shape_cast %46 : vector<1x1x2x2x96xbf16> to vector<2x2x96xbf16>
    %48 = arith.extf %47 : vector<2x2x96xbf16> to vector<2x2x96xf32>
    %c1_40 = arith.constant 1 : index
    %c0_41 = arith.constant 0 : index
    %c0_42 = arith.constant 0 : index
    %49 = vector.load %arg2[%c1_40, %c0_41, %c0_42] : memref<5x5x96xf32, #tpu.memory_space<vmem>>, vector<1x1x96xf32>
    %50 = vector.shape_cast %49 : vector<1x1x96xf32> to vector<96xf32>
    %51 = vector.shape_cast %50 : vector<96xf32> to vector<1x1x96xf32>
    %52 = vector.broadcast %51 : vector<1x1x96xf32> to vector<2x2x96xf32>
    %53 = arith.mulf %48, %52 : vector<2x2x96xf32>
    %54 = arith.addf %45, %53 : vector<2x2x96xf32>
    %c3_43 = arith.constant 3 : index
    %c0_44 = arith.constant 0 : index
    %c0_45 = arith.constant 0 : index
    %c0_46 = arith.constant 0 : index
    %c0_47 = arith.constant 0 : index
    %55 = vector.load %arg1[%c3_43, %c0_44, %c0_45, %c0_46, %c0_47] : memref<4x1x4x4x96xbf16, #tpu.memory_space<vmem>>, vector<1x1x2x2x96xbf16>
    %56 = vector.shape_cast %55 : vector<1x1x2x2x96xbf16> to vector<2x2x96xbf16>
    %57 = arith.extf %56 : vector<2x2x96xbf16> to vector<2x2x96xf32>
    %c1_48 = arith.constant 1 : index
    %c1_49 = arith.constant 1 : index
    %c0_50 = arith.constant 0 : index
    %58 = vector.load %arg2[%c1_48, %c1_49, %c0_50] : memref<5x5x96xf32, #tpu.memory_space<vmem>>, vector<1x1x96xf32>
    %59 = vector.shape_cast %58 : vector<1x1x96xf32> to vector<96xf32>
    %60 = vector.shape_cast %59 : vector<96xf32> to vector<1x1x96xf32>
    %61 = vector.broadcast %60 : vector<1x1x96xf32> to vector<2x2x96xf32>
    %62 = arith.mulf %57, %61 : vector<2x2x96xf32>
    %63 = arith.addf %54, %62 : vector<2x2x96xf32>
    %c2_51 = arith.constant 2 : index
    %c0_52 = arith.constant 0 : index
    %c0_53 = arith.constant 0 : index
    %c1_54 = arith.constant 1 : index
    %c0_55 = arith.constant 0 : index
    %64 = vector.load %arg1[%c2_51, %c0_52, %c0_53, %c1_54, %c0_55] : memref<4x1x4x4x96xbf16, #tpu.memory_space<vmem>>, vector<1x1x2x2x96xbf16>
    %65 = vector.shape_cast %64 : vector<1x1x2x2x96xbf16> to vector<2x2x96xbf16>
    %66 = arith.extf %65 : vector<2x2x96xbf16> to vector<2x2x96xf32>
    %c1_56 = arith.constant 1 : index
    %c2_57 = arith.constant 2 : index
    %c0_58 = arith.constant 0 : index
    %67 = vector.load %arg2[%c1_56, %c2_57, %c0_58] : memref<5x5x96xf32, #tpu.memory_space<vmem>>, vector<1x1x96xf32>
    %68 = vector.shape_cast %67 : vector<1x1x96xf32> to vector<96xf32>
    %69 = vector.shape_cast %68 : vector<96xf32> to vector<1x1x96xf32>
    %70 = vector.broadcast %69 : vector<1x1x96xf32> to vector<2x2x96xf32>
    %71 = arith.mulf %66, %70 : vector<2x2x96xf32>
    %72 = arith.addf %63, %71 : vector<2x2x96xf32>
    %c3_59 = arith.constant 3 : index
    %c0_60 = arith.constant 0 : index
    %c0_61 = arith.constant 0 : index
    %c1_62 = arith.constant 1 : index
    %c0_63 = arith.constant 0 : index
    %73 = vector.load %arg1[%c3_59, %c0_60, %c0_61, %c1_62, %c0_63] : memref<4x1x4x4x96xbf16, #tpu.memory_space<vmem>>, vector<1x1x2x2x96xbf16>
    %74 = vector.shape_cast %73 : vector<1x1x2x2x96xbf16> to vector<2x2x96xbf16>
    %75 = arith.extf %74 : vector<2x2x96xbf16> to vector<2x2x96xf32>
    %c1_64 = arith.constant 1 : index
    %c3_65 = arith.constant 3 : index
    %c0_66 = arith.constant 0 : index
    %76 = vector.load %arg2[%c1_64, %c3_65, %c0_66] : memref<5x5x96xf32, #tpu.memory_space<vmem>>, vector<1x1x96xf32>
    %77 = vector.shape_cast %76 : vector<1x1x96xf32> to vector<96xf32>
    %78 = vector.shape_cast %77 : vector<96xf32> to vector<1x1x96xf32>
    %79 = vector.broadcast %78 : vector<1x1x96xf32> to vector<2x2x96xf32>
    %80 = arith.mulf %75, %79 : vector<2x2x96xf32>
    %81 = arith.addf %72, %80 : vector<2x2x96xf32>
    %c2_67 = arith.constant 2 : index
    %c0_68 = arith.constant 0 : index
    %c0_69 = arith.constant 0 : index
    %c2_70 = arith.constant 2 : index
    %c0_71 = arith.constant 0 : index
    %82 = vector.load %arg1[%c2_67, %c0_68, %c0_69, %c2_70, %c0_71] : memref<4x1x4x4x96xbf16, #tpu.memory_space<vmem>>, vector<1x1x2x2x96xbf16>
    %83 = vector.shape_cast %82 : vector<1x1x2x2x96xbf16> to vector<2x2x96xbf16>
    %84 = arith.extf %83 : vector<2x2x96xbf16> to vector<2x2x96xf32>
    %c1_72 = arith.constant 1 : index
    %c4_73 = arith.constant 4 : index
    %c0_74 = arith.constant 0 : index
    %85 = vector.load %arg2[%c1_72, %c4_73, %c0_74] : memref<5x5x96xf32, #tpu.memory_space<vmem>>, vector<1x1x96xf32>
    %86 = vector.shape_cast %85 : vector<1x1x96xf32> to vector<96xf32>
    %87 = vector.shape_cast %86 : vector<96xf32> to vector<1x1x96xf32>
    %88 = vector.broadcast %87 : vector<1x1x96xf32> to vector<2x2x96xf32>
    %89 = arith.mulf %84, %88 : vector<2x2x96xf32>
    %90 = arith.addf %81, %89 : vector<2x2x96xf32>
    %c0_75 = arith.constant 0 : index
    %c0_76 = arith.constant 0 : index
    %c1_77 = arith.constant 1 : index
    %c0_78 = arith.constant 0 : index
    %c0_79 = arith.constant 0 : index
    %91 = vector.load %arg1[%c0_75, %c0_76, %c1_77, %c0_78, %c0_79] : memref<4x1x4x4x96xbf16, #tpu.memory_space<vmem>>, vector<1x1x2x2x96xbf16>
    %92 = vector.shape_cast %91 : vector<1x1x2x2x96xbf16> to vector<2x2x96xbf16>
    %93 = arith.extf %92 : vector<2x2x96xbf16> to vector<2x2x96xf32>
    %c2_80 = arith.constant 2 : index
    %c0_81 = arith.constant 0 : index
    %c0_82 = arith.constant 0 : index
    %94 = vector.load %arg2[%c2_80, %c0_81, %c0_82] : memref<5x5x96xf32, #tpu.memory_space<vmem>>, vector<1x1x96xf32>
    %95 = vector.shape_cast %94 : vector<1x1x96xf32> to vector<96xf32>
    %96 = vector.shape_cast %95 : vector<96xf32> to vector<1x1x96xf32>
    %97 = vector.broadcast %96 : vector<1x1x96xf32> to vector<2x2x96xf32>
    %98 = arith.mulf %93, %97 : vector<2x2x96xf32>
    %99 = arith.addf %90, %98 : vector<2x2x96xf32>
    %c1_83 = arith.constant 1 : index
    %c0_84 = arith.constant 0 : index
    %c1_85 = arith.constant 1 : index
    %c0_86 = arith.constant 0 : index
    %c0_87 = arith.constant 0 : index
    %100 = vector.load %arg1[%c1_83, %c0_84, %c1_85, %c0_86, %c0_87] : memref<4x1x4x4x96xbf16, #tpu.memory_space<vmem>>, vector<1x1x2x2x96xbf16>
    %101 = vector.shape_cast %100 : vector<1x1x2x2x96xbf16> to vector<2x2x96xbf16>
    %102 = arith.extf %101 : vector<2x2x96xbf16> to vector<2x2x96xf32>
    %c2_88 = arith.constant 2 : index
    %c1_89 = arith.constant 1 : index
    %c0_90 = arith.constant 0 : index
    %103 = vector.load %arg2[%c2_88, %c1_89, %c0_90] : memref<5x5x96xf32, #tpu.memory_space<vmem>>, vector<1x1x96xf32>
    %104 = vector.shape_cast %103 : vector<1x1x96xf32> to vector<96xf32>
    %105 = vector.shape_cast %104 : vector<96xf32> to vector<1x1x96xf32>
    %106 = vector.broadcast %105 : vector<1x1x96xf32> to vector<2x2x96xf32>
    %107 = arith.mulf %102, %106 : vector<2x2x96xf32>
    %108 = arith.addf %99, %107 : vector<2x2x96xf32>
    %c0_91 = arith.constant 0 : index
    %c0_92 = arith.constant 0 : index
    %c1_93 = arith.constant 1 : index
    %c1_94 = arith.constant 1 : index
    %c0_95 = arith.constant 0 : index
    %109 = vector.load %arg1[%c0_91, %c0_92, %c1_93, %c1_94, %c0_95] : memref<4x1x4x4x96xbf16, #tpu.memory_space<vmem>>, vector<1x1x2x2x96xbf16>
    %110 = vector.shape_cast %109 : vector<1x1x2x2x96xbf16> to vector<2x2x96xbf16>
    %111 = arith.extf %110 : vector<2x2x96xbf16> to vector<2x2x96xf32>
    %c2_96 = arith.constant 2 : index
    %c2_97 = arith.constant 2 : index
    %c0_98 = arith.constant 0 : index
    %112 = vector.load %arg2[%c2_96, %c2_97, %c0_98] : memref<5x5x96xf32, #tpu.memory_space<vmem>>, vector<1x1x96xf32>
    %113 = vector.shape_cast %112 : vector<1x1x96xf32> to vector<96xf32>
    %114 = vector.shape_cast %113 : vector<96xf32> to vector<1x1x96xf32>
    %115 = vector.broadcast %114 : vector<1x1x96xf32> to vector<2x2x96xf32>
    %116 = arith.mulf %111, %115 : vector<2x2x96xf32>
    %117 = arith.addf %108, %116 : vector<2x2x96xf32>
    %c1_99 = arith.constant 1 : index
    %c0_100 = arith.constant 0 : index
    %c1_101 = arith.constant 1 : index
    %c1_102 = arith.constant 1 : index
    %c0_103 = arith.constant 0 : index
    %118 = vector.load %arg1[%c1_99, %c0_100, %c1_101, %c1_102, %c0_103] : memref<4x1x4x4x96xbf16, #tpu.memory_space<vmem>>, vector<1x1x2x2x96xbf16>
    %119 = vector.shape_cast %118 : vector<1x1x2x2x96xbf16> to vector<2x2x96xbf16>
    %120 = arith.extf %119 : vector<2x2x96xbf16> to vector<2x2x96xf32>
    %c2_104 = arith.constant 2 : index
    %c3_105 = arith.constant 3 : index
    %c0_106 = arith.constant 0 : index
    %121 = vector.load %arg2[%c2_104, %c3_105, %c0_106] : memref<5x5x96xf32, #tpu.memory_space<vmem>>, vector<1x1x96xf32>
    %122 = vector.shape_cast %121 : vector<1x1x96xf32> to vector<96xf32>
    %123 = vector.shape_cast %122 : vector<96xf32> to vector<1x1x96xf32>
    %124 = vector.broadcast %123 : vector<1x1x96xf32> to vector<2x2x96xf32>
    %125 = arith.mulf %120, %124 : vector<2x2x96xf32>
    %126 = arith.addf %117, %125 : vector<2x2x96xf32>
    %c0_107 = arith.constant 0 : index
    %c0_108 = arith.constant 0 : index
    %c1_109 = arith.constant 1 : index
    %c2_110 = arith.constant 2 : index
    %c0_111 = arith.constant 0 : index
    %127 = vector.load %arg1[%c0_107, %c0_108, %c1_109, %c2_110, %c0_111] : memref<4x1x4x4x96xbf16, #tpu.memory_space<vmem>>, vector<1x1x2x2x96xbf16>
    %128 = vector.shape_cast %127 : vector<1x1x2x2x96xbf16> to vector<2x2x96xbf16>
    %129 = arith.extf %128 : vector<2x2x96xbf16> to vector<2x2x96xf32>
    %c2_112 = arith.constant 2 : index
    %c4_113 = arith.constant 4 : index
    %c0_114 = arith.constant 0 : index
    %130 = vector.load %arg2[%c2_112, %c4_113, %c0_114] : memref<5x5x96xf32, #tpu.memory_space<vmem>>, vector<1x1x96xf32>
    %131 = vector.shape_cast %130 : vector<1x1x96xf32> to vector<96xf32>
    %132 = vector.shape_cast %131 : vector<96xf32> to vector<1x1x96xf32>
    %133 = vector.broadcast %132 : vector<1x1x96xf32> to vector<2x2x96xf32>
    %134 = arith.mulf %129, %133 : vector<2x2x96xf32>
    %135 = arith.addf %126, %134 : vector<2x2x96xf32>
    %c2_115 = arith.constant 2 : index
    %c0_116 = arith.constant 0 : index
    %c1_117 = arith.constant 1 : index
    %c0_118 = arith.constant 0 : index
    %c0_119 = arith.constant 0 : index
    %136 = vector.load %arg1[%c2_115, %c0_116, %c1_117, %c0_118, %c0_119] : memref<4x1x4x4x96xbf16, #tpu.memory_space<vmem>>, vector<1x1x2x2x96xbf16>
    %137 = vector.shape_cast %136 : vector<1x1x2x2x96xbf16> to vector<2x2x96xbf16>
    %138 = arith.extf %137 : vector<2x2x96xbf16> to vector<2x2x96xf32>
    %c3_120 = arith.constant 3 : index
    %c0_121 = arith.constant 0 : index
    %c0_122 = arith.constant 0 : index
    %139 = vector.load %arg2[%c3_120, %c0_121, %c0_122] : memref<5x5x96xf32, #tpu.memory_space<vmem>>, vector<1x1x96xf32>
    %140 = vector.shape_cast %139 : vector<1x1x96xf32> to vector<96xf32>
    %141 = vector.shape_cast %140 : vector<96xf32> to vector<1x1x96xf32>
    %142 = vector.broadcast %141 : vector<1x1x96xf32> to vector<2x2x96xf32>
    %143 = arith.mulf %138, %142 : vector<2x2x96xf32>
    %144 = arith.addf %135, %143 : vector<2x2x96xf32>
    %c3_123 = arith.constant 3 : index
    %c0_124 = arith.constant 0 : index
    %c1_125 = arith.constant 1 : index
    %c0_126 = arith.constant 0 : index
    %c0_127 = arith.constant 0 : index
    %145 = vector.load %arg1[%c3_123, %c0_124, %c1_125, %c0_126, %c0_127] : memref<4x1x4x4x96xbf16, #tpu.memory_space<vmem>>, vector<1x1x2x2x96xbf16>
    %146 = vector.shape_cast %145 : vector<1x1x2x2x96xbf16> to vector<2x2x96xbf16>
    %147 = arith.extf %146 : vector<2x2x96xbf16> to vector<2x2x96xf32>
    %c3_128 = arith.constant 3 : index
    %c1_129 = arith.constant 1 : index
    %c0_130 = arith.constant 0 : index
    %148 = vector.load %arg2[%c3_128, %c1_129, %c0_130] : memref<5x5x96xf32, #tpu.memory_space<vmem>>, vector<1x1x96xf32>
    %149 = vector.shape_cast %148 : vector<1x1x96xf32> to vector<96xf32>
    %150 = vector.shape_cast %149 : vector<96xf32> to vector<1x1x96xf32>
    %151 = vector.broadcast %150 : vector<1x1x96xf32> to vector<2x2x96xf32>
    %152 = arith.mulf %147, %151 : vector<2x2x96xf32>
    %153 = arith.addf %144, %152 : vector<2x2x96xf32>
    %c2_131 = arith.constant 2 : index
    %c0_132 = arith.constant 0 : index
    %c1_133 = arith.constant 1 : index
    %c1_134 = arith.constant 1 : index
    %c0_135 = arith.constant 0 : index
    %154 = vector.load %arg1[%c2_131, %c0_132, %c1_133, %c1_134, %c0_135] : memref<4x1x4x4x96xbf16, #tpu.memory_space<vmem>>, vector<1x1x2x2x96xbf16>
    %155 = vector.shape_cast %154 : vector<1x1x2x2x96xbf16> to vector<2x2x96xbf16>
    %156 = arith.extf %155 : vector<2x2x96xbf16> to vector<2x2x96xf32>
    %c3_136 = arith.constant 3 : index
    %c2_137 = arith.constant 2 : index
    %c0_138 = arith.constant 0 : index
    %157 = vector.load %arg2[%c3_136, %c2_137, %c0_138] : memref<5x5x96xf32, #tpu.memory_space<vmem>>, vector<1x1x96xf32>
    %158 = vector.shape_cast %157 : vector<1x1x96xf32> to vector<96xf32>
    %159 = vector.shape_cast %158 : vector<96xf32> to vector<1x1x96xf32>
    %160 = vector.broadcast %159 : vector<1x1x96xf32> to vector<2x2x96xf32>
    %161 = arith.mulf %156, %160 : vector<2x2x96xf32>
    %162 = arith.addf %153, %161 : vector<2x2x96xf32>
    %c3_139 = arith.constant 3 : index
    %c0_140 = arith.constant 0 : index
    %c1_141 = arith.constant 1 : index
    %c1_142 = arith.constant 1 : index
    %c0_143 = arith.constant 0 : index
    %163 = vector.load %arg1[%c3_139, %c0_140, %c1_141, %c1_142, %c0_143] : memref<4x1x4x4x96xbf16, #tpu.memory_space<vmem>>, vector<1x1x2x2x96xbf16>
    %164 = vector.shape_cast %163 : vector<1x1x2x2x96xbf16> to vector<2x2x96xbf16>
    %165 = arith.extf %164 : vector<2x2x96xbf16> to vector<2x2x96xf32>
    %c3_144 = arith.constant 3 : index
    %c3_145 = arith.constant 3 : index
    %c0_146 = arith.constant 0 : index
    %166 = vector.load %arg2[%c3_144, %c3_145, %c0_146] : memref<5x5x96xf32, #tpu.memory_space<vmem>>, vector<1x1x96xf32>
    %167 = vector.shape_cast %166 : vector<1x1x96xf32> to vector<96xf32>
    %168 = vector.shape_cast %167 : vector<96xf32> to vector<1x1x96xf32>
    %169 = vector.broadcast %168 : vector<1x1x96xf32> to vector<2x2x96xf32>
    %170 = arith.mulf %165, %169 : vector<2x2x96xf32>
    %171 = arith.addf %162, %170 : vector<2x2x96xf32>
    %c2_147 = arith.constant 2 : index
    %c0_148 = arith.constant 0 : index
    %c1_149 = arith.constant 1 : index
    %c2_150 = arith.constant 2 : index
    %c0_151 = arith.constant 0 : index
    %172 = vector.load %arg1[%c2_147, %c0_148, %c1_149, %c2_150, %c0_151] : memref<4x1x4x4x96xbf16, #tpu.memory_space<vmem>>, vector<1x1x2x2x96xbf16>
    %173 = vector.shape_cast %172 : vector<1x1x2x2x96xbf16> to vector<2x2x96xbf16>
    %174 = arith.extf %173 : vector<2x2x96xbf16> to vector<2x2x96xf32>
    %c3_152 = arith.constant 3 : index
    %c4_153 = arith.constant 4 : index
    %c0_154 = arith.constant 0 : index
    %175 = vector.load %arg2[%c3_152, %c4_153, %c0_154] : memref<5x5x96xf32, #tpu.memory_space<vmem>>, vector<1x1x96xf32>
    %176 = vector.shape_cast %175 : vector<1x1x96xf32> to vector<96xf32>
    %177 = vector.shape_cast %176 : vector<96xf32> to vector<1x1x96xf32>
    %178 = vector.broadcast %177 : vector<1x1x96xf32> to vector<2x2x96xf32>
    %179 = arith.mulf %174, %178 : vector<2x2x96xf32>
    %180 = arith.addf %171, %179 : vector<2x2x96xf32>
    %c0_155 = arith.constant 0 : index
    %c0_156 = arith.constant 0 : index
    %c2_157 = arith.constant 2 : index
    %c0_158 = arith.constant 0 : index
    %c0_159 = arith.constant 0 : index
    %181 = vector.load %arg1[%c0_155, %c0_156, %c2_157, %c0_158, %c0_159] : memref<4x1x4x4x96xbf16, #tpu.memory_space<vmem>>, vector<1x1x2x2x96xbf16>
    %182 = vector.shape_cast %181 : vector<1x1x2x2x96xbf16> to vector<2x2x96xbf16>
    %183 = arith.extf %182 : vector<2x2x96xbf16> to vector<2x2x96xf32>
    %c4_160 = arith.constant 4 : index
    %c0_161 = arith.constant 0 : index
    %c0_162 = arith.constant 0 : index
    %184 = vector.load %arg2[%c4_160, %c0_161, %c0_162] : memref<5x5x96xf32, #tpu.memory_space<vmem>>, vector<1x1x96xf32>
    %185 = vector.shape_cast %184 : vector<1x1x96xf32> to vector<96xf32>
    %186 = vector.shape_cast %185 : vector<96xf32> to vector<1x1x96xf32>
    %187 = vector.broadcast %186 : vector<1x1x96xf32> to vector<2x2x96xf32>
    %188 = arith.mulf %183, %187 : vector<2x2x96xf32>
    %189 = arith.addf %180, %188 : vector<2x2x96xf32>
    %c1_163 = arith.constant 1 : index
    %c0_164 = arith.constant 0 : index
    %c2_165 = arith.constant 2 : index
    %c0_166 = arith.constant 0 : index
    %c0_167 = arith.constant 0 : index
    %190 = vector.load %arg1[%c1_163, %c0_164, %c2_165, %c0_166, %c0_167] : memref<4x1x4x4x96xbf16, #tpu.memory_space<vmem>>, vector<1x1x2x2x96xbf16>
    %191 = vector.shape_cast %190 : vector<1x1x2x2x96xbf16> to vector<2x2x96xbf16>
    %192 = arith.extf %191 : vector<2x2x96xbf16> to vector<2x2x96xf32>
    %c4_168 = arith.constant 4 : index
    %c1_169 = arith.constant 1 : index
    %c0_170 = arith.constant 0 : index
    %193 = vector.load %arg2[%c4_168, %c1_169, %c0_170] : memref<5x5x96xf32, #tpu.memory_space<vmem>>, vector<1x1x96xf32>
    %194 = vector.shape_cast %193 : vector<1x1x96xf32> to vector<96xf32>
    %195 = vector.shape_cast %194 : vector<96xf32> to vector<1x1x96xf32>
    %196 = vector.broadcast %195 : vector<1x1x96xf32> to vector<2x2x96xf32>
    %197 = arith.mulf %192, %196 : vector<2x2x96xf32>
    %198 = arith.addf %189, %197 : vector<2x2x96xf32>
    %c0_171 = arith.constant 0 : index
    %c0_172 = arith.constant 0 : index
    %c2_173 = arith.constant 2 : index
    %c1_174 = arith.constant 1 : index
    %c0_175 = arith.constant 0 : index
    %199 = vector.load %arg1[%c0_171, %c0_172, %c2_173, %c1_174, %c0_175] : memref<4x1x4x4x96xbf16, #tpu.memory_space<vmem>>, vector<1x1x2x2x96xbf16>
    %200 = vector.shape_cast %199 : vector<1x1x2x2x96xbf16> to vector<2x2x96xbf16>
    %201 = arith.extf %200 : vector<2x2x96xbf16> to vector<2x2x96xf32>
    %c4_176 = arith.constant 4 : index
    %c2_177 = arith.constant 2 : index
    %c0_178 = arith.constant 0 : index
    %202 = vector.load %arg2[%c4_176, %c2_177, %c0_178] : memref<5x5x96xf32, #tpu.memory_space<vmem>>, vector<1x1x96xf32>
    %203 = vector.shape_cast %202 : vector<1x1x96xf32> to vector<96xf32>
    %204 = vector.shape_cast %203 : vector<96xf32> to vector<1x1x96xf32>
    %205 = vector.broadcast %204 : vector<1x1x96xf32> to vector<2x2x96xf32>
    %206 = arith.mulf %201, %205 : vector<2x2x96xf32>
    %207 = arith.addf %198, %206 : vector<2x2x96xf32>
    %c1_179 = arith.constant 1 : index
    %c0_180 = arith.constant 0 : index
    %c2_181 = arith.constant 2 : index
    %c1_182 = arith.constant 1 : index
    %c0_183 = arith.constant 0 : index
    %208 = vector.load %arg1[%c1_179, %c0_180, %c2_181, %c1_182, %c0_183] : memref<4x1x4x4x96xbf16, #tpu.memory_space<vmem>>, vector<1x1x2x2x96xbf16>
    %209 = vector.shape_cast %208 : vector<1x1x2x2x96xbf16> to vector<2x2x96xbf16>
    %210 = arith.extf %209 : vector<2x2x96xbf16> to vector<2x2x96xf32>
    %c4_184 = arith.constant 4 : index
    %c3_185 = arith.constant 3 : index
    %c0_186 = arith.constant 0 : index
    %211 = vector.load %arg2[%c4_184, %c3_185, %c0_186] : memref<5x5x96xf32, #tpu.memory_space<vmem>>, vector<1x1x96xf32>
    %212 = vector.shape_cast %211 : vector<1x1x96xf32> to vector<96xf32>
    %213 = vector.shape_cast %212 : vector<96xf32> to vector<1x1x96xf32>
    %214 = vector.broadcast %213 : vector<1x1x96xf32> to vector<2x2x96xf32>
    %215 = arith.mulf %210, %214 : vector<2x2x96xf32>
    %216 = arith.addf %207, %215 : vector<2x2x96xf32>
    %c0_187 = arith.constant 0 : index
    %c0_188 = arith.constant 0 : index
    %c2_189 = arith.constant 2 : index
    %c2_190 = arith.constant 2 : index
    %c0_191 = arith.constant 0 : index
    %217 = vector.load %arg1[%c0_187, %c0_188, %c2_189, %c2_190, %c0_191] : memref<4x1x4x4x96xbf16, #tpu.memory_space<vmem>>, vector<1x1x2x2x96xbf16>
    %218 = vector.shape_cast %217 : vector<1x1x2x2x96xbf16> to vector<2x2x96xbf16>
    %219 = arith.extf %218 : vector<2x2x96xbf16> to vector<2x2x96xf32>
    %c4_192 = arith.constant 4 : index
    %c4_193 = arith.constant 4 : index
    %c0_194 = arith.constant 0 : index
    %220 = vector.load %arg2[%c4_192, %c4_193, %c0_194] : memref<5x5x96xf32, #tpu.memory_space<vmem>>, vector<1x1x96xf32>
    %221 = vector.shape_cast %220 : vector<1x1x96xf32> to vector<96xf32>
    %222 = vector.shape_cast %221 : vector<96xf32> to vector<1x1x96xf32>
    %223 = vector.broadcast %222 : vector<1x1x96xf32> to vector<2x2x96xf32>
    %224 = arith.mulf %219, %223 : vector<2x2x96xf32>
    %225 = arith.addf %216, %224 : vector<2x2x96xf32>
    %c0_195 = arith.constant 0 : index
    %c0_196 = arith.constant 0 : index
    %226 = vector.load %arg3[%c0_195, %c0_196] : memref<1x96xf32, #tpu.memory_space<vmem>>, vector<1x96xf32>
    %227 = vector.shape_cast %226 : vector<1x96xf32> to vector<1x1x96xf32>
    %228 = vector.broadcast %227 : vector<1x1x96xf32> to vector<2x2x96xf32>
    %229 = arith.addf %225, %228 : vector<2x2x96xf32>
    %cst_197 = arith.constant 3.000000e+00 : f32
    %230 = vector.broadcast %cst_197 : f32 to vector<2x2x96xf32>
    %231 = arith.addf %229, %230 : vector<2x2x96xf32>
    %cst_198 = arith.constant 0.000000e+00 : f32
    %cst_199 = arith.constant 6.000000e+00 : f32
    %232 = vector.broadcast %cst_198 : f32 to vector<2x2x96xf32>
    %233 = arith.maximumf %232, %231 : vector<2x2x96xf32>
    %234 = vector.broadcast %cst_199 : f32 to vector<2x2x96xf32>
    %235 = arith.minimumf %234, %233 : vector<2x2x96xf32>
    %236 = arith.mulf %229, %235 : vector<2x2x96xf32>
    %cst_200 = arith.constant 0.166666672 : f32
    %237 = vector.broadcast %cst_200 : f32 to vector<2x2x96xf32>
    %238 = arith.mulf %236, %237 : vector<2x2x96xf32>
    %cst_201 = arith.constant dense<0.000000e+00> : vector<96xf32>
    %239 = vector.multi_reduction <add>, %238, %cst_201 [0, 1] : vector<2x2x96xf32> to vector<96xf32>
    %240 = vector.shape_cast %239 : vector<96xf32> to vector<1x1x96xf32>
    %cst_202 = arith.constant 4.000000e+00 : f32
    %241 = vector.broadcast %cst_202 : f32 to vector<1x1x96xf32>
    %242 = arith.divf %240, %241 : vector<1x1x96xf32>
    %243 = vector.shape_cast %242 : vector<1x1x96xf32> to vector<1x96xf32>
    %c0_203 = arith.constant 0 : index
    %c0_204 = arith.constant 0 : index
    %244 = vector.load %arg4[%c0_203, %c0_204] : memref<96x96xf32, #tpu.memory_space<vmem>>, vector<96x96xf32>
    %cst_205 = arith.constant dense<0.000000e+00> : vector<1x96xf32>
    %245 = tpu.matmul %243, %244, %cst_205 {dimension_numbers = #tpu.dot_dimension_numbers<[1], [0], [0], [1], [0, 0, 1, 1], [], []>} : vector<1x96xf32>, vector<96x96xf32>, vector<1x96xf32> -> vector<1x96xf32>
    %c0_206 = arith.constant 0 : index
    %c0_207 = arith.constant 0 : index
    %246 = vector.load %arg5[%c0_206, %c0_207] : memref<1x96xf32, #tpu.memory_space<vmem>>, vector<1x96xf32>
    %247 = arith.addf %245, %246 : vector<1x96xf32>
    %cst_208 = arith.constant 0.000000e+00 : f32
    %248 = vector.broadcast %cst_208 : f32 to vector<1x96xf32>
    %249 = arith.maximumf %247, %248 : vector<1x96xf32>
    %c0_209 = arith.constant 0 : index
    %c0_210 = arith.constant 0 : index
    %250 = vector.load %arg6[%c0_209, %c0_210] : memref<96x96xf32, #tpu.memory_space<vmem>>, vector<96x96xf32>
    %cst_211 = arith.constant dense<0.000000e+00> : vector<1x96xf32>
    %251 = tpu.matmul %249, %250, %cst_211 {dimension_numbers = #tpu.dot_dimension_numbers<[1], [0], [0], [1], [0, 0, 1, 1], [], []>} : vector<1x96xf32>, vector<96x96xf32>, vector<1x96xf32> -> vector<1x96xf32>
    %c0_212 = arith.constant 0 : index
    %c0_213 = arith.constant 0 : index
    %252 = vector.load %arg7[%c0_212, %c0_213] : memref<1x96xf32, #tpu.memory_space<vmem>>, vector<1x96xf32>
    %253 = arith.addf %251, %252 : vector<1x96xf32>
    %cst_214 = arith.constant 3.000000e+00 : f32
    %254 = vector.broadcast %cst_214 : f32 to vector<1x96xf32>
    %255 = arith.addf %253, %254 : vector<1x96xf32>
    %cst_215 = arith.constant 0.000000e+00 : f32
    %cst_216 = arith.constant 6.000000e+00 : f32
    %256 = vector.broadcast %cst_215 : f32 to vector<1x96xf32>
    %257 = arith.maximumf %256, %255 : vector<1x96xf32>
    %258 = vector.broadcast %cst_216 : f32 to vector<1x96xf32>
    %259 = arith.minimumf %258, %257 : vector<1x96xf32>
    %cst_217 = arith.constant 0.166666672 : f32
    %260 = vector.broadcast %cst_217 : f32 to vector<1x96xf32>
    %261 = arith.mulf %259, %260 : vector<1x96xf32>
    %262 = vector.shape_cast %261 : vector<1x96xf32> to vector<1x1x96xf32>
    %263 = vector.broadcast %262 : vector<1x1x96xf32> to vector<2x2x96xf32>
    %264 = arith.mulf %238, %263 : vector<2x2x96xf32>
    %265 = arith.truncf %264 : vector<2x2x96xf32> to vector<2x2x96xbf16>
    %c0_218 = arith.constant 0 : index
    %c0_219 = arith.constant 0 : index
    %c0_220 = arith.constant 0 : index
    %c0_221 = arith.constant 0 : index
    %266 = vector.load %arg8[%c0_218, %c0_219, %c0_220, %c0_221] : memref<1x2x2x96xbf16, #tpu.memory_space<vmem>>, vector<1x2x2x96xbf16>
    %267 = vector.shape_cast %266 : vector<1x2x2x96xbf16> to vector<2x2x96xbf16>
    %268 = vector.shape_cast %265 : vector<2x2x96xbf16> to vector<1x2x2x96xbf16>
    tpu.vector_store %arg8[%c0_218, %c0_219, %c0_220, %c0_221], %268 {strides = array<i32>} : memref<1x2x2x96xbf16, #tpu.memory_space<vmem>>, vector<1x2x2x96xbf16>,
    return
  }
  func.func @transform_0(%arg0: i32) -> (i32, i32, i32, i32, i32) {
    %c0_i32 = arith.constant 0 : i32
    %c0_i32_0 = arith.constant 0 : i32
    %c0_i32_1 = arith.constant 0 : i32
    %c0_i32_2 = arith.constant 0 : i32
    %c0_i32_3 = arith.constant 0 : i32
    return %c0_i32, %arg0, %c0_i32_0, %c0_i32_1, %c0_i32_2 : i32, i32, i32, i32, i32
  }
  func.func @transform_1(%arg0: i32) -> (i32, i32, i32) {
    %c0_i32 = arith.constant 0 : i32
    %c0_i32_0 = arith.constant 0 : i32
    %c0_i32_1 = arith.constant 0 : i32
    %c0_i32_2 = arith.constant 0 : i32
    return %c0_i32, %c0_i32_0, %c0_i32_1 : i32, i32, i32
  }
  func.func @transform_2(%arg0: i32) -> (i32, i32) {
    %c0_i32 = arith.constant 0 : i32
    %c0_i32_0 = arith.constant 0 : i32
    %c0_i32_1 = arith.constant 0 : i32
    return %c0_i32, %c0_i32_0 : i32, i32
  }
  func.func @transform_3(%arg0: i32) -> (i32, i32) {
    %c0_i32 = arith.constant 0 : i32
    %c0_i32_0 = arith.constant 0 : i32
    %c0_i32_1 = arith.constant 0 : i32
    return %c0_i32, %c0_i32_0 : i32, i32
  }
  func.func @transform_4(%arg0: i32) -> (i32, i32) {
    %c0_i32 = arith.constant 0 : i32
    %c0_i32_0 = arith.constant 0 : i32
    %c0_i32_1 = arith.constant 0 : i32
    return %c0_i32, %c0_i32_0 : i32, i32
  }
  func.func @transform_5(%arg0: i32) -> (i32, i32) {
    %c0_i32 = arith.constant 0 : i32
    %c0_i32_0 = arith.constant 0 : i32
    %c0_i32_1 = arith.constant 0 : i32
    return %c0_i32, %c0_i32_0 : i32, i32
  }
  func.func @transform_6(%arg0: i32) -> (i32, i32) {
    %c0_i32 = arith.constant 0 : i32
    %c0_i32_0 = arith.constant 0 : i32
    %c0_i32_1 = arith.constant 0 : i32
    return %c0_i32, %c0_i32_0 : i32, i32
  }
  func.func @transform_7(%arg0: i32) -> (i32, i32, i32, i32) {
    %c0_i32 = arith.constant 0 : i32
    %c0_i32_0 = arith.constant 0 : i32
    %c0_i32_1 = arith.constant 0 : i32
    %c0_i32_2 = arith.constant 0 : i32
    return %arg0, %c0_i32, %c0_i32_0, %c0_i32_1 : i32, i32, i32, i32
  }
}

module attributes {stable_mosaic.version = 11 : i64} {
  func.func @_mm_kernel(%arg0: i32, %arg1: memref<8x96xbf16, #tpu.memory_space<vmem>>, %arg2: memref<96x40xbf16, #tpu.memory_space<vmem>>, %arg3: memref<1x40xf32, #tpu.memory_space<vmem>>, %arg4: memref<8x40xbf16, #tpu.memory_space<vmem>>) attributes {dimension_semantics = [#tpu.dimension_semantics<parallel>], iteration_bounds = array<i64: 1>, scalar_prefetch = 0 : i64, scratch_operands = 0 : i64, tpu.core_type = #tpu.core_type<tc>, window_params = [{transform_indices = @transform_0, window_bounds = array<i64: 8, 96>}, {pipeline_mode = #tpu.pipeline_mode<synchronous>, transform_indices = @transform_1, window_bounds = array<i64: 96, 40>}, {pipeline_mode = #tpu.pipeline_mode<synchronous>, transform_indices = @transform_2, window_bounds = array<i64: 1, 40>}, {transform_indices = @transform_3, window_bounds = array<i64: 8, 40>}]} {
    %c0 = arith.constant 0 : index
    %c0_0 = arith.constant 0 : index
    %0 = vector.load %arg1[%c0, %c0_0] : memref<8x96xbf16, #tpu.memory_space<vmem>>, vector<8x96xbf16>
    %c0_1 = arith.constant 0 : index
    %c0_2 = arith.constant 0 : index
    %1 = vector.load %arg2[%c0_1, %c0_2] : memref<96x40xbf16, #tpu.memory_space<vmem>>, vector<96x40xbf16>
    %cst = arith.constant dense<0.000000e+00> : vector<8x40xf32>
    %2 = tpu.matmul %0, %1, %cst {dimension_numbers = #tpu.dot_dimension_numbers<[1], [0], [0], [1], [0, 0, 1, 1], [], []>} : vector<8x96xbf16>, vector<96x40xbf16>, vector<8x40xf32> -> vector<8x40xf32>
    %c0_3 = arith.constant 0 : index
    %c0_4 = arith.constant 0 : index
    %3 = vector.load %arg3[%c0_3, %c0_4] : memref<1x40xf32, #tpu.memory_space<vmem>>, vector<1x40xf32>
    %4 = vector.broadcast %3 : vector<1x40xf32> to vector<8x40xf32>
    %5 = arith.addf %2, %4 : vector<8x40xf32>
    %6 = arith.truncf %5 : vector<8x40xf32> to vector<8x40xbf16>
    %c0_5 = arith.constant 0 : index
    %c0_6 = arith.constant 0 : index
    %7 = vector.load %arg4[%c0_5, %c0_6] : memref<8x40xbf16, #tpu.memory_space<vmem>>, vector<8x40xbf16>
    tpu.vector_store %arg4[%c0_5, %c0_6], %6 {strides = array<i32>} : memref<8x40xbf16, #tpu.memory_space<vmem>>, vector<8x40xbf16>,
    return
  }
  func.func @transform_0(%arg0: i32) -> (i32, i32) {
    %c0_i32 = arith.constant 0 : i32
    %c0_i32_0 = arith.constant 0 : i32
    return %arg0, %c0_i32 : i32, i32
  }
  func.func @transform_1(%arg0: i32) -> (i32, i32) {
    %c0_i32 = arith.constant 0 : i32
    %c0_i32_0 = arith.constant 0 : i32
    %c0_i32_1 = arith.constant 0 : i32
    return %c0_i32, %c0_i32_0 : i32, i32
  }
  func.func @transform_2(%arg0: i32) -> (i32, i32) {
    %c0_i32 = arith.constant 0 : i32
    %c0_i32_0 = arith.constant 0 : i32
    %c0_i32_1 = arith.constant 0 : i32
    return %c0_i32, %c0_i32_0 : i32, i32
  }
  func.func @transform_3(%arg0: i32) -> (i32, i32) {
    %c0_i32 = arith.constant 0 : i32
    %c0_i32_0 = arith.constant 0 : i32
    return %arg0, %c0_i32 : i32, i32
  }
}

module attributes {stable_mosaic.version = 11 : i64} {
  func.func @_head_kernel(%arg0: i32, %arg1: memref<1x4x40xbf16, #tpu.memory_space<vmem>>, %arg2: memref<40x240xbf16, #tpu.memory_space<vmem>>, %arg3: memref<1x240xf32, #tpu.memory_space<vmem>>, %arg4: memref<240x64xf32, #tpu.memory_space<vmem>>, %arg5: memref<1x64xf32, #tpu.memory_space<vmem>>, %arg6: memref<64x10xf32, #tpu.memory_space<vmem>>, %arg7: memref<1x10xf32, #tpu.memory_space<vmem>>, %arg8: memref<1x1x10xf32, #tpu.memory_space<vmem>>) attributes {dimension_semantics = [#tpu.dimension_semantics<parallel>], iteration_bounds = array<i64: 2>, scalar_prefetch = 0 : i64, scratch_operands = 0 : i64, tpu.core_type = #tpu.core_type<tc>, window_params = [{transform_indices = @transform_0, window_bounds = array<i64: 1, 4, 40>}, {pipeline_mode = #tpu.pipeline_mode<synchronous>, transform_indices = @transform_1, window_bounds = array<i64: 40, 240>}, {pipeline_mode = #tpu.pipeline_mode<synchronous>, transform_indices = @transform_2, window_bounds = array<i64: 1, 240>}, {pipeline_mode = #tpu.pipeline_mode<synchronous>, transform_indices = @transform_3, window_bounds = array<i64: 240, 64>}, {pipeline_mode = #tpu.pipeline_mode<synchronous>, transform_indices = @transform_4, window_bounds = array<i64: 1, 64>}, {pipeline_mode = #tpu.pipeline_mode<synchronous>, transform_indices = @transform_5, window_bounds = array<i64: 64, 10>}, {pipeline_mode = #tpu.pipeline_mode<synchronous>, transform_indices = @transform_6, window_bounds = array<i64: 1, 10>}, {transform_indices = @transform_7, window_bounds = array<i64: 1, 1, 10>}]} {
    %c0 = arith.constant 0 : index
    %c0_0 = arith.constant 0 : index
    %c0_1 = arith.constant 0 : index
    %0 = vector.load %arg1[%c0, %c0_0, %c0_1] : memref<1x4x40xbf16, #tpu.memory_space<vmem>>, vector<1x4x40xbf16>
    %1 = vector.shape_cast %0 : vector<1x4x40xbf16> to vector<4x40xbf16>
    %c0_2 = arith.constant 0 : index
    %c0_3 = arith.constant 0 : index
    %2 = vector.load %arg2[%c0_2, %c0_3] : memref<40x240xbf16, #tpu.memory_space<vmem>>, vector<40x240xbf16>
    %cst = arith.constant dense<0.000000e+00> : vector<4x240xf32>
    %3 = tpu.matmul %1, %2, %cst {dimension_numbers = #tpu.dot_dimension_numbers<[1], [0], [0], [1], [0, 0, 1, 1], [], []>} : vector<4x40xbf16>, vector<40x240xbf16>, vector<4x240xf32> -> vector<4x240xf32>
    %c0_4 = arith.constant 0 : index
    %c0_5 = arith.constant 0 : index
    %4 = vector.load %arg3[%c0_4, %c0_5] : memref<1x240xf32, #tpu.memory_space<vmem>>, vector<1x240xf32>
    %5 = vector.broadcast %4 : vector<1x240xf32> to vector<4x240xf32>
    %6 = arith.addf %3, %5 : vector<4x240xf32>
    %cst_6 = arith.constant 3.000000e+00 : f32
    %7 = vector.broadcast %cst_6 : f32 to vector<4x240xf32>
    %8 = arith.addf %6, %7 : vector<4x240xf32>
    %cst_7 = arith.constant 0.000000e+00 : f32
    %cst_8 = arith.constant 6.000000e+00 : f32
    %9 = vector.broadcast %cst_7 : f32 to vector<4x240xf32>
    %10 = arith.maximumf %9, %8 : vector<4x240xf32>
    %11 = vector.broadcast %cst_8 : f32 to vector<4x240xf32>
    %12 = arith.minimumf %11, %10 : vector<4x240xf32>
    %13 = arith.mulf %6, %12 : vector<4x240xf32>
    %cst_9 = arith.constant 0.166666672 : f32
    %14 = vector.broadcast %cst_9 : f32 to vector<4x240xf32>
    %15 = arith.mulf %13, %14 : vector<4x240xf32>
    %cst_10 = arith.constant dense<0.000000e+00> : vector<240xf32>
    %16 = vector.multi_reduction <add>, %15, %cst_10 [0] : vector<4x240xf32> to vector<240xf32>
    %17 = vector.shape_cast %16 : vector<240xf32> to vector<1x240xf32>
    %cst_11 = arith.constant 4.000000e+00 : f32
    %18 = vector.broadcast %cst_11 : f32 to vector<1x240xf32>
    %19 = arith.divf %17, %18 : vector<1x240xf32>
    %c0_12 = arith.constant 0 : index
    %c0_13 = arith.constant 0 : index
    %20 = vector.load %arg4[%c0_12, %c0_13] : memref<240x64xf32, #tpu.memory_space<vmem>>, vector<240x64xf32>
    %cst_14 = arith.constant dense<0.000000e+00> : vector<1x64xf32>
    %21 = tpu.matmul %19, %20, %cst_14 {dimension_numbers = #tpu.dot_dimension_numbers<[1], [0], [0], [1], [0, 0, 1, 1], [], []>} : vector<1x240xf32>, vector<240x64xf32>, vector<1x64xf32> -> vector<1x64xf32>
    %c0_15 = arith.constant 0 : index
    %c0_16 = arith.constant 0 : index
    %22 = vector.load %arg5[%c0_15, %c0_16] : memref<1x64xf32, #tpu.memory_space<vmem>>, vector<1x64xf32>
    %23 = arith.addf %21, %22 : vector<1x64xf32>
    %cst_17 = arith.constant 3.000000e+00 : f32
    %24 = vector.broadcast %cst_17 : f32 to vector<1x64xf32>
    %25 = arith.addf %23, %24 : vector<1x64xf32>
    %cst_18 = arith.constant 0.000000e+00 : f32
    %cst_19 = arith.constant 6.000000e+00 : f32
    %26 = vector.broadcast %cst_18 : f32 to vector<1x64xf32>
    %27 = arith.maximumf %26, %25 : vector<1x64xf32>
    %28 = vector.broadcast %cst_19 : f32 to vector<1x64xf32>
    %29 = arith.minimumf %28, %27 : vector<1x64xf32>
    %30 = arith.mulf %23, %29 : vector<1x64xf32>
    %cst_20 = arith.constant 0.166666672 : f32
    %31 = vector.broadcast %cst_20 : f32 to vector<1x64xf32>
    %32 = arith.mulf %30, %31 : vector<1x64xf32>
    %c0_21 = arith.constant 0 : index
    %c0_22 = arith.constant 0 : index
    %33 = vector.load %arg6[%c0_21, %c0_22] : memref<64x10xf32, #tpu.memory_space<vmem>>, vector<64x10xf32>
    %cst_23 = arith.constant dense<0.000000e+00> : vector<1x10xf32>
    %34 = tpu.matmul %32, %33, %cst_23 {dimension_numbers = #tpu.dot_dimension_numbers<[1], [0], [0], [1], [0, 0, 1, 1], [], []>} : vector<1x64xf32>, vector<64x10xf32>, vector<1x10xf32> -> vector<1x10xf32>
    %c0_24 = arith.constant 0 : index
    %c0_25 = arith.constant 0 : index
    %35 = vector.load %arg7[%c0_24, %c0_25] : memref<1x10xf32, #tpu.memory_space<vmem>>, vector<1x10xf32>
    %36 = arith.addf %34, %35 : vector<1x10xf32>
    %c0_26 = arith.constant 0 : index
    %c0_27 = arith.constant 0 : index
    %c0_28 = arith.constant 0 : index
    %37 = vector.load %arg8[%c0_26, %c0_27, %c0_28] : memref<1x1x10xf32, #tpu.memory_space<vmem>>, vector<1x1x10xf32>
    %38 = vector.shape_cast %37 : vector<1x1x10xf32> to vector<1x10xf32>
    %39 = vector.shape_cast %36 : vector<1x10xf32> to vector<1x1x10xf32>
    tpu.vector_store %arg8[%c0_26, %c0_27, %c0_28], %39 {strides = array<i32>} : memref<1x1x10xf32, #tpu.memory_space<vmem>>, vector<1x1x10xf32>,
    return
  }
  func.func @transform_0(%arg0: i32) -> (i32, i32, i32) {
    %c0_i32 = arith.constant 0 : i32
    %c0_i32_0 = arith.constant 0 : i32
    %c0_i32_1 = arith.constant 0 : i32
    return %arg0, %c0_i32, %c0_i32_0 : i32, i32, i32
  }
  func.func @transform_1(%arg0: i32) -> (i32, i32) {
    %c0_i32 = arith.constant 0 : i32
    %c0_i32_0 = arith.constant 0 : i32
    %c0_i32_1 = arith.constant 0 : i32
    return %c0_i32, %c0_i32_0 : i32, i32
  }
  func.func @transform_2(%arg0: i32) -> (i32, i32) {
    %c0_i32 = arith.constant 0 : i32
    %c0_i32_0 = arith.constant 0 : i32
    %c0_i32_1 = arith.constant 0 : i32
    return %c0_i32, %c0_i32_0 : i32, i32
  }
  func.func @transform_3(%arg0: i32) -> (i32, i32) {
    %c0_i32 = arith.constant 0 : i32
    %c0_i32_0 = arith.constant 0 : i32
    %c0_i32_1 = arith.constant 0 : i32
    return %c0_i32, %c0_i32_0 : i32, i32
  }
  func.func @transform_4(%arg0: i32) -> (i32, i32) {
    %c0_i32 = arith.constant 0 : i32
    %c0_i32_0 = arith.constant 0 : i32
    %c0_i32_1 = arith.constant 0 : i32
    return %c0_i32, %c0_i32_0 : i32, i32
  }
  func.func @transform_5(%arg0: i32) -> (i32, i32) {
    %c0_i32 = arith.constant 0 : i32
    %c0_i32_0 = arith.constant 0 : i32
    %c0_i32_1 = arith.constant 0 : i32
    return %c0_i32, %c0_i32_0 : i32, i32
  }
  func.func @transform_6(%arg0: i32) -> (i32, i32) {
    %c0_i32 = arith.constant 0 : i32
    %c0_i32_0 = arith.constant 0 : i32
    %c0_i32_1 = arith.constant 0 : i32
    return %c0_i32, %c0_i32_0 : i32, i32
  }
  func.func @transform_7(%arg0: i32) -> (i32, i32, i32) {
    %c0_i32 = arith.constant 0 : i32
    %c0_i32_0 = arith.constant 0 : i32
    %c0_i32_1 = arith.constant 0 : i32
    return %arg0, %c0_i32, %c0_i32_0 : i32, i32, i32
  }
}

</mosaic_0001>

<bundles_post_ra>
// kernel: _lambda_.15
= control target key start
LH: loop header
LB: loop body
LE: loop exit
PB: predicated region body
PF: predicated region fallthrough
CT: control target
= control target key end

     0   :  { %s488_s12 = smov 0   ;;  %s519_s0 = inlined_call_operand.vmem [shape: bf16[128,16], index: 0, kind: input, shape index: {}]   ;;  %s520_s1 = inlined_call_operand.vmem [shape: bf16[16,16], index: 1, kind: input, shape index: {}]   ;;  %s521_s2 = inlined_call_operand.vmem [shape: f32[1,16], index: 2, kind: input, shape index: {}]   ;;  %s522_s3 = inlined_call_operand.vmem [shape: bf16[128,16], index: 3, kind: output, shape index: {}]  }
   0x1 LB: > { %s393_s13 = sadd.s32 4294967295, %s466_s12   ;;  %p397_p0 = scmp.ge.s32.totalorder %s466_s12, 1  ;;  %s466_s12 = sphi %s488_s12, %s13_s12  }
   0x2   : > { %p138_p1 = scmp.lt.s32.totalorder %s466_s12, 3 }
   0x4   : > { %p139_p2 = pnand %p397_p0, %p138_p1 }
   0x5   : > { %s398_s16 = sshll.u32 (!%p139_p2), %s393_s13, 3 }
   0x6   : > { %142 = sbr.rel (%p139_p2) target bundleno = 220 (0xdc), region = 32  ;;  %p163_p3 = scmp.lt.s32.totalorder (!%p139_p2), %s398_s16, 15 }
   0xb   : > { %v455_v0 = vld [vmem:[%s520_s1] sm:$0xff]   ;;  %s524_s16 = smov (!%p163_p3, %s398_s16), 15  ;;  %vm218_vm0 = vcmask 130048   ;;  %vm328_vm1 = vcmask 125952  }
   0xc   : > { %435 = vmatprep.subr.bf16.mxu0 %v455_v0  ;;  %445 = vmatprep.subr.bf16.mxu1 %v455_v0  ;;  %s399_s17 = sshll.u32 %s524_s16, 2  ;;  %v402_v5 = vld [vmem:[%s521_s2] ss:$0 sm:$0xff] }
   0xd   : > { %436 = vmatpush3.bf16.msra.mxu0 %v455_v0  ;;  %446 = vmatpush3.bf16.msra.mxu1 %v455_v0  ;;  %s166_s20 = scalar_lea.vmem %s519_s0, %s399_s17  ;;  %s172_s25 = scalar_lea.vmem %s522_s3, %s399_s17 }
   0xe   : > { %v456_v1 = vld [vmem:[%s166_s20] sm:$0xff]   ;;  %v457_v2 = vld [vmem:[%s166_s20 + $0x10] sm:$0xff]   ;;  %v458_v3 = vld [vmem:[%s166_s20 + $0x8] sm:$0xff]  }
   0xf   : > { %437 = vmatprep.mubr.msk.bf16.mxu0 %vm218_vm0, %v456_v1  ;;  %441 = vmatprep.mubr.msk.bf16.mxu1 %vm218_vm0, %v457_v2  ;;  %v459_v4 = vld [vmem:[%s166_s20 + $0x18] sm:$0xff]  }
  0x10   : > { %438 = vmatmul.mubr.msk.bf16.vlgmr.msra.gmra.mxu0 %vm218_vm0, %v458_v3  ;;  %442 = vmatmul.mubr.msk.bf16.vlgmr.msra.gmra.mxu1 %vm218_vm0, %v459_v4 }
  0xd0   : > { %v439_v6 = vpop.f32.mrf.mxu0  ;;  %v443_v8 = vpop.f32.mrf.mxu1 }
  0xd1   : > { %v274_v7 = vadd.f32 %v439_v6, %v402_v5  ;;  %v290_v9 = vadd.f32 %v443_v8, %v402_v5 }
  0xd2   : > { %v265_v10 = vpop.f32.mrf.mxu0  ;;  %v281_v13 = vpop.f32.mrf.mxu1 }
  0xd3   : > { %v424_v11 = vpack.c.bf16 %v274_v7, %v274_v7  ;;  %v266_v12 = vadd.f32 %v402_v5, %v265_v10  ;;  %v428_v14 = vpack.c.bf16 %v290_v9, %v290_v9  ;;  %v282_v15 = vadd.f32 %v402_v5, %v281_v13 }
  0xd4   : > { %v440_v16 = vpop.f32.mrf.mxu0  ;;  %v444_v19 = vpop.f32.mrf.mxu1 }
  0xd5   : > { %331 = vst.msk [vmem:[%s172_s25 + $0x8] sm:$0xf] %vm328_vm1, %v424_v11  ;;  %v422_v17 = vpack.c.bf16 %v266_v12, %v266_v12  ;;  %v277_v18 = vadd.f32 %v440_v16, %v402_v5  ;;  %335 = vst.msk [vmem:[%s172_s25 + $0x18] sm:$0xf] %vm328_vm1, %v428_v14  ;;  %v426_v20 = vpack.c.bf16 %v282_v15, %v282_v15 }
  0xd6   : > { %v293_v21 = vadd.f32 %v444_v19, %v402_v5  ;;  %v268_v22 = vpop.f32.mrf.mxu0  ;;  %v284_v25 = vpop.f32.mrf.mxu1 }
  0xd7   : > { %329 = vst.msk [vmem:[%s172_s25] sm:$0xf] %vm328_vm1, %v422_v17  ;;  %v425_v23 = vpack.c.bf16 %v277_v18, %v277_v18  ;;  %v269_v24 = vadd.f32 %v402_v5, %v268_v22  ;;  %333 = vst.msk [vmem:[%s172_s25 + $0x10] sm:$0xf] %vm328_vm1, %v426_v20  ;;  %v285_v27 = vadd.f32 %v402_v5, %v284_v25 }
  0xd8   : > { %v429_v26 = vpack.c.bf16 %v293_v21, %v293_v21 }
  0xd9   : > { %332 = vst.msk [vmem:[%s172_s25 + $0xc] sm:$0xf] %vm328_vm1, %v425_v23  ;;  %v423_v28 = vpack.c.bf16 %v269_v24, %v269_v24  ;;  %v427_v29 = vpack.c.bf16 %v285_v27, %v285_v27 }
  0xda   : > { %336 = vst.msk [vmem:[%s172_s25 + $0x1c] sm:$0xf] %vm328_vm1, %v429_v26 }
  0xdb   : > { %330 = vst.msk [vmem:[%s172_s25 + $0x4] sm:$0xf] %vm328_vm1, %v423_v28  ;;  %334 = vst.msk [vmem:[%s172_s25 + $0x14] sm:$0xf] %vm328_vm1, %v427_v29 }
  0xdc PF: > { %s13_s12 = sadd.s32 1, %s466_s12  }
  0xdd   : > { %p10_p4 = scmp.ge.s32.totalorder %s13_s12, 4  }
  0xdf   :  { %12 = sbr.rel (!%p10_p4) target bundleno = 1 (0x1), region = 62 }

// kernel: _lambda_.13
= control target key start
LH: loop header
LB: loop body
LE: loop exit
PB: predicated region body
PF: predicated region fallthrough
CT: control target
= control target key end

     0   :  { %s1127_s12 = smov 0   ;;  %s1294_s0 = inlined_call_operand.vmem [shape: bf16[512,27], index: 0, kind: input, shape index: {}]   ;;  %s1295_s1 = inlined_call_operand.vmem [shape: bf16[27,16], index: 1, kind: input, shape index: {}]   ;;  %s1296_s2 = inlined_call_operand.vmem [shape: f32[1,16], index: 2, kind: input, shape index: {}]   ;;  %s1297_s3 = inlined_call_operand.vmem [shape: bf16[512,16], index: 3, kind: output, shape index: {}]  }
   0x1 LB: > { %s903_s13 = sadd.s32 4294967295, %s1104_s12   ;;  %p907_p0 = scmp.ge.s32.totalorder %s1104_s12, 1  ;;  %s1104_s12 = sphi %s1127_s12, %s13_s12  }
   0x2   : > { %p138_p1 = scmp.lt.s32.totalorder %s1104_s12, 3 }
   0x4   : > { %p139_p2 = pnand %p907_p0, %p138_p1 }
   0x5   : > { %s908_s16 = sshll.u32 (!%p139_p2), %s903_s13, 5 }
   0x6   : > { %142 = sbr.rel (%p139_p2) target bundleno = 282 (0x11a), region = 32  ;;  %p163_p3 = scmp.lt.s32.totalorder (!%p139_p2), %s908_s16, 63 }
   0xb   : > { %v1080_v0 = vld [vmem:[%s1295_s1 + $0x8] sm:$0x3f]   ;;  %vm358_vm0 = vcmask 1044480   ;;  %vm359_vm1 = vcmask 1045504   ;;  %v1106_v1 = vmov 65535   ;;  %v1081_v5 = vld [vmem:[%s1295_s1] sm:$0xff]  }
   0xc   : > { %v360_v2 = vsel %vm358_vm0, 4294967295, %v1106_v1  ;;  %s1299_s16 = smov (!%p163_p3, %s908_s16), 63  ;;  %vm309_vm2 = vcmask 220160   ;;  %v1186_v22 = vld [vmem:[%s1296_s2] ss:$0 sm:$0xff]  ;;  %vm814_vm3 = vcmask 125952  }
   0xd   : > { %v361_v3 = vsel %vm359_vm1, %v360_v2, 0  ;;  %s909_s19 = sshll.u32 %s1299_s16, 2 }
   0xe   : > { %v363_v4 = vand.u32 %v1080_v0, %v361_v3  ;;  %s1149_s22 = scalar_lea.vmem %s1294_s0, %s909_s19  ;;  %s1201_s27 = scalar_lea.vmem %s1297_s3, %s909_s19 }
   0xf   : > { %v1082_v6 = vld [vmem:[%s1149_s22] sm:$0xff]   ;;  %v1084_v8 = vld [vmem:[%s1149_s22 + $0x8] sm:$0xff]   ;;  %v1086_v10 = vld [vmem:[%s1149_s22 + $0x10] sm:$0xff]  }
  0x10   : > { %1031 = vmatprep.subr.bf16.mxu0 %v363_v4  ;;  %1067 = vmatprep.subr.bf16.mxu1 %v363_v4  ;;  %v1083_v7 = vld [vmem:[%s1149_s22 + $0x40] sm:$0xff]   ;;  %v1085_v9 = vld [vmem:[%s1149_s22 + $0x48] sm:$0xff]   ;;  %v1087_v11 = vld [vmem:[%s1149_s22 + $0x50] sm:$0xff]  }
  0x11   : > { %1032 = vmatpush3.bf16.msra.mxu0 %v363_v4  ;;  %1069 = vmatpush3.bf16.msra.mxu1 %v363_v4  ;;  %v1088_v12 = vld [vmem:[%s1149_s22 + $0x18] sm:$0xff]   ;;  %v1090_v14 = vld [vmem:[%s1149_s22 + $0x20] sm:$0xff]   ;;  %v1092_v16 = vld [vmem:[%s1149_s22 + $0x28] sm:$0xff]  }
  0x12   : > { %1033 = vmatprep.subr.bf16.mxu0 %v1081_v5  ;;  %1068 = vmatprep.subr.bf16.mxu1 %v1081_v5  ;;  %v1089_v13 = vld [vmem:[%s1149_s22 + $0x58] sm:$0xff]   ;;  %v1091_v15 = vld [vmem:[%s1149_s22 + $0x60] sm:$0xff]   ;;  %v1093_v17 = vld [vmem:[%s1149_s22 + $0x68] sm:$0xff]  }
  0x13   : > { %1035 = vmatprep.mubr.msk.bf16.mxu0 %vm309_vm2, %v1082_v6  ;;  %1051 = vmatprep.mubr.msk.bf16.mxu1 %vm309_vm2, %v1083_v7  ;;  %v1094_v18 = vld [vmem:[%s1149_s22 + $0x30] sm:$0xff]   ;;  %v1096_v20 = vld [vmem:[%s1149_s22 + $0x38] sm:$0xff]  }
  0x14   : > { %v1095_v19 = vld [vmem:[%s1149_s22 + $0x70] sm:$0xff]   ;;  %v1097_v21 = vld [vmem:[%s1149_s22 + $0x78] sm:$0xff]  }
  0x15   : > { %1034 = vmatpush3.bf16.msra.mxu0 %v1081_v5  ;;  %1070 = vmatpush3.bf16.msra.mxu1 %v1081_v5 }
  0x18   : > { %1036 = vmatmul.mubr.msk.bf16.vlgmr.msra.gmra.mxu0 %vm309_vm2, %v1084_v8  ;;  %1052 = vmatmul.mubr.msk.bf16.vlgmr.msra.gmra.mxu1 %vm309_vm2, %v1085_v9 }
  0x19   : > { %1039 = vmatprep.mubr.msk.bf16.mxu0 %vm309_vm2, %v1086_v10  ;;  %1055 = vmatprep.mubr.msk.bf16.mxu1 %vm309_vm2, %v1087_v11 }
  0x20   : > { %1040 = vmatmul.mubr.msk.bf16.gmra.mxu0 %vm309_vm2, %v1088_v12  ;;  %1056 = vmatmul.mubr.msk.bf16.gmra.mxu1 %vm309_vm2, %v1089_v13 }
  0x21   : > { %1043 = vmatprep.mubr.msk.bf16.mxu0 %vm309_vm2, %v1090_v14  ;;  %1059 = vmatprep.mubr.msk.bf16.mxu1 %vm309_vm2, %v1091_v15 }
  0x28   : > { %1044 = vmatmul.mubr.msk.bf16.gmra.mxu0 %vm309_vm2, %v1092_v16  ;;  %1060 = vmatmul.mubr.msk.bf16.gmra.mxu1 %vm309_vm2, %v1093_v17 }
  0x29   : > { %1047 = vmatprep.mubr.msk.bf16.mxu0 %vm309_vm2, %v1094_v18  ;;  %1063 = vmatprep.mubr.msk.bf16.mxu1 %vm309_vm2, %v1095_v19 }
  0x30   : > { %1048 = vmatmul.mubr.msk.bf16.gmra.mxu0 %vm309_vm2, %v1096_v20  ;;  %1064 = vmatmul.mubr.msk.bf16.gmra.mxu1 %vm309_vm2, %v1097_v21 }
  0xd8   : > { %v1037_v23 = vpop.f32.mrf.mxu0  ;;  %v1053_v24 = vpop.f32.mrf.mxu1 }
  0xd9   : > { %v408_v25 = vadd.f32 %v1037_v23, %v1186_v22  ;;  %v472_v26 = vadd.f32 %v1053_v24, %v1186_v22 }
  0xda   : > { %v399_v27 = vpop.f32.mrf.mxu0  ;;  %v463_v28 = vpop.f32.mrf.mxu1 }
  0xdb   : > { %v528_v29 = vadd.f32 3.0, %v408_v25  ;;  %v544_v30 = vadd.f32 3.0, %v472_v26  ;;  %v400_v31 = vadd.f32 %v1186_v22, %v399_v27  ;;  %v464_v32 = vadd.f32 %v1186_v22, %v463_v28 }
  0xdc   : > { %v1038_v33 = vpop.f32.mrf.mxu0  ;;  %v1054_v34 = vpop.f32.mrf.mxu1 }
  0xdd   : > { %v560_v35 = vmax.f32 %v528_v29, 0.0  ;;  %v576_v36 = vmax.f32 %v544_v30, 0.0  ;;  %v526_v37 = vadd.f32 3.0, %v400_v31  ;;  %v542_v38 = vadd.f32 3.0, %v464_v32 }
  0xde   : > { %v411_v39 = vadd.f32 %v1038_v33, %v1186_v22  ;;  %v475_v40 = vadd.f32 %v1054_v34, %v1186_v22  ;;  %v402_v41 = vpop.f32.mrf.mxu0  ;;  %v466_v42 = vpop.f32.mrf.mxu1 }
  0xdf   : > { %v592_v43 = vmin.f32 %v560_v35, 6.0  ;;  %v608_v44 = vmin.f32 %v576_v36, 6.0  ;;  %v558_v45 = vmax.f32 %v526_v37, 0.0  ;;  %v574_v46 = vmax.f32 %v542_v38, 0.0 }
  0xe0   : > { %v529_v47 = vadd.f32 3.0, %v411_v39  ;;  %v545_v48 = vadd.f32 3.0, %v475_v40  ;;  %v403_v49 = vadd.f32 %v1186_v22, %v402_v41  ;;  %v467_v50 = vadd.f32 %v1186_v22, %v466_v42  ;;  %v1041_v51 = vpop.f32.mrf.mxu0  ;;  %v1057_v52 = vpop.f32.mrf.mxu1 }
  0xe1   : > { %v624_v53 = vmul.f32 %v592_v43, %v408_v25  ;;  %v640_v54 = vmul.f32 %v608_v44, %v472_v26  ;;  %v590_v55 = vmin.f32 %v558_v45, 6.0  ;;  %v606_v56 = vmin.f32 %v574_v46, 6.0 }
  0xe2   : > { %v561_v57 = vmax.f32 %v529_v47, 0.0  ;;  %v577_v58 = vmax.f32 %v545_v48, 0.0  ;;  %v527_v59 = vadd.f32 3.0, %v403_v49  ;;  %v543_v60 = vadd.f32 3.0, %v467_v50  ;;  %v415_v61 = vpop.f32.mrf.mxu0  ;;  %v479_v62 = vpop.f32.mrf.mxu1 }
  0xe3   : > { %v656_v63 = vmul.f32 0.16666667, %v624_v53  ;;  %v672_v0 = vmul.f32 0.16666667, %v640_v54  ;;  %v622_v1 = vmul.f32 %v590_v55, %v400_v31  ;;  %v638_v2 = vmul.f32 %v606_v56, %v464_v32 }
  0xe4   : > { %v593_v3 = vmin.f32 %v561_v57, 6.0  ;;  %v609_v4 = vmin.f32 %v577_v58, 6.0  ;;  %v559_v5 = vmax.f32 %v527_v59, 0.0  ;;  %v575_v6 = vmax.f32 %v543_v60, 0.0  ;;  %v1042_v7 = vpop.f32.mrf.mxu0  ;;  %v1058_v8 = vpop.f32.mrf.mxu1 }
  0xe5   : > { %v983_v9 = vpack.c.bf16 %v656_v63, %v656_v63  ;;  %v999_v10 = vpack.c.bf16 %v672_v0, %v672_v0  ;;  %v654_v11 = vmul.f32 0.16666667, %v622_v1  ;;  %v670_v12 = vmul.f32 0.16666667, %v638_v2 }
  0xe6   : > { %v625_v13 = vmul.f32 %v593_v3, %v411_v39  ;;  %v641_v14 = vmul.f32 %v609_v4, %v475_v40  ;;  %v591_v15 = vmin.f32 %v559_v5, 6.0  ;;  %v607_v16 = vmin.f32 %v575_v6, 6.0  ;;  %v418_v21 = vpop.f32.mrf.mxu0  ;;  %v482_v23 = vpop.f32.mrf.mxu1 }
  0xe7   : > { %817 = vst.msk [vmem:[%s1201_s27 + $0x8] sm:$0xf] %vm814_vm3, %v983_v9  ;;  %833 = vst.msk [vmem:[%s1201_s27 + $0x48] sm:$0xf] %vm814_vm3, %v999_v10  ;;  %v981_v17 = vpack.c.bf16 %v654_v11, %v654_v11  ;;  %v997_v18 = vpack.c.bf16 %v670_v12, %v670_v12  ;;  %v424_v19 = vadd.f32 %v1041_v51, %v1186_v22 }
  0xe8   : > { %v488_v20 = vadd.f32 %v1057_v52, %v1186_v22  ;;  %v657_v24 = vmul.f32 0.16666667, %v625_v13  ;;  %v673_v25 = vmul.f32 0.16666667, %v641_v14  ;;  %v623_v26 = vmul.f32 %v591_v15, %v403_v49  ;;  %v1045_v40 = vpop.f32.mrf.mxu0  ;;  %v1061_v41 = vpop.f32.mrf.mxu1 }
  0xe9   : > { %v639_v27 = vmul.f32 %v607_v16, %v467_v50  ;;  %815 = vst.msk [vmem:[%s1201_s27] sm:$0xf] %vm814_vm3, %v981_v17  ;;  %831 = vst.msk [vmem:[%s1201_s27 + $0x40] sm:$0xf] %vm814_vm3, %v997_v18  ;;  %v532_v28 = vadd.f32 3.0, %v424_v19  ;;  %v416_v30 = vadd.f32 %v1186_v22, %v415_v61  ;;  %v480_v31 = vadd.f32 %v1186_v22, %v479_v62 }
  0xea   : > { %v548_v29 = vadd.f32 3.0, %v488_v20  ;;  %v984_v32 = vpack.c.bf16 %v657_v24, %v657_v24  ;;  %v1000_v33 = vpack.c.bf16 %v673_v25, %v673_v25  ;;  %v655_v34 = vmul.f32 0.16666667, %v623_v26  ;;  %v431_v58 = vpop.f32.mrf.mxu0  ;;  %v495_v59 = vpop.f32.mrf.mxu1 }
  0xeb   : > { %v671_v35 = vmul.f32 0.16666667, %v639_v27  ;;  %v564_v36 = vmax.f32 %v532_v28, 0.0  ;;  %v530_v38 = vadd.f32 3.0, %v416_v30  ;;  %v546_v39 = vadd.f32 3.0, %v480_v31 }
  0xec   : > { %v580_v37 = vmax.f32 %v548_v29, 0.0  ;;  %818 = vst.msk [vmem:[%s1201_s27 + $0xc] sm:$0xf] %vm814_vm3, %v984_v32  ;;  %834 = vst.msk [vmem:[%s1201_s27 + $0x4c] sm:$0xf] %vm814_vm3, %v1000_v33  ;;  %v982_v42 = vpack.c.bf16 %v655_v34, %v655_v34  ;;  %v427_v44 = vadd.f32 %v1042_v7, %v1186_v22  ;;  %v491_v45 = vadd.f32 %v1058_v8, %v1186_v22  ;;  %v1046_v12 = vpop.f32.mrf.mxu0  ;;  %v1062_v13 = vpop.f32.mrf.mxu1 }
  0xed   : > { %v998_v43 = vpack.c.bf16 %v671_v35, %v671_v35  ;;  %v596_v46 = vmin.f32 %v564_v36, 6.0  ;;  %v562_v48 = vmax.f32 %v530_v38, 0.0  ;;  %v578_v49 = vmax.f32 %v546_v39, 0.0 }
  0xee   : > { %v612_v47 = vmin.f32 %v580_v37, 6.0  ;;  %816 = vst.msk [vmem:[%s1201_s27 + $0x4] sm:$0xf] %vm814_vm3, %v982_v42  ;;  %v533_v50 = vadd.f32 3.0, %v427_v44  ;;  %v549_v51 = vadd.f32 3.0, %v491_v45  ;;  %v419_v52 = vadd.f32 %v1186_v22, %v418_v21  ;;  %v498_v32 = vpop.f32.mrf.mxu1 }
  0xef   : > { %832 = vst.msk [vmem:[%s1201_s27 + $0x44] sm:$0xf] %vm814_vm3, %v998_v43  ;;  %v483_v53 = vadd.f32 %v1186_v22, %v482_v23  ;;  %v628_v54 = vmul.f32 %v596_v46, %v424_v19  ;;  %v594_v56 = vmin.f32 %v562_v48, 6.0  ;;  %v610_v57 = vmin.f32 %v578_v49, 6.0 }
  0xf0   : > { %v644_v55 = vmul.f32 %v612_v47, %v488_v20  ;;  %v565_v60 = vmax.f32 %v533_v50, 0.0  ;;  %v581_v61 = vmax.f32 %v549_v51, 0.0  ;;  %v531_v62 = vadd.f32 3.0, %v419_v52  ;;  %v1065_v50 = vpop.f32.mrf.mxu1 }
  0xf1   : > { %v547_v63 = vadd.f32 3.0, %v483_v53  ;;  %v660_v0 = vmul.f32 0.16666667, %v628_v54  ;;  %v626_v2 = vmul.f32 %v594_v56, %v416_v30  ;;  %v642_v3 = vmul.f32 %v610_v57, %v480_v31  ;;  %v434_v31 = vpop.f32.mrf.mxu0 }
  0xf2   : > { %v676_v1 = vmul.f32 0.16666667, %v644_v55  ;;  %v597_v4 = vmin.f32 %v565_v60, 6.0  ;;  %v613_v5 = vmin.f32 %v581_v61, 6.0  ;;  %v563_v6 = vmax.f32 %v531_v62, 0.0 }
  0xf3   : > { %v579_v7 = vmax.f32 %v547_v63, 0.0  ;;  %v987_v8 = vpack.c.bf16 %v660_v0, %v660_v0  ;;  %v658_v10 = vmul.f32 0.16666667, %v626_v2  ;;  %v674_v11 = vmul.f32 0.16666667, %v642_v3  ;;  %v1049_v49 = vpop.f32.mrf.mxu0 }
  0xf4   : > { %v1003_v9 = vpack.c.bf16 %v676_v1, %v676_v1  ;;  %v629_v14 = vmul.f32 %v597_v4, %v427_v44  ;;  %v645_v15 = vmul.f32 %v613_v5, %v491_v45  ;;  %v595_v16 = vmin.f32 %v563_v6, 6.0  ;;  %v511_v4 = vpop.f32.mrf.mxu1 }
  0xf5   : > { %v611_v17 = vmin.f32 %v579_v7, 6.0  ;;  %821 = vst.msk [vmem:[%s1201_s27 + $0x18] sm:$0xf] %vm814_vm3, %v987_v8  ;;  %v985_v18 = vpack.c.bf16 %v658_v10, %v658_v10  ;;  %v1001_v19 = vpack.c.bf16 %v674_v11, %v674_v11  ;;  %v440_v20 = vadd.f32 %v1045_v40, %v1186_v22  ;;  %v447_v3 = vpop.f32.mrf.mxu0 }
  0xf6   : > { %837 = vst.msk [vmem:[%s1201_s27 + $0x58] sm:$0xf] %vm814_vm3, %v1003_v9  ;;  %v504_v21 = vadd.f32 %v1061_v41, %v1186_v22  ;;  %v661_v23 = vmul.f32 0.16666667, %v629_v14  ;;  %v677_v24 = vmul.f32 0.16666667, %v645_v15  ;;  %v627_v25 = vmul.f32 %v595_v16, %v419_v52 }
  0xf7   : > { %v643_v26 = vmul.f32 %v611_v17, %v483_v53  ;;  %819 = vst.msk [vmem:[%s1201_s27 + $0x10] sm:$0xf] %vm814_vm3, %v985_v18  ;;  %835 = vst.msk [vmem:[%s1201_s27 + $0x50] sm:$0xf] %vm814_vm3, %v1001_v19  ;;  %v536_v27 = vadd.f32 3.0, %v440_v20  ;;  %v432_v29 = vadd.f32 %v1186_v22, %v431_v58  ;;  %v496_v30 = vadd.f32 %v1186_v22, %v495_v59 }
  0xf8   : > { %v552_v28 = vadd.f32 3.0, %v504_v21  ;;  %v988_v33 = vpack.c.bf16 %v661_v23, %v661_v23  ;;  %v1004_v34 = vpack.c.bf16 %v677_v24, %v677_v24  ;;  %v659_v35 = vmul.f32 0.16666667, %v627_v25  ;;  %v1066_v23 = vpop.f32.mrf.mxu1 }
  0xf9   : > { %v675_v36 = vmul.f32 0.16666667, %v643_v26  ;;  %v568_v37 = vmax.f32 %v536_v27, 0.0  ;;  %v534_v39 = vadd.f32 3.0, %v432_v29  ;;  %v550_v40 = vadd.f32 3.0, %v496_v30 }
  0xfa   : > { %v584_v38 = vmax.f32 %v552_v28, 0.0  ;;  %822 = vst.msk [vmem:[%s1201_s27 + $0x1c] sm:$0xf] %vm814_vm3, %v988_v33  ;;  %838 = vst.msk [vmem:[%s1201_s27 + $0x5c] sm:$0xf] %vm814_vm3, %v1004_v34  ;;  %v986_v41 = vpack.c.bf16 %v659_v35, %v659_v35  ;;  %v443_v43 = vadd.f32 %v1046_v12, %v1186_v22  ;;  %v507_v44 = vadd.f32 %v1062_v13, %v1186_v22 }
  0xfb   : > { %v1002_v42 = vpack.c.bf16 %v675_v36, %v675_v36  ;;  %v600_v45 = vmin.f32 %v568_v37, 6.0  ;;  %v566_v47 = vmax.f32 %v534_v39, 0.0  ;;  %v582_v48 = vmax.f32 %v550_v40, 0.0 }
  0xfc   : > { %v616_v46 = vmin.f32 %v584_v38, 6.0  ;;  %820 = vst.msk [vmem:[%s1201_s27 + $0x14] sm:$0xf] %vm814_vm3, %v986_v41  ;;  %v537_v51 = vadd.f32 3.0, %v443_v43  ;;  %v553_v52 = vadd.f32 3.0, %v507_v44  ;;  %v435_v53 = vadd.f32 %v1186_v22, %v434_v31  ;;  %v514_v41 = vpop.f32.mrf.mxu1 }
  0xfd   : > { %836 = vst.msk [vmem:[%s1201_s27 + $0x54] sm:$0xf] %vm814_vm3, %v1002_v42  ;;  %v499_v54 = vadd.f32 %v1186_v22, %v498_v32  ;;  %v632_v55 = vmul.f32 %v600_v45, %v440_v20  ;;  %v598_v57 = vmin.f32 %v566_v47, 6.0  ;;  %v614_v58 = vmin.f32 %v582_v48, 6.0 }
  0xfe   : > { %v648_v56 = vmul.f32 %v616_v46, %v504_v21  ;;  %v569_v59 = vmax.f32 %v537_v51, 0.0  ;;  %v585_v60 = vmax.f32 %v553_v52, 0.0  ;;  %v535_v61 = vadd.f32 3.0, %v435_v53  ;;  %v1050_v21 = vpop.f32.mrf.mxu0 }
  0xff   : > { %v551_v62 = vadd.f32 3.0, %v499_v54  ;;  %v664_v63 = vmul.f32 0.16666667, %v632_v55  ;;  %v630_v1 = vmul.f32 %v598_v57, %v432_v29  ;;  %v646_v2 = vmul.f32 %v614_v58, %v496_v30 }
 0x100   : > { %v680_v0 = vmul.f32 0.16666667, %v648_v56  ;;  %v601_v5 = vmin.f32 %v569_v59, 6.0  ;;  %v617_v6 = vmin.f32 %v585_v60, 6.0  ;;  %v567_v7 = vmax.f32 %v535_v61, 0.0  ;;  %v450_v40 = vpop.f32.mrf.mxu0 }
 0x101   : > { %v583_v8 = vmax.f32 %v551_v62, 0.0  ;;  %v991_v9 = vpack.c.bf16 %v664_v63, %v664_v63  ;;  %v662_v11 = vmul.f32 0.16666667, %v630_v1  ;;  %v678_v12 = vmul.f32 0.16666667, %v646_v2 }
 0x102   : > { %v1007_v10 = vpack.c.bf16 %v680_v0, %v680_v0  ;;  %v633_v13 = vmul.f32 %v601_v5, %v443_v43  ;;  %v649_v14 = vmul.f32 %v617_v6, %v507_v44  ;;  %v599_v15 = vmin.f32 %v567_v7, 6.0 }
 0x103   : > { %v615_v16 = vmin.f32 %v583_v8, 6.0  ;;  %825 = vst.msk [vmem:[%s1201_s27 + $0x28] sm:$0xf] %vm814_vm3, %v991_v9  ;;  %v989_v17 = vpack.c.bf16 %v662_v11, %v662_v11  ;;  %v1005_v18 = vpack.c.bf16 %v678_v12, %v678_v12  ;;  %v456_v19 = vadd.f32 %v1049_v49, %v1186_v22 }
 0x104   : > { %841 = vst.msk [vmem:[%s1201_s27 + $0x68] sm:$0xf] %vm814_vm3, %v1007_v10  ;;  %v520_v20 = vadd.f32 %v1065_v50, %v1186_v22  ;;  %v665_v24 = vmul.f32 0.16666667, %v633_v13  ;;  %v681_v25 = vmul.f32 0.16666667, %v649_v14  ;;  %v631_v26 = vmul.f32 %v599_v15, %v435_v53 }
 0x105   : > { %v647_v27 = vmul.f32 %v615_v16, %v499_v54  ;;  %823 = vst.msk [vmem:[%s1201_s27 + $0x20] sm:$0xf] %vm814_vm3, %v989_v17  ;;  %839 = vst.msk [vmem:[%s1201_s27 + $0x60] sm:$0xf] %vm814_vm3, %v1005_v18  ;;  %v540_v28 = vadd.f32 3.0, %v456_v19  ;;  %v448_v30 = vadd.f32 %v1186_v22, %v447_v3  ;;  %v512_v31 = vadd.f32 %v1186_v22, %v511_v4 }
 0x106   : > { %v556_v29 = vadd.f32 3.0, %v520_v20  ;;  %v992_v32 = vpack.c.bf16 %v665_v24, %v665_v24  ;;  %v1008_v33 = vpack.c.bf16 %v681_v25, %v681_v25  ;;  %v663_v34 = vmul.f32 0.16666667, %v631_v26 }
 0x107   : > { %v679_v35 = vmul.f32 0.16666667, %v647_v27  ;;  %v572_v36 = vmax.f32 %v540_v28, 0.0  ;;  %v538_v38 = vadd.f32 3.0, %v448_v30  ;;  %v554_v39 = vadd.f32 3.0, %v512_v31 }
 0x108   : > { %v588_v37 = vmax.f32 %v556_v29, 0.0  ;;  %826 = vst.msk [vmem:[%s1201_s27 + $0x2c] sm:$0xf] %vm814_vm3, %v992_v32  ;;  %842 = vst.msk [vmem:[%s1201_s27 + $0x6c] sm:$0xf] %vm814_vm3, %v1008_v33  ;;  %v990_v42 = vpack.c.bf16 %v663_v34, %v663_v34  ;;  %v459_v44 = vadd.f32 %v1050_v21, %v1186_v22  ;;  %v523_v45 = vadd.f32 %v1066_v23, %v1186_v22 }
 0x109   : > { %v1006_v43 = vpack.c.bf16 %v679_v35, %v679_v35  ;;  %v604_v46 = vmin.f32 %v572_v36, 6.0  ;;  %v570_v48 = vmax.f32 %v538_v38, 0.0  ;;  %v586_v49 = vmax.f32 %v554_v39, 0.0 }
 0x10a   : > { %v620_v47 = vmin.f32 %v588_v37, 6.0  ;;  %824 = vst.msk [vmem:[%s1201_s27 + $0x24] sm:$0xf] %vm814_vm3, %v990_v42  ;;  %v541_v50 = vadd.f32 3.0, %v459_v44  ;;  %v557_v51 = vadd.f32 3.0, %v523_v45  ;;  %v451_v52 = vadd.f32 %v1186_v22, %v450_v40 }
 0x10b   : > { %840 = vst.msk [vmem:[%s1201_s27 + $0x64] sm:$0xf] %vm814_vm3, %v1006_v43  ;;  %v515_v53 = vadd.f32 %v1186_v22, %v514_v41  ;;  %v636_v54 = vmul.f32 %v604_v46, %v456_v19  ;;  %v602_v56 = vmin.f32 %v570_v48, 6.0  ;;  %v618_v57 = vmin.f32 %v586_v49, 6.0 }
 0x10c   : > { %v652_v55 = vmul.f32 %v620_v47, %v520_v20  ;;  %v573_v58 = vmax.f32 %v541_v50, 0.0  ;;  %v589_v59 = vmax.f32 %v557_v51, 0.0  ;;  %v539_v60 = vadd.f32 3.0, %v451_v52 }
 0x10d   : > { %v555_v61 = vadd.f32 3.0, %v515_v53  ;;  %v668_v62 = vmul.f32 0.16666667, %v636_v54  ;;  %v634_v0 = vmul.f32 %v602_v56, %v448_v30  ;;  %v650_v1 = vmul.f32 %v618_v57, %v512_v31 }
 0x10e   : > { %v684_v63 = vmul.f32 0.16666667, %v652_v55  ;;  %v605_v2 = vmin.f32 %v573_v58, 6.0  ;;  %v621_v3 = vmin.f32 %v589_v59, 6.0  ;;  %v571_v4 = vmax.f32 %v539_v60, 0.0 }
 0x10f   : > { %v587_v5 = vmax.f32 %v555_v61, 0.0  ;;  %v995_v6 = vpack.c.bf16 %v668_v62, %v668_v62  ;;  %v666_v7 = vmul.f32 0.16666667, %v634_v0  ;;  %v682_v8 = vmul.f32 0.16666667, %v650_v1 }
 0x110   : > { %v1011_v22 = vpack.c.bf16 %v684_v63, %v684_v63  ;;  %v637_v9 = vmul.f32 %v605_v2, %v459_v44  ;;  %v653_v10 = vmul.f32 %v621_v3, %v523_v45  ;;  %v603_v11 = vmin.f32 %v571_v4, 6.0 }
 0x111   : > { %v619_v12 = vmin.f32 %v587_v5, 6.0  ;;  %829 = vst.msk [vmem:[%s1201_s27 + $0x38] sm:$0xf] %vm814_vm3, %v995_v6  ;;  %v993_v13 = vpack.c.bf16 %v666_v7, %v666_v7  ;;  %v1009_v14 = vpack.c.bf16 %v682_v8, %v682_v8 }
 0x112   : > { %845 = vst.msk [vmem:[%s1201_s27 + $0x78] sm:$0xf] %vm814_vm3, %v1011_v22  ;;  %v669_v15 = vmul.f32 0.16666667, %v637_v9  ;;  %v685_v16 = vmul.f32 0.16666667, %v653_v10  ;;  %v635_v17 = vmul.f32 %v603_v11, %v451_v52 }
 0x113   : > { %v651_v18 = vmul.f32 %v619_v12, %v515_v53  ;;  %827 = vst.msk [vmem:[%s1201_s27 + $0x30] sm:$0xf] %vm814_vm3, %v993_v13  ;;  %843 = vst.msk [vmem:[%s1201_s27 + $0x70] sm:$0xf] %vm814_vm3, %v1009_v14 }
 0x114   : > { %v996_v19 = vpack.c.bf16 %v669_v15, %v669_v15  ;;  %v1012_v20 = vpack.c.bf16 %v685_v16, %v685_v16  ;;  %v667_v21 = vmul.f32 0.16666667, %v635_v17 }
 0x115   : > { %v683_v23 = vmul.f32 0.16666667, %v651_v18 }
 0x116   : > { %830 = vst.msk [vmem:[%s1201_s27 + $0x3c] sm:$0xf] %vm814_vm3, %v996_v19  ;;  %846 = vst.msk [vmem:[%s1201_s27 + $0x7c] sm:$0xf] %vm814_vm3, %v1012_v20  ;;  %v994_v24 = vpack.c.bf16 %v667_v21, %v667_v21 }
 0x117   : > { %v1010_v25 = vpack.c.bf16 %v683_v23, %v683_v23 }
 0x118   : > { %828 = vst.msk [vmem:[%s1201_s27 + $0x34] sm:$0xf] %vm814_vm3, %v994_v24 }
 0x119   : > { %844 = vst.msk [vmem:[%s1201_s27 + $0x74] sm:$0xf] %vm814_vm3, %v1010_v25 }
 0x11a PF: > { %s13_s12 = sadd.s32 1, %s1104_s12  }
 0x11b   : > { %p10_p4 = scmp.ge.s32.totalorder %s13_s12, 4  }
 0x11d   :  { %12 = sbr.rel (!%p10_p4) target bundleno = 1 (0x1), region = 62 }

// kernel: _lambda_.14
= control target key start
LH: loop header
LB: loop body
LE: loop exit
PB: predicated region body
PF: predicated region fallthrough
CT: control target
= control target key end

     0   :  { %s1635_s24 = smov 0   ;;  %s1637_s25 = smov 0   ;;  %s2152_s0 = inlined_call_operand.vmem [shape: bf16[4,2,9,9,16], index: 0, kind: input, shape index: {}]   ;;  %s2153_s1 = inlined_call_operand.vmem [shape: f32[3,3,16], index: 1, kind: input, shape index: {}]   ;;  %s2154_s2 = inlined_call_operand.vmem [shape: f32[1,16], index: 2, kind: input, shape index: {}]   ;;  %s2155_s3 = inlined_call_operand.vmem [shape: f32[16,64], index: 3, kind: input, shape index: {}]   ;;  %s2156_s4 = inlined_call_operand.vmem [shape: f32[1,64], index: 4, kind: input, shape index: {}]   ;;  %s2157_s5 = inlined_call_operand.vmem [shape: f32[64,16], index: 5, kind: input, shape index: {}]   ;;  %s2158_s6 = inlined_call_operand.vmem [shape: f32[1,16], index: 6, kind: input, shape index: {}]   ;;  %s2159_s7 = inlined_call_operand.vmem [shape: bf16[2,8,8,16], index: 7, kind: output, shape index: {}]  }
   0x1   :  { %s1639_s26 = smov 0  }
   0x2 LB: > { %s1417_s27 = sadd.s32 4294967295, %s1591_s26   ;;  %s1652_s28 = sadd.s32 1, %s1591_s26   ;;  %s1591_s26 = sphi %s1639_s26, %s2162_s26   ;;  %s1587_s25 = sphi %s1637_s25, %s2161_s25   ;;  %s1583_s24 = sphi %s1635_s24, %s2160_s24  }
   0x3   : > { %s21_s29 = ssub.s32 %s1591_s26, %s1652_s28  ;;  %s24_s30 = sadd.s32 1, %s1587_s25 }
   0x4   : > { %p22_p0 = scmp.eq.s32.totalorder %s21_s29, 0  ;;  %p31_p1 = scmp.ne.s32.totalorder %s1587_s25, %s1583_s24 }
   0x5   : > { %p32_p2 = scmp.eq.s32.totalorder %s1591_s26, 0  ;;  %p1420_p4 = scmp.ge.s32.totalorder %s1591_s26, 2 }
   0x6   : > { %s1661_s8 = scalar_select %p22_p0, %s1587_s25, %s24_s30  }
   0x7   : > { %p33_p3 = por %p32_p2, %p31_p1  ;;  %227 = sbr.rel (%p1420_p4) target bundleno = 35 (0x23), region = 40 }
   0xc   : > { %230 = sbr.rel (!%p33_p3) target bundleno = 35 (0x23), region = 44  ;;  %s232_s9 = sand.u32 (%p33_p3), 1, %s1587_s25  }
   0xd   : > { %s1541_s10 = smul.u32 (%p33_p3), 72, %s1591_s26 }
   0xe   : > { %s1540_s11 = smul.u32 (%p33_p3), 288, %s232_s9 }
   0xf   : > { %s1669_s14 = scalar_lea.vmem (%p33_p3), %s2152_s0, %s1541_s10 }
  0x10   : > { %v254_v0 = vld [vmem:[%s1669_s14] sm:$0xff] (%p33_p3)   ;;  %v258_v1 = vld [vmem:[%s1669_s14 + $0x8] sm:$0xff] (%p33_p3)   ;;  %v262_v2 = vld [vmem:[%s1669_s14 + $0x10] sm:$0xff] (%p33_p3)   ;;  %s1674_s15 = scalar_lea.vmem (%p33_p3), [#allocation2], %s1540_s11 }
  0x11   : > { %255 = vst [vmem:[%s1674_s15] sm:$0xff] %v254_v0   ;;  %259 = vst [vmem:[%s1674_s15 + $0x8] sm:$0xff] %v258_v1   ;;  %v266_v3 = vld [vmem:[%s1669_s14 + $0x18] sm:$0xff]   ;;  %v270_v4 = vld [vmem:[%s1669_s14 + $0x20] sm:$0xff]  }
  0x12   : > { %263 = vst [vmem:[%s1674_s15 + $0x10] sm:$0xff] %v262_v2   ;;  %v274_v5 = vld [vmem:[%s1669_s14 + $0x28] sm:$0xff]   ;;  %267 = vst [vmem:[%s1674_s15 + $0x18] sm:$0xff] %v266_v3   ;;  %v278_v6 = vld [vmem:[%s1669_s14 + $0x30] sm:$0xff]  }
  0x13   : > { %271 = vst [vmem:[%s1674_s15 + $0x20] sm:$0xff] %v270_v4   ;;  %275 = vst [vmem:[%s1674_s15 + $0x28] sm:$0xff] %v274_v5   ;;  %v282_v7 = vld [vmem:[%s1669_s14 + $0x38] sm:$0xff]   ;;  %v286_v8 = vld [vmem:[%s1669_s14 + $0x40] sm:$0xff]  }
  0x14   : > { %279 = vst [vmem:[%s1674_s15 + $0x30] sm:$0xff] %v278_v6   ;;  %283 = vst [vmem:[%s1674_s15 + $0x38] sm:$0xff] %v282_v7   ;;  %v290_v9 = vld [vmem:[%s1669_s14 + $0x90] sm:$0xff]   ;;  %v294_v10 = vld [vmem:[%s1669_s14 + $0x98] sm:$0xff]  }
  0x15   : > { %287 = vst [vmem:[%s1674_s15 + $0x40] sm:$0xff] %v286_v8   ;;  %v298_v11 = vld [vmem:[%s1669_s14 + $0xa0] sm:$0xff]   ;;  %291 = vst [vmem:[%s1674_s15 + $0x48] sm:$0xff] %v290_v9   ;;  %v302_v12 = vld [vmem:[%s1669_s14 + $0xa8] sm:$0xff]  }
  0x16   : > { %295 = vst [vmem:[%s1674_s15 + $0x50] sm:$0xff] %v294_v10   ;;  %299 = vst [vmem:[%s1674_s15 + $0x58] sm:$0xff] %v298_v11   ;;  %v306_v13 = vld [vmem:[%s1669_s14 + $0xb0] sm:$0xff]   ;;  %v310_v14 = vld [vmem:[%s1669_s14 + $0xb8] sm:$0xff]  }
  0x17   : > { %303 = vst [vmem:[%s1674_s15 + $0x60] sm:$0xff] %v302_v12   ;;  %307 = vst [vmem:[%s1674_s15 + $0x68] sm:$0xff] %v306_v13   ;;  %v314_v15 = vld [vmem:[%s1669_s14 + $0xc0] sm:$0xff]   ;;  %v318_v16 = vld [vmem:[%s1669_s14 + $0xc8] sm:$0xff]  }
  0x18   : > { %311 = vst [vmem:[%s1674_s15 + $0x70] sm:$0xff] %v310_v14   ;;  %v322_v17 = vld [vmem:[%s1669_s14 + $0xd0] sm:$0xff]   ;;  %315 = vst [vmem:[%s1674_s15 + $0x78] sm:$0xff] %v314_v15   ;;  %v326_v18 = vld [vmem:[%s1669_s14 + $0x120] sm:$0xff]  }
  0x19   : > { %319 = vst [vmem:[%s1674_s15 + $0x80] sm:$0xff] %v318_v16   ;;  %323 = vst [vmem:[%s1674_s15 + $0x88] sm:$0xff] %v322_v17   ;;  %v330_v19 = vld [vmem:[%s1669_s14 + $0x128] sm:$0xff]   ;;  %v334_v20 = vld [vmem:[%s1669_s14 + $0x130] sm:$0xff]  }
  0x1a   : > { %327 = vst [vmem:[%s1674_s15 + $0x90] sm:$0xff] %v326_v18   ;;  %331 = vst [vmem:[%s1674_s15 + $0x98] sm:$0xff] %v330_v19   ;;  %v338_v21 = vld [vmem:[%s1669_s14 + $0x138] sm:$0xff]   ;;  %v342_v22 = vld [vmem:[%s1669_s14 + $0x140] sm:$0xff]  }
  0x1b   : > { %335 = vst [vmem:[%s1674_s15 + $0xa0] sm:$0xff] %v334_v20   ;;  %v346_v23 = vld [vmem:[%s1669_s14 + $0x148] sm:$0xff]   ;;  %339 = vst [vmem:[%s1674_s15 + $0xa8] sm:$0xff] %v338_v21   ;;  %v350_v24 = vld [vmem:[%s1669_s14 + $0x150] sm:$0xff]  }
  0x1c   : > { %343 = vst [vmem:[%s1674_s15 + $0xb0] sm:$0xff] %v342_v22   ;;  %347 = vst [vmem:[%s1674_s15 + $0xb8] sm:$0xff] %v346_v23   ;;  %v354_v25 = vld [vmem:[%s1669_s14 + $0x158] sm:$0xff]   ;;  %v358_v26 = vld [vmem:[%s1669_s14 + $0x160] sm:$0xff]  }
  0x1d   : > { %351 = vst [vmem:[%s1674_s15 + $0xc0] sm:$0xff] %v350_v24   ;;  %355 = vst [vmem:[%s1674_s15 + $0xc8] sm:$0xff] %v354_v25   ;;  %v362_v27 = vld [vmem:[%s1669_s14 + $0x1b0] sm:$0xff]   ;;  %v366_v28 = vld [vmem:[%s1669_s14 + $0x1b8] sm:$0xff]  }
  0x1e   : > { %359 = vst [vmem:[%s1674_s15 + $0xd0] sm:$0xff] %v358_v26   ;;  %v370_v29 = vld [vmem:[%s1669_s14 + $0x1c0] sm:$0xff]   ;;  %363 = vst [vmem:[%s1674_s15 + $0xd8] sm:$0xff] %v362_v27   ;;  %v374_v30 = vld [vmem:[%s1669_s14 + $0x1c8] sm:$0xff]  }
  0x1f   : > { %367 = vst [vmem:[%s1674_s15 + $0xe0] sm:$0xff] %v366_v28   ;;  %371 = vst [vmem:[%s1674_s15 + $0xe8] sm:$0xff] %v370_v29   ;;  %v378_v31 = vld [vmem:[%s1669_s14 + $0x1d0] sm:$0xff]   ;;  %v382_v32 = vld [vmem:[%s1669_s14 + $0x1d8] sm:$0xff]  }
  0x20   : > { %375 = vst [vmem:[%s1674_s15 + $0xf0] sm:$0xff] %v374_v30   ;;  %379 = vst [vmem:[%s1674_s15 + $0xf8] sm:$0xff] %v378_v31   ;;  %v386_v33 = vld [vmem:[%s1669_s14 + $0x1e0] sm:$0xff]   ;;  %v390_v34 = vld [vmem:[%s1669_s14 + $0x1e8] sm:$0xff]  }
  0x21   : > { %383 = vst [vmem:[%s1674_s15 + $0x100] sm:$0xff] %v382_v32   ;;  %v394_v35 = vld [vmem:[%s1669_s14 + $0x1f0] sm:$0xff]   ;;  %387 = vst [vmem:[%s1674_s15 + $0x108] sm:$0xff] %v386_v33  }
  0x22   : > { %391 = vst [vmem:[%s1674_s15 + $0x110] sm:$0xff] %v390_v34   ;;  %395 = vst [vmem:[%s1674_s15 + $0x118] sm:$0xff] %v394_v35  }
  0x23 PF: > { %p1422_p5 = scmp.ge.s32.totalorder %s1591_s26, 1  ;;  %p564_p6 = scmp.lt.s32.totalorder %s1591_s26, 3 }
  0x25   : > { %p565_p7 = pnand %p1422_p5, %p564_p6 }
  0x26   : > { %s571_s18 = sand.u32 (!%p565_p7), 1, %s1583_s24   ;;  %p602_p8 = scmp.lt.s32.totalorder (!%p565_p7), %s1417_s27, 1 }
  0x27   : > { %568 = sbr.rel (%p565_p7) target bundleno = 565 (0x235), region = 85 }
  0x28   : > { %s1542_s21 = smul.u32 (!%p565_p7), 288, %s571_s18 }
  0x2a   : > { %s1765_s30 = scalar_lea.vmem (!%p565_p7), [#allocation2], %s1542_s21 }
  0x2c   : > { %v1164_v36 = vld [vmem:[%s2155_s3 + $0x8] sm:$0xff]  ;;  %v1593_v37 = vmov 0.0   ;;  %v1163_v38 = vld [vmem:[%s2155_s3] sm:$0xff]  ;;  %vm1594_vm0 = vmmov 0   ;;  %v1247_v40 = vld [vmem:[%s2157_s5 + $0x38] sm:$0xff]  ;;  %vm735_vm1 = vcmask 1046528  }
  0x2d   : > { %1514 = vmatprep.subr.mxu0 %v1593_v37  ;;  %1518 = vmatprep.mubr.msk.f32.mxu0 %vm1594_vm0, %v1593_v37  ;;  %v1425_v39 = vld [vmem:[%s2153_s1] ss:$0 sm:$0xff]  ;;  %v1771_v42 = vld [vmem:[%s1765_s30 + $0x10] ss:$8 sps:$4 sm:$0xff]   ;;  %v1434_v1 = vld [vmem:[%s2153_s1 + $0x1] ss:$0 sm:$0xff] }
  0x2e   : > { %1515 = vmatpush3.msra.mxu0 %v1164_v36  ;;  %1521 = vmatprep.subr.mxu1 %v1593_v37  ;;  %v1768_v41 = vld [vmem:[%s1765_s30] ss:$8 sps:$4 sm:$0xff]   ;;  %v1777_v44 = vld [vmem:[%s1765_s30 + $0x30] ss:$8 sps:$4 sm:$0xff]   ;;  %v617_v47 = vunpack.c.l.bf16 %v1771_v42  ;;  %v618_v48 = vunpack.c.h.bf16 %v1771_v42  ;;  %v682_v14 = vld [vmem:[%s1765_s30 + $0x4] sm:$0x1] }
  0x2f   : > { %1516 = vmatprep.subr.mxu0 %v1593_v37  ;;  %1537 = vmatprep.mubr.msk.f32.mxu1 %vm1594_vm0, %v1593_v37  ;;  %v1774_v43 = vld [vmem:[%s1765_s30 + $0x20] ss:$8 sps:$4 sm:$0xff]   ;;  %v615_v45 = vunpack.c.l.bf16 %v1768_v41  ;;  %v616_v46 = vunpack.c.h.bf16 %v1768_v41  ;;  %v621_v51 = vunpack.c.l.bf16 %v1777_v44  ;;  %v622_v52 = vunpack.c.h.bf16 %v1777_v44  ;;  %v683_v15 = vld [vmem:[%s1765_s30 + $0xc] sm:$0x1]  ;;  %v684_v20 = vld [vmem:[%s1765_s30 + $0x14] sm:$0x1] }
  0x30   : > { %1517 = vmatpush3.msra.mxu0 %v1163_v38  ;;  %1522 = vmatpush3.msra.mxu1 %v1247_v40  ;;  %v619_v49 = vunpack.c.l.bf16 %v1774_v43  ;;  %v620_v50 = vunpack.c.h.bf16 %v1774_v43  ;;  %v1426_v53 = vld [vmem:[%s1765_s30 + $0x48] ss:$8 sps:$4 sm:$0xff]   ;;  %v1428_v54 = vld [vmem:[%s1765_s30 + $0x58] ss:$8 sps:$4 sm:$0xff]   ;;  %v630_v57 = vmul.f32 %v1425_v39, %v617_v47  ;;  %v631_v58 = vmul.f32 %v1425_v39, %v618_v48  ;;  %v685_v21 = vld [vmem:[%s1765_s30 + $0x1c] sm:$0x1] }
  0x31   : > { %1523 = vmatprep.subr.mxu1 %v1593_v37  ;;  %v628_v55 = vmul.f32 %v1425_v39, %v615_v45  ;;  %v629_v56 = vmul.f32 %v1425_v39, %v616_v46  ;;  %v1430_v59 = vld [vmem:[%s1765_s30 + $0x68] ss:$8 sps:$4 sm:$0xff]   ;;  %v1432_v60 = vld [vmem:[%s1765_s30 + $0x78] ss:$8 sps:$4 sm:$0xff]   ;;  %v634_v63 = vmul.f32 %v1425_v39, %v621_v51  ;;  %v635_v0 = vmul.f32 %v1425_v39, %v622_v52  ;;  %v686_v22 = vld [vmem:[%s1765_s30 + $0x24] sm:$0x1] }
  0x32   : > { %v632_v61 = vmul.f32 %v1425_v39, %v619_v49  ;;  %v633_v62 = vmul.f32 %v1425_v39, %v620_v50  ;;  %v653_v2 = vunpack.c.l.bf16 %v1426_v53  ;;  %v654_v3 = vunpack.c.h.bf16 %v1426_v53  ;;  %v687_v27 = vld [vmem:[%s1765_s30 + $0x2c] sm:$0x1]  ;;  %v688_v28 = vld [vmem:[%s1765_s30 + $0x34] sm:$0x1]  ;;  %v689_v29 = vld [vmem:[%s1765_s30 + $0x3c] sm:$0x1] }
  0x33   : > { %v655_v4 = vunpack.c.l.bf16 %v1428_v54  ;;  %v656_v5 = vunpack.c.h.bf16 %v1428_v54  ;;  %v657_v6 = vunpack.c.l.bf16 %v1430_v59  ;;  %v658_v7 = vunpack.c.h.bf16 %v1430_v59  ;;  %v1435_v34 = vld [vmem:[%s2153_s1 + $0x2] ss:$0 sm:$0xff]  ;;  %v1245_v43 = vld [vmem:[%s2157_s5 + $0x28] sm:$0xff]  ;;  %s2164_s27 = smov (!%p602_p8, %s1417_s27), 1 }
  0x34   : > { %v659_v8 = vunpack.c.l.bf16 %v1432_v60  ;;  %v660_v9 = vunpack.c.h.bf16 %v1432_v60  ;;  %v666_v10 = vmul.f32 %v1434_v1, %v653_v2  ;;  %v667_v11 = vmul.f32 %v1434_v1, %v654_v3  ;;  %s1501_s10 = sshll.u32 %s2164_s27, 5 }
  0x35   : > { %v668_v12 = vmul.f32 %v1434_v1, %v655_v4  ;;  %v669_v13 = vmul.f32 %v1434_v1, %v656_v5  ;;  %v670_v16 = vmul.f32 %v1434_v1, %v657_v6  ;;  %v671_v17 = vmul.f32 %v1434_v1, %v658_v7  ;;  %s606_s12 = scalar_lea.vmem %s2159_s7, %s1501_s10 }
  0x36   : > { %v672_v18 = vmul.f32 %v1434_v1, %v659_v8  ;;  %v673_v19 = vmul.f32 %v1434_v1, %v660_v9  ;;  %v1816_v23 = vadd.f32 %v666_v10, %v628_v55  ;;  %v1818_v24 = vadd.f32 %v667_v11, %v629_v56  ;;  %v1244_v10 = vld [vmem:[%s2157_s5 + $0x20] sm:$0xff] }
  0x37   : > { %v1820_v25 = vadd.f32 %v668_v12, %v630_v57  ;;  %v1822_v26 = vadd.f32 %v669_v13, %v631_v58  ;;  %v1827_v30 = vadd.f32 %v670_v16, %v632_v61  ;;  %v1829_v31 = vadd.f32 %v671_v17, %v633_v62 }
  0x38   : > { %v1831_v32 = vadd.f32 %v672_v18, %v634_v63  ;;  %v1833_v33 = vadd.f32 %v673_v19, %v635_v0  ;;  %v690_v35 = vunpack.c.l.bf16 %v682_v14  ;;  %v691_v36 = vunpack.c.l.bf16 %v683_v15  ;;  %v1870_v19 = vld [vmem:[%s1765_s30 + $0x90] ss:$8 sps:$4 sm:$0xff]  }
  0x39   : > { %v692_v38 = vunpack.c.l.bf16 %v684_v20  ;;  %v693_v39 = vunpack.c.l.bf16 %v685_v21  ;;  %v694_v40 = vunpack.c.l.bf16 %v686_v22  ;;  %v695_v53 = vunpack.c.l.bf16 %v687_v27  ;;  %v1243_v20 = vld [vmem:[%s2157_s5 + $0x18] sm:$0xff] }
  0x3a   : > { %v696_v54 = vunpack.c.l.bf16 %v688_v28  ;;  %v697_v55 = vunpack.c.l.bf16 %v689_v29  ;;  %v703_v56 = vmul.f32 %v1435_v34, %v615_v45  ;;  %v704_v57 = vmul.f32 %v1435_v34, %v690_v35  ;;  %v1880_v29 = vld [vmem:[%s1765_s30 + $0xa0] ss:$8 sps:$4 sm:$0xff]  }
  0x3b   : > { %v705_v58 = vmul.f32 %v1435_v34, %v616_v46  ;;  %v706_v59 = vmul.f32 %v1435_v34, %v691_v36  ;;  %v707_v60 = vmul.f32 %v1435_v34, %v617_v47  ;;  %v708_v61 = vmul.f32 %v1435_v34, %v692_v38 }
  0x3c   : > { %v709_v62 = vmul.f32 %v1435_v34, %v618_v48  ;;  %v710_v63 = vmul.f32 %v1435_v34, %v693_v39  ;;  %v711_v0 = vmul.f32 %v1435_v34, %v619_v49  ;;  %v712_v1 = vmul.f32 %v1435_v34, %v694_v40  ;;  %v1246_v49 = vld [vmem:[%s2157_s5 + $0x30] sm:$0xff]  ;;  %v1890_v40 = vld [vmem:[%s1765_s30 + $0xc0] ss:$8 sps:$4 sm:$0xff]  }
  0x3d   : > { %v713_v45 = vmul.f32 %v1435_v34, %v620_v50  ;;  %v714_v2 = vmul.f32 %v1435_v34, %v695_v53  ;;  %v715_v41 = vmul.f32 %v1435_v34, %v621_v51  ;;  %v716_v46 = vmul.f32 %v1435_v34, %v696_v54  ;;  %1524 = vmatpush3.msra.mxu1 %v1246_v49  ;;  %v1887_v39 = vld [vmem:[%s1765_s30 + $0xb0] ss:$8 sps:$4 sm:$0xff]  }
  0x3e   : > { %v717_v47 = vmul.f32 %v1435_v34, %v622_v52  ;;  %v718_v3 = vmul.f32 %v1435_v34, %v697_v55  ;;  %v736_v4 = vrot.slane %v703_v56, 1  ;;  %v737_v42 = vrot.slane %v704_v57, 1  ;;  %1525 = vmatprep.subr.mxu1 %v1593_v37 }
  0x3f   : > { %v739_v48 = vrot.slane %v705_v58, 1  ;;  %v740_v5 = vrot.slane %v706_v59, 1  ;;  %v742_v50 = vrot.slane %v707_v60, 1  ;;  %v743_v6 = vrot.slane %v708_v61, 1  ;;  %1526 = vmatpush3.msra.mxu1 %v1245_v43 }
  0x40   : > { %v745_v51 = vrot.slane %v709_v62, 1  ;;  %v746_v7 = vrot.slane %v710_v63, 1  ;;  %v738_v44 = vsel %vm735_vm1, %v736_v4, %v737_v42  ;;  %v748_v8 = vrot.slane %v711_v0, 1  ;;  %1527 = vmatprep.subr.mxu1 %v1593_v37  ;;  %v1450_v4 = vld [vmem:[%s1765_s30 + $0xf8] ss:$8 sps:$4 sm:$0xff]  }
  0x41   : > { %v741_v52 = vsel %vm735_vm1, %v739_v48, %v740_v5  ;;  %v749_v9 = vrot.slane %v712_v1, 1  ;;  %v744_v11 = vsel %vm735_vm1, %v742_v50, %v743_v6  ;;  %v751_v13 = vrot.slane %v713_v45, 1  ;;  %1528 = vmatpush3.msra.mxu1 %v1244_v10  ;;  %v1446_v45 = vld [vmem:[%s1765_s30 + $0xd8] ss:$8 sps:$4 sm:$0xff]   ;;  %v1452_v42 = vld [vmem:[%s1765_s30 + $0x108] ss:$8 sps:$4 sm:$0xff]  }
  0x42   : > { %v747_v12 = vsel %vm735_vm1, %v745_v51, %v746_v7  ;;  %v752_v14 = vrot.slane %v714_v2, 1  ;;  %v754_v16 = vrot.slane %v715_v41, 1  ;;  %v755_v17 = vrot.slane %v716_v46, 1  ;;  %1529 = vmatprep.subr.mxu1 %v1593_v37  ;;  %v1448_v2 = vld [vmem:[%s1765_s30 + $0xe8] ss:$8 sps:$4 sm:$0xff]  }
  0x43   : > { %v750_v15 = vsel %vm735_vm1, %v748_v8, %v749_v9  ;;  %v757_v18 = vrot.slane %v717_v47, 1  ;;  %v758_v22 = vrot.slane %v718_v3, 1  ;;  %v768_v27 = vadd.f32 %v738_v44, %v1816_v23  ;;  %1530 = vmatpush3.msra.mxu1 %v1243_v20  ;;  %v1455_v50 = vld [vmem:[%s2153_s1 + $0x5] ss:$0 sm:$0xff] }
  0x44   : > { %v753_v21 = vsel %vm735_vm1, %v751_v13, %v752_v14  ;;  %v769_v28 = vadd.f32 %v741_v52, %v1818_v24  ;;  %v756_v34 = vsel %vm735_vm1, %v754_v16, %v755_v17  ;;  %v770_v35 = vadd.f32 %v744_v11, %v1820_v25  ;;  %v1445_v25 = vld [vmem:[%s2153_s1 + $0x4] ss:$0 sm:$0xff]  ;;  %1531 = vmatprep.subr.mxu1 %v1593_v37  ;;  %v1457_v16 = vld [vmem:[%s1765_s30 + $0x9c] sm:$0x1] }
  0x45   : > { %v771_v36 = vadd.f32 %v747_v12, %v1822_v26  ;;  %v772_v38 = vadd.f32 %v750_v15, %v1827_v30  ;;  %v759_v23 = vsel %vm735_vm1, %v757_v18, %v758_v22  ;;  %v773_v24 = vadd.f32 %v753_v21, %v1829_v31  ;;  %v1456_v15 = vld [vmem:[%s1765_s30 + $0x94] sm:$0x1]  ;;  %v1458_v22 = vld [vmem:[%s1765_s30 + $0xa4] sm:$0x1] }
  0x46   : > { %v774_v53 = vadd.f32 %v756_v34, %v1831_v32  ;;  %v785_v54 = vunpack.c.l.bf16 %v1870_v19  ;;  %v775_v26 = vadd.f32 %v759_v23, %v1833_v33  ;;  %v786_v30 = vunpack.c.h.bf16 %v1870_v19  ;;  %v1461_v23 = vld [vmem:[%s1765_s30 + $0xbc] sm:$0x1] }
  0x47   : > { %v787_v55 = vunpack.c.l.bf16 %v1880_v29  ;;  %v788_v56 = vunpack.c.h.bf16 %v1880_v29  ;;  %v789_v31 = vunpack.c.l.bf16 %v1887_v39  ;;  %v790_v32 = vunpack.c.h.bf16 %v1887_v39 }
  0x48   : > { %v791_v57 = vunpack.c.l.bf16 %v1890_v40  ;;  %v792_v58 = vunpack.c.h.bf16 %v1890_v40  ;;  %v799_v33 = vmul.f32 %v1445_v25, %v785_v54  ;;  %v800_v59 = vmul.f32 %v1445_v25, %v786_v30 }
  0x49   : > { %v801_v60 = vmul.f32 %v1445_v25, %v787_v55  ;;  %v802_v61 = vmul.f32 %v1445_v25, %v788_v56  ;;  %v803_v62 = vmul.f32 %v1445_v25, %v789_v31  ;;  %v804_v63 = vmul.f32 %v1445_v25, %v790_v32 }
  0x4a   : > { %v805_v0 = vmul.f32 %v1445_v25, %v791_v57  ;;  %v806_v1 = vmul.f32 %v1445_v25, %v792_v58  ;;  %v807_v41 = vadd.f32 %v799_v33, %v768_v27  ;;  %v808_v46 = vadd.f32 %v800_v59, %v769_v28  ;;  %v1459_v27 = vld [vmem:[%s1765_s30 + $0xac] sm:$0x1]  ;;  %v1460_v28 = vld [vmem:[%s1765_s30 + $0xb4] sm:$0x1] }
  0x4b   : > { %v809_v47 = vadd.f32 %v801_v60, %v770_v35  ;;  %v810_v3 = vadd.f32 %v802_v61, %v771_v36  ;;  %v811_v48 = vadd.f32 %v803_v62, %v772_v38  ;;  %v812_v5 = vadd.f32 %v804_v63, %v773_v24  ;;  %v1462_v24 = vld [vmem:[%s1765_s30 + $0xc4] sm:$0x1]  ;;  %v1465_v60 = vld [vmem:[%s2153_s1 + $0x6] ss:$0 sm:$0xff] }
  0x4c   : > { %v813_v49 = vadd.f32 %v805_v0, %v774_v53  ;;  %v814_v43 = vadd.f32 %v806_v1, %v775_v26  ;;  %v824_v6 = vunpack.c.l.bf16 %v1446_v45  ;;  %v825_v51 = vunpack.c.h.bf16 %v1446_v45  ;;  %v1463_v53 = vld [vmem:[%s1765_s30 + $0xcc] sm:$0x1] }
  0x4d   : > { %v826_v7 = vunpack.c.l.bf16 %v1448_v2  ;;  %v827_v44 = vunpack.c.h.bf16 %v1448_v2  ;;  %v828_v52 = vunpack.c.l.bf16 %v1450_v4  ;;  %v829_v8 = vunpack.c.h.bf16 %v1450_v4 }
  0x4e   : > { %v830_v9 = vunpack.c.l.bf16 %v1452_v42  ;;  %v831_v10 = vunpack.c.h.bf16 %v1452_v42  ;;  %v837_v11 = vmul.f32 %v1455_v50, %v824_v6  ;;  %v838_v12 = vmul.f32 %v1455_v50, %v825_v51 }
  0x4f   : > { %v839_v13 = vmul.f32 %v1455_v50, %v826_v7  ;;  %v840_v14 = vmul.f32 %v1455_v50, %v827_v44  ;;  %v841_v17 = vmul.f32 %v1455_v50, %v828_v52  ;;  %v842_v18 = vmul.f32 %v1455_v50, %v829_v8 }
  0x50   : > { %v843_v20 = vmul.f32 %v1455_v50, %v830_v9  ;;  %v844_v21 = vmul.f32 %v1455_v50, %v831_v10  ;;  %v845_v34 = vadd.f32 %v837_v11, %v807_v41  ;;  %v846_v35 = vadd.f32 %v838_v12, %v808_v46 }
  0x51   : > { %v847_v36 = vadd.f32 %v839_v13, %v809_v47  ;;  %v848_v38 = vadd.f32 %v840_v14, %v810_v3  ;;  %v849_v25 = vadd.f32 %v841_v17, %v811_v48  ;;  %v850_v26 = vadd.f32 %v842_v18, %v812_v5  ;;  %v1967_v17 = vld [vmem:[%s1765_s30 + $0x8] ss:$8 sps:$4 sm:$0xff]  }
  0x52   : > { %v851_v33 = vadd.f32 %v843_v20, %v813_v49  ;;  %v1940_v59 = vadd.f32 %v844_v21, %v814_v43  ;;  %v861_v61 = vunpack.c.l.bf16 %v1456_v15  ;;  %v862_v62 = vunpack.c.l.bf16 %v1457_v16 }
  0x53   : > { %v863_v63 = vunpack.c.l.bf16 %v1458_v22  ;;  %v864_v0 = vunpack.c.l.bf16 %v1459_v27  ;;  %v865_v1 = vunpack.c.l.bf16 %v1460_v28  ;;  %v866_v45 = vunpack.c.l.bf16 %v1461_v23  ;;  %v1971_v27 = vld [vmem:[%s1765_s30 + $0x18] ss:$8 sps:$4 sm:$0xff]  }
  0x54   : > { %v867_v2 = vunpack.c.l.bf16 %v1462_v24  ;;  %v868_v41 = vunpack.c.l.bf16 %v1463_v53  ;;  %v874_v46 = vmul.f32 %v1465_v60, %v785_v54  ;;  %v875_v47 = vmul.f32 %v1465_v60, %v861_v61  ;;  %v1978_v61 = vld [vmem:[%s1765_s30 + $0x38] ss:$8 sps:$4 sm:$0xff]  }
  0x55   : > { %v876_v3 = vmul.f32 %v1465_v60, %v786_v30  ;;  %v877_v4 = vmul.f32 %v1465_v60, %v862_v62  ;;  %v878_v42 = vmul.f32 %v1465_v60, %v787_v55  ;;  %v879_v48 = vmul.f32 %v1465_v60, %v863_v63 }
  0x56   : > { %v880_v5 = vmul.f32 %v1465_v60, %v788_v56  ;;  %v881_v49 = vmul.f32 %v1465_v60, %v864_v0  ;;  %v882_v43 = vmul.f32 %v1465_v60, %v789_v31  ;;  %v883_v50 = vmul.f32 %v1465_v60, %v865_v1 }
  0x57   : > { %v884_v54 = vmul.f32 %v1465_v60, %v790_v32  ;;  %v885_v6 = vmul.f32 %v1465_v60, %v866_v45  ;;  %v886_v19 = vmul.f32 %v1465_v60, %v791_v57  ;;  %v887_v30 = vmul.f32 %v1465_v60, %v867_v2 }
  0x58   : > { %v888_v55 = vmul.f32 %v1465_v60, %v792_v58  ;;  %v889_v51 = vmul.f32 %v1465_v60, %v868_v41  ;;  %v906_v7 = vrot.slane %v874_v46, 1  ;;  %v907_v29 = vrot.slane %v875_v47, 1  ;;  %v1975_v60 = vld [vmem:[%s1765_s30 + $0x28] ss:$8 sps:$4 sm:$0xff]  }
  0x59   : > { %v909_v56 = vrot.slane %v876_v3, 1  ;;  %v910_v44 = vrot.slane %v877_v4, 1  ;;  %v912_v52 = vrot.slane %v878_v42, 1  ;;  %v913_v31 = vrot.slane %v879_v48, 1 }
  0x5a   : > { %v915_v8 = vrot.slane %v880_v5, 1  ;;  %v916_v9 = vrot.slane %v881_v49, 1  ;;  %v908_v39 = vsel %vm735_vm1, %v906_v7, %v907_v29  ;;  %v918_v57 = vrot.slane %v882_v43, 1  ;;  %v1476_v5 = vld [vmem:[%s1765_s30 + $0x50] ss:$8 sps:$4 sm:$0xff]  }
  0x5b   : > { %v911_v32 = vsel %vm735_vm1, %v909_v56, %v910_v44  ;;  %v919_v10 = vrot.slane %v883_v50, 1  ;;  %v914_v40 = vsel %vm735_vm1, %v912_v52, %v913_v31  ;;  %v921_v11 = vrot.slane %v884_v54, 1  ;;  %v1478_v49 = vld [vmem:[%s1765_s30 + $0x60] ss:$8 sps:$4 sm:$0xff]  }
  0x5c   : > { %v917_v58 = vsel %vm735_vm1, %v915_v8, %v916_v9  ;;  %v922_v12 = vrot.slane %v885_v6, 1  ;;  %v924_v14 = vrot.slane %v886_v19, 1  ;;  %v925_v15 = vrot.slane %v887_v30, 1  ;;  %v1480_v19 = vld [vmem:[%s1765_s30 + $0x70] ss:$8 sps:$4 sm:$0xff]  }
  0x5d   : > { %v920_v13 = vsel %vm735_vm1, %v918_v57, %v919_v10  ;;  %v927_v16 = vrot.slane %v888_v55, 1  ;;  %v928_v20 = vrot.slane %v889_v51, 1  ;;  %v938_v21 = vadd.f32 %v908_v39, %v845_v34  ;;  %v1475_v34 = vld [vmem:[%s2153_s1 + $0x8] ss:$0 sm:$0xff]  ;;  %v1485_v56 = vld [vmem:[%s2153_s1 + $0x9] ss:$0 sm:$0xff] }
  0x5e   : > { %v923_v18 = vsel %vm735_vm1, %v921_v11, %v922_v12  ;;  %v939_v22 = vadd.f32 %v911_v32, %v846_v35  ;;  %v926_v28 = vsel %vm735_vm1, %v924_v14, %v925_v15  ;;  %v940_v23 = vadd.f32 %v914_v40, %v847_v36  ;;  %v1482_v30 = vld [vmem:[%s1765_s30 + $0x80] ss:$8 sps:$4 sm:$0xff]   ;;  %v1486_v12 = vld [vmem:[%s1765_s30 + $0xc] sm:$0x1] }
  0x5f   : > { %v941_v24 = vadd.f32 %v917_v58, %v848_v38  ;;  %v942_v53 = vadd.f32 %v920_v13, %v849_v25  ;;  %v929_v62 = vsel %vm735_vm1, %v927_v16, %v928_v20  ;;  %v943_v63 = vadd.f32 %v923_v18, %v850_v26  ;;  %v1487_v13 = vld [vmem:[%s1765_s30 + $0x14] sm:$0x1]  ;;  %v1488_v20 = vld [vmem:[%s1765_s30 + $0x1c] sm:$0x1] }
  0x60   : > { %v944_v0 = vadd.f32 %v926_v28, %v851_v33  ;;  %v955_v1 = vunpack.c.l.bf16 %v1967_v17  ;;  %v945_v35 = vadd.f32 %v929_v62, %v1940_v59  ;;  %v956_v36 = vunpack.c.h.bf16 %v1967_v17  ;;  %v1491_v62 = vld [vmem:[%s1765_s30 + $0x34] sm:$0x1] }
  0x61   : > { %v957_v38 = vunpack.c.l.bf16 %v1971_v27  ;;  %v958_v25 = vunpack.c.h.bf16 %v1971_v27  ;;  %v959_v45 = vunpack.c.l.bf16 %v1975_v60  ;;  %v960_v26 = vunpack.c.h.bf16 %v1975_v60 }
  0x62   : > { %v961_v33 = vunpack.c.l.bf16 %v1978_v61  ;;  %v962_v2 = vunpack.c.h.bf16 %v1978_v61  ;;  %v969_v59 = vmul.f32 %v1475_v34, %v955_v1  ;;  %v970_v41 = vmul.f32 %v1475_v34, %v956_v36 }
  0x63   : > { %v971_v46 = vmul.f32 %v1475_v34, %v957_v38  ;;  %v972_v47 = vmul.f32 %v1475_v34, %v958_v25  ;;  %v973_v3 = vmul.f32 %v1475_v34, %v959_v45  ;;  %v974_v4 = vmul.f32 %v1475_v34, %v960_v26 }
  0x64   : > { %v975_v42 = vmul.f32 %v1475_v34, %v961_v33  ;;  %v976_v48 = vmul.f32 %v1475_v34, %v962_v2  ;;  %v977_v43 = vadd.f32 %v969_v59, %v938_v21  ;;  %v978_v50 = vadd.f32 %v970_v41, %v939_v22  ;;  %v1489_v21 = vld [vmem:[%s1765_s30 + $0x24] sm:$0x1]  ;;  %v1490_v22 = vld [vmem:[%s1765_s30 + $0x2c] sm:$0x1] }
  0x65   : > { %v979_v54 = vadd.f32 %v971_v46, %v940_v23  ;;  %v980_v6 = vadd.f32 %v972_v47, %v941_v24  ;;  %v981_v55 = vadd.f32 %v973_v3, %v942_v53  ;;  %v982_v51 = vadd.f32 %v974_v4, %v943_v63  ;;  %v1492_v63 = vld [vmem:[%s1765_s30 + $0x3c] sm:$0x1]  ;;  %v1495_v46 = vld [vmem:[%s2153_s1 + $0xa] ss:$0 sm:$0xff] }
  0x66   : > { %v983_v7 = vadd.f32 %v975_v42, %v944_v0  ;;  %v984_v29 = vadd.f32 %v976_v48, %v945_v35  ;;  %v994_v44 = vunpack.c.l.bf16 %v1476_v5  ;;  %v995_v52 = vunpack.c.h.bf16 %v1476_v5  ;;  %v1493_v0 = vld [vmem:[%s1765_s30 + $0x44] sm:$0x1] }
  0x67   : > { %v996_v31 = vunpack.c.l.bf16 %v1478_v49  ;;  %v997_v8 = vunpack.c.h.bf16 %v1478_v49  ;;  %v998_v9 = vunpack.c.l.bf16 %v1480_v19  ;;  %v999_v39 = vunpack.c.h.bf16 %v1480_v19 }
  0x68   : > { %v1000_v32 = vunpack.c.l.bf16 %v1482_v30  ;;  %v1001_v57 = vunpack.c.h.bf16 %v1482_v30  ;;  %v1007_v10 = vmul.f32 %v1485_v56, %v994_v44  ;;  %v1008_v40 = vmul.f32 %v1485_v56, %v995_v52 }
  0x69   : > { %v1009_v58 = vmul.f32 %v1485_v56, %v996_v31  ;;  %v1010_v11 = vmul.f32 %v1485_v56, %v997_v8  ;;  %v1011_v14 = vmul.f32 %v1485_v56, %v998_v9  ;;  %v1012_v15 = vmul.f32 %v1485_v56, %v999_v39 }
  0x6a   : > { %v1013_v16 = vmul.f32 %v1485_v56, %v1000_v32  ;;  %v1014_v18 = vmul.f32 %v1485_v56, %v1001_v57  ;;  %v1015_v28 = vadd.f32 %v1007_v10, %v977_v43  ;;  %v1016_v23 = vadd.f32 %v1008_v40, %v978_v50 }
  0x6b   : > { %v1017_v24 = vadd.f32 %v1009_v58, %v979_v54  ;;  %v1018_v53 = vadd.f32 %v1010_v11, %v980_v6  ;;  %v1019_v34 = vadd.f32 %v1011_v14, %v981_v55  ;;  %v1020_v35 = vadd.f32 %v1012_v15, %v982_v51  ;;  %v1496_v14 = vld [vmem:[%s2154_s2] ss:$0 sm:$0xff] }
  0x6c   : > { %v1021_v59 = vadd.f32 %v1013_v16, %v983_v7  ;;  %v2024_v41 = vadd.f32 %v1014_v18, %v984_v29  ;;  %v1031_v47 = vunpack.c.l.bf16 %v1486_v12  ;;  %v1032_v3 = vunpack.c.l.bf16 %v1487_v13 }
  0x6d   : > { %v1033_v4 = vunpack.c.l.bf16 %v1488_v20  ;;  %v1034_v42 = vunpack.c.l.bf16 %v1489_v21  ;;  %v1035_v48 = vunpack.c.l.bf16 %v1490_v22  ;;  %v1036_v5 = vunpack.c.l.bf16 %v1491_v62 }
  0x6e   : > { %v1037_v49 = vunpack.c.l.bf16 %v1492_v63  ;;  %v1038_v43 = vunpack.c.l.bf16 %v1493_v0  ;;  %v1044_v50 = vmul.f32 %v1495_v46, %v955_v1  ;;  %v1045_v54 = vmul.f32 %v1495_v46, %v1031_v47 }
  0x6f   : > { %v1046_v6 = vmul.f32 %v1495_v46, %v956_v36  ;;  %v1047_v19 = vmul.f32 %v1495_v46, %v1032_v3  ;;  %v1048_v30 = vmul.f32 %v1495_v46, %v957_v38  ;;  %v1049_v55 = vmul.f32 %v1495_v46, %v1033_v4 }
  0x70   : > { %v1050_v51 = vmul.f32 %v1495_v46, %v958_v25  ;;  %v1051_v7 = vmul.f32 %v1495_v46, %v1034_v42  ;;  %v1052_v29 = vmul.f32 %v1495_v46, %v959_v45  ;;  %v1053_v56 = vmul.f32 %v1495_v46, %v1035_v48 }
  0x71   : > { %v1054_v1 = vmul.f32 %v1495_v46, %v960_v26  ;;  %v1055_v44 = vmul.f32 %v1495_v46, %v1036_v5  ;;  %v1056_v17 = vmul.f32 %v1495_v46, %v961_v33  ;;  %v1057_v36 = vmul.f32 %v1495_v46, %v1037_v49 }
  0x72   : > { %v1058_v38 = vmul.f32 %v1495_v46, %v962_v2  ;;  %v1059_v52 = vmul.f32 %v1495_v46, %v1038_v43  ;;  %v1076_v31 = vrot.slane %v1044_v50, 1  ;;  %v1077_v27 = vrot.slane %v1045_v54, 1 }
  0x73   : > { %v1079_v25 = vrot.slane %v1046_v6, 1  ;;  %v1080_v8 = vrot.slane %v1047_v19, 1  ;;  %v1082_v9 = vrot.slane %v1048_v30, 1  ;;  %v1083_v39 = vrot.slane %v1049_v55, 1 }
  0x74   : > { %v1085_v45 = vrot.slane %v1050_v51, 1  ;;  %v1086_v32 = vrot.slane %v1051_v7, 1  ;;  %v1078_v60 = vsel %vm735_vm1, %v1076_v31, %v1077_v27  ;;  %v1088_v57 = vrot.slane %v1052_v29, 1 }
  0x75   : > { %v1081_v26 = vsel %vm735_vm1, %v1079_v25, %v1080_v8  ;;  %v1089_v10 = vrot.slane %v1053_v56, 1  ;;  %v1084_v33 = vsel %vm735_vm1, %v1082_v9, %v1083_v39  ;;  %v1091_v2 = vrot.slane %v1054_v1, 1 }
  0x76   : > { %v1087_v61 = vsel %vm735_vm1, %v1085_v45, %v1086_v32  ;;  %v1092_v40 = vrot.slane %v1055_v44, 1  ;;  %v1094_v11 = vrot.slane %v1056_v17, 1  ;;  %v1095_v12 = vrot.slane %v1057_v36, 1 }
  0x77   : > { %v1090_v58 = vsel %vm735_vm1, %v1088_v57, %v1089_v10  ;;  %v1097_v13 = vrot.slane %v1058_v38, 1  ;;  %v1098_v16 = vrot.slane %v1059_v52, 1  ;;  %v1108_v18 = vadd.f32 %v1078_v60, %v1015_v28  ;;  %v1242_v60 = vld [vmem:[%s2157_s5 + $0x10] sm:$0xff]  ;;  %v1240_v57 = vld [vmem:[%s2157_s5] sm:$0xff] }
  0x78   : > { %v1093_v15 = vsel %vm735_vm1, %v1091_v2, %v1092_v40  ;;  %v1109_v20 = vadd.f32 %v1081_v26, %v1016_v23  ;;  %v1096_v21 = vsel %vm735_vm1, %v1094_v11, %v1095_v12  ;;  %v1110_v22 = vadd.f32 %v1084_v33, %v1017_v24  ;;  %1532 = vmatpush3.msra.mxu1 %v1242_v60  ;;  %v1241_v26 = vld [vmem:[%s2157_s5 + $0x8] sm:$0xff]  ;;  %v1165_v10 = vld [vmem:[%s2156_s4] sm:$0x1] }
  0x79   : > { %v1111_v62 = vadd.f32 %v1087_v61, %v1018_v53  ;;  %v1112_v63 = vadd.f32 %v1090_v58, %v1019_v34  ;;  %v1099_v0 = vsel %vm735_vm1, %v1097_v13, %v1098_v16  ;;  %v1113_v46 = vadd.f32 %v1093_v15, %v1020_v35  ;;  %1533 = vmatprep.subr.mxu1 %v1593_v37 }
  0x7a   : > { %v2056_v47 = vadd.f32 %v1496_v14, %v1108_v18  ;;  %vm1139_vm2 = vcmask 130048   ;;  %v1114_v3 = vadd.f32 %v1096_v21, %v1021_v59  ;;  %v2058_v4 = vadd.f32 %v1496_v14, %v1109_v20  ;;  %1534 = vmatpush3.msra.mxu1 %v1241_v26 }
  0x7b   : > { %v2060_v42 = vadd.f32 %v1496_v14, %v1110_v22  ;;  %v2062_v48 = vadd.f32 %v1496_v14, %v1111_v62  ;;  %v1115_v28 = vadd.f32 %v1099_v0, %v2024_v41  ;;  %v2065_v23 = vadd.f32 %v1496_v14, %v1112_v63  ;;  %1535 = vmatprep.subr.mxu1 %v1593_v37  ;;  %v1248_v37 = vld [vmem:[%s2158_s6] sm:$0x1] }
  0x7c   : > { %v1131_v24 = vmax.f32 %v2056_v47, 0.0  ;;  %v2068_v53 = vadd.f32 %v1496_v14, %v1113_v46  ;;  %v1132_v34 = vmax.f32 %v2058_v4, 0.0  ;;  %v2076_v49 = vadd.f32 %v1496_v14, %v1114_v3  ;;  %1536 = vmatpush3.msra.mxu1 %v1240_v57 }
  0x7d   : > { %v1133_v35 = vmax.f32 %v2060_v42, 0.0  ;;  %v1134_v59 = vmax.f32 %v2062_v48, 0.0  ;;  %v1135_v41 = vmax.f32 %v2065_v23, 0.0  ;;  %v2085_v6 = vadd.f32 %v1496_v14, %v1115_v28 }
  0x7e   : > { %v1140_v5 = vsel %vm1139_vm2, %v1131_v24, 0.0  ;;  %v1141_v43 = vsel %vm1139_vm2, %v1132_v34, 0.0  ;;  %v1136_v19 = vmax.f32 %v2068_v53, 0.0  ;;  %v1137_v51 = vmax.f32 %v2076_v49, 0.0 }
  0x7f   : > { %v1143_v50 = vsel %vm1139_vm2, %v1133_v35, 0.0  ;;  %v1142_v54 = vadd.f32 %v1141_v43, %v1140_v5  ;;  %v1145_v30 = vsel %vm1139_vm2, %v1134_v59, 0.0  ;;  %v1147_v7 = vsel %vm1139_vm2, %v1135_v41, 0.0 }
  0x80   : > { %v1138_v56 = vmax.f32 %v2085_v6, 0.0  ;;  %v1149_v1 = vsel %vm1139_vm2, %v1136_v19, 0.0  ;;  %v1151_v17 = vsel %vm1139_vm2, %v1137_v51, 0.0  ;;  %vm1249_vm3 = vcmask 523264  }
  0x81   : > { %v1144_v55 = vadd.f32 %v1143_v50, %v1142_v54  ;;  %v1327_v58 = vlaneseq  ;;  %vm1347_vm4 = vcmask 125952  }
  0x82   : > { %v1153_v38 = vsel %vm1139_vm2, %v1138_v56, 0.0 }
  0x83   : > { %v1146_v29 = vadd.f32 %v1145_v30, %v1144_v55  ;;  %v1328_v15 = vshrl.u32 %v1327_v58, 7 }
  0x85   : > { %v1148_v44 = vadd.f32 %v1147_v7, %v1146_v29  ;;  %v1329_v20 = vsub.s32 0, %v1328_v15 }
  0x87   : > { %v1150_v36 = vadd.f32 %v1149_v1, %v1148_v44 }
  0x89   : > { %v1152_v52 = vadd.f32 %v1151_v17, %v1150_v36 }
  0x8b   : > { %v1154_v31 = vadd.f32 %v1153_v38, %v1152_v52 }
  0x8d   : > { %v1155_v27 = vrot.slane %v1154_v31, 4 }
  0x8f   : > { %v1156_v25 = vadd.f32 %v1155_v27, %v1154_v31 }
  0x91   : > { %v1157_v8 = vrot.slane %v1156_v25, 2 }
  0x93   : > { %v1158_v9 = vadd.f32 %v1157_v8, %v1156_v25 }
  0x95   : > { %v1159_v39 = vrot.slane %v1158_v9, 1 }
  0x97   : > { %v1160_v45 = vadd.f32 %v1159_v39, %v1158_v9 }
  0x99   : > { %v1162_v32 = vmul.f32 0.015625, %v1160_v45 }
  0x9b   : > { %1519 = vmatmul.mubr.msk.f32.vlgmr.msra.gmra.mxu0 %vm1139_vm2, %v1162_v32 }
 0x15b   : > { %v1235_v33 = vpop.f32.mrf.mxu0 }
 0x15c   : > { %v1236_v61 = vadd.f32 %v1235_v33, %v1165_v10 }
 0x15d   : > { %v1520_v2 = vpop.f32.mrf.mxu0 }
 0x15e   : > { %v1239_v40 = vmax.f32 %v1236_v61, 0.0 }
 0x160   : > { %1538 = vmatmul.mubr.msk.f32.vlgmr.msra.gmra.mxu1 %vm1249_vm3, %v1239_v40 }
 0x220   : > { %v1319_v11 = vpop.f32.mrf.mxu1 }
 0x221   : > { %v1320_v12 = vadd.f32 %v1319_v11, %v1248_v37 }
 0x222   : > { %v1539_v13 = vpop.f32.mrf.mxu1 }
 0x223   : > { %v1323_v14 = vadd.f32 3.0, %v1320_v12 }
 0x225   : > { %v1324_v16 = vmax.f32 %v1323_v14, 0.0 }
 0x227   : > { %v1325_v18 = vmin.f32 %v1324_v16, 6.0 }
 0x229   : > { %v1326_v21 = vmul.f32 0.16666667, %v1325_v18 }
 0x22b   : > { %v1330_v22 = vrot.slane %v1326_v21, %v1329_v20 }
 0x22d   : > { %v1331_v62 = vmul.f32 %v1330_v22, %v1131_v24  ;;  %v1332_v63 = vmul.f32 %v1330_v22, %v1132_v34  ;;  %v1333_v0 = vmul.f32 %v1330_v22, %v1133_v35  ;;  %v1334_v46 = vmul.f32 %v1330_v22, %v1134_v59 }
 0x22e   : > { %v1335_v3 = vmul.f32 %v1330_v22, %v1135_v41  ;;  %v1336_v28 = vmul.f32 %v1330_v22, %v1136_v19  ;;  %v1337_v53 = vmul.f32 %v1330_v22, %v1137_v51  ;;  %v1338_v47 = vmul.f32 %v1330_v22, %v1138_v56 }
 0x22f   : > { %v1339_v24 = vpack.c.bf16 %v1331_v62, %v1331_v62  ;;  %v1340_v5 = vpack.c.bf16 %v1332_v63, %v1332_v63  ;;  %v1341_v4 = vpack.c.bf16 %v1333_v0, %v1333_v0  ;;  %v1342_v34 = vpack.c.bf16 %v1334_v46, %v1334_v46 }
 0x230   : > { %v1343_v49 = vpack.c.bf16 %v1335_v3, %v1335_v3  ;;  %v1344_v42 = vpack.c.bf16 %v1336_v28, %v1336_v28  ;;  %v1345_v35 = vpack.c.bf16 %v1337_v53, %v1337_v53  ;;  %v1346_v43 = vpack.c.bf16 %v1338_v47, %v1338_v47 }
 0x231   : > { %1348 = vst.msk [vmem:[%s606_s12] sm:$0xf] %vm1347_vm4, %v1339_v24  ;;  %1349 = vst.msk [vmem:[%s606_s12 + $0x4] sm:$0xf] %vm1347_vm4, %v1340_v5 }
 0x232   : > { %1350 = vst.msk [vmem:[%s606_s12 + $0x8] sm:$0xf] %vm1347_vm4, %v1341_v4  ;;  %1351 = vst.msk [vmem:[%s606_s12 + $0xc] sm:$0xf] %vm1347_vm4, %v1342_v34 }
 0x233   : > { %1352 = vst.msk [vmem:[%s606_s12 + $0x10] sm:$0xf] %vm1347_vm4, %v1343_v49  ;;  %1353 = vst.msk [vmem:[%s606_s12 + $0x14] sm:$0xf] %vm1347_vm4, %v1344_v42 }
 0x234   : > { %1354 = vst.msk [vmem:[%s606_s12 + $0x18] sm:$0xf] %vm1347_vm4, %v1345_v35  ;;  %1355 = vst.msk [vmem:[%s606_s12 + $0x1c] sm:$0xf] %vm1347_vm4, %v1346_v43 }
 0x235 PF: > { %p14_p9 = scmp.ge.s32.totalorder %s1652_s28, 4   ;;  %s2160_s24 = smov %s1587_s25 }
 0x236   : > { %s2161_s25 = smov %s1661_s8  ;;  %s2162_s26 = smov %s1652_s28 }
 0x237   :  { %16 = sbr.rel (!%p14_p9) target bundleno = 2 (0x2), region = 131 }

// kernel: _lambda_.16
= control target key start
LH: loop header
LB: loop body
LE: loop exit
PB: predicated region body
PF: predicated region fallthrough
CT: control target
= control target key end

     0   :  { %s496_s12 = smov 0   ;;  %s537_s0 = inlined_call_operand.vmem [shape: bf16[128,16], index: 0, kind: input, shape index: {}]   ;;  %s538_s1 = inlined_call_operand.vmem [shape: bf16[16,72], index: 1, kind: input, shape index: {}]   ;;  %s539_s2 = inlined_call_operand.vmem [shape: f32[1,72], index: 2, kind: input, shape index: {}]   ;;  %s540_s3 = inlined_call_operand.vmem [shape: bf16[128,72], index: 3, kind: output, shape index: {}]  }
   0x1 LB: > { %s401_s13 = sadd.s32 4294967295, %s474_s12   ;;  %p405_p0 = scmp.ge.s32.totalorder %s474_s12, 1  ;;  %s474_s12 = sphi %s496_s12, %s13_s12  }
   0x2   : > { %p138_p1 = scmp.lt.s32.totalorder %s474_s12, 3 }
   0x4   : > { %p139_p2 = pnand %p405_p0, %p138_p1 }
   0x5   : > { %s406_s16 = sshll.u32 (!%p139_p2), %s401_s13, 3 }
   0x6   : > { %142 = sbr.rel (%p139_p2) target bundleno = 222 (0xde), region = 32  ;;  %p163_p3 = scmp.lt.s32.totalorder (!%p139_p2), %s406_s16, 15 }
   0xb   : > { %v463_v0 = vld [vmem:[%s538_s1] sm:$0xff]   ;;  %s542_s16 = smov (!%p163_p3, %s406_s16), 15  ;;  %vm218_vm0 = vcmask 130048   ;;  %vm336_vm1 = vcmask 584704  }
   0xc   : > { %443 = vmatprep.subr.bf16.mxu0 %v463_v0  ;;  %453 = vmatprep.subr.bf16.mxu1 %v463_v0  ;;  %s407_s17 = sshll.u32 %s542_s16, 2  ;;  %v410_v5 = vld [vmem:[%s539_s2] ss:$0 sm:$0xff] }
   0xd   : > { %444 = vmatpush3.bf16.msra.mxu0 %v463_v0  ;;  %454 = vmatpush3.bf16.msra.mxu1 %v463_v0  ;;  %s166_s20 = scalar_lea.vmem %s537_s0, %s407_s17  ;;  %s516_s25 = scalar_lea.vmem %s540_s3, %s407_s17 }
   0xe   : > { %v464_v1 = vld [vmem:[%s166_s20] sm:$0xff]   ;;  %v465_v2 = vld [vmem:[%s166_s20 + $0x10] sm:$0xff]   ;;  %v466_v3 = vld [vmem:[%s166_s20 + $0x8] sm:$0xff]  }
   0xf   : > { %445 = vmatprep.mubr.msk.bf16.mxu0 %vm218_vm0, %v464_v1  ;;  %449 = vmatprep.mubr.msk.bf16.mxu1 %vm218_vm0, %v465_v2  ;;  %v467_v4 = vld [vmem:[%s166_s20 + $0x18] sm:$0xff]  }
  0x10   : > { %446 = vmatmul.mubr.msk.bf16.vlgmr.msra.gmra.mxu0 %vm218_vm0, %v466_v3  ;;  %450 = vmatmul.mubr.msk.bf16.vlgmr.msra.gmra.mxu1 %vm218_vm0, %v467_v4 }
  0xd0   : > { %v447_v6 = vpop.f32.mrf.mxu0  ;;  %v451_v8 = vpop.f32.mrf.mxu1 }
  0xd1   : > { %v274_v7 = vadd.f32 %v447_v6, %v410_v5  ;;  %v290_v9 = vadd.f32 %v451_v8, %v410_v5 }
  0xd2   : > { %v265_v10 = vpop.f32.mrf.mxu0  ;;  %v281_v13 = vpop.f32.mrf.mxu1 }
  0xd3   : > { %v298_v11 = vmax.f32 %v274_v7, 0.0  ;;  %v266_v12 = vadd.f32 %v410_v5, %v265_v10  ;;  %v302_v14 = vmax.f32 %v290_v9, 0.0  ;;  %v282_v15 = vadd.f32 %v410_v5, %v281_v13 }
  0xd4   : > { %v448_v16 = vpop.f32.mrf.mxu0  ;;  %v452_v20 = vpop.f32.mrf.mxu1 }
  0xd5   : > { %v432_v17 = vpack.c.bf16 %v298_v11, %v298_v11  ;;  %v296_v18 = vmax.f32 %v266_v12, 0.0  ;;  %v277_v19 = vadd.f32 %v448_v16, %v410_v5  ;;  %v436_v21 = vpack.c.bf16 %v302_v14, %v302_v14 }
  0xd6   : > { %v300_v22 = vmax.f32 %v282_v15, 0.0  ;;  %v293_v23 = vadd.f32 %v452_v20, %v410_v5  ;;  %v268_v24 = vpop.f32.mrf.mxu0  ;;  %v284_v28 = vpop.f32.mrf.mxu1 }
  0xd7   : > { %339 = vst.msk [vmem:[%s516_s25 + $0x8] sm:$0xf] %vm336_vm1, %v432_v17  ;;  %v430_v25 = vpack.c.bf16 %v296_v18, %v296_v18  ;;  %v299_v26 = vmax.f32 %v277_v19, 0.0  ;;  %v269_v27 = vadd.f32 %v410_v5, %v268_v24  ;;  %343 = vst.msk [vmem:[%s516_s25 + $0x18] sm:$0xf] %vm336_vm1, %v436_v21  ;;  %v285_v31 = vadd.f32 %v410_v5, %v284_v28 }
  0xd8   : > { %v434_v29 = vpack.c.bf16 %v300_v22, %v300_v22  ;;  %v303_v30 = vmax.f32 %v293_v23, 0.0 }
  0xd9   : > { %337 = vst.msk [vmem:[%s516_s25] sm:$0xf] %vm336_vm1, %v430_v25  ;;  %v433_v32 = vpack.c.bf16 %v299_v26, %v299_v26  ;;  %v297_v33 = vmax.f32 %v269_v27, 0.0  ;;  %v301_v35 = vmax.f32 %v285_v31, 0.0 }
  0xda   : > { %341 = vst.msk [vmem:[%s516_s25 + $0x10] sm:$0xf] %vm336_vm1, %v434_v29  ;;  %v437_v34 = vpack.c.bf16 %v303_v30, %v303_v30 }
  0xdb   : > { %340 = vst.msk [vmem:[%s516_s25 + $0xc] sm:$0xf] %vm336_vm1, %v433_v32  ;;  %v431_v36 = vpack.c.bf16 %v297_v33, %v297_v33  ;;  %v435_v37 = vpack.c.bf16 %v301_v35, %v301_v35 }
  0xdc   : > { %344 = vst.msk [vmem:[%s516_s25 + $0x1c] sm:$0xf] %vm336_vm1, %v437_v34 }
  0xdd   : > { %338 = vst.msk [vmem:[%s516_s25 + $0x4] sm:$0xf] %vm336_vm1, %v431_v36  ;;  %342 = vst.msk [vmem:[%s516_s25 + $0x14] sm:$0xf] %vm336_vm1, %v435_v37 }
  0xde PF: > { %s13_s12 = sadd.s32 1, %s474_s12  }
  0xdf   : > { %p10_p4 = scmp.ge.s32.totalorder %s13_s12, 4  }
  0xe1   :  { %12 = sbr.rel (!%p10_p4) target bundleno = 1 (0x1), region = 62 }

// kernel: _lambda_.17
= control target key start
LH: loop header
LB: loop body
LE: loop exit
PB: predicated region body
PF: predicated region fallthrough
CT: control target
= control target key end

     0   :  { %s734_s12 = smov 0   ;;  %s736_s13 = smov 0   ;;  %s938_s0 = inlined_call_operand.vmem [shape: bf16[4,2,5,5,72], index: 0, kind: input, shape index: {}]   ;;  %s939_s1 = inlined_call_operand.vmem [shape: f32[3,3,72], index: 1, kind: input, shape index: {}]   ;;  %s940_s2 = inlined_call_operand.vmem [shape: f32[1,72], index: 2, kind: input, shape index: {}]   ;;  %s941_s3 = inlined_call_operand.vmem [shape: bf16[2,4,4,72], index: 3, kind: output, shape index: {}]  }
   0x1   :  { %s738_s14 = smov 0  }
   0x2 LB: > { %s608_s15 = sadd.s32 4294967295, %s712_s14   ;;  %s751_s16 = sadd.s32 1, %s712_s14   ;;  %s712_s14 = sphi %s738_s14, %s945_s14   ;;  %s708_s13 = sphi %s736_s13, %s944_s13   ;;  %s704_s12 = sphi %s734_s12, %s943_s12  }
   0x3   : > { %s17_s17 = ssub.s32 %s712_s14, %s751_s16  ;;  %s20_s18 = sadd.s32 1, %s708_s13 }
   0x4   : > { %p18_p0 = scmp.eq.s32.totalorder %s17_s17, 0  ;;  %p27_p1 = scmp.ne.s32.totalorder %s708_s13, %s704_s12 }
   0x5   : > { %p28_p2 = scmp.eq.s32.totalorder %s712_s14, 0  ;;  %p611_p4 = scmp.ge.s32.totalorder %s712_s14, 2 }
   0x6   : > { %s760_s19 = scalar_select %p18_p0, %s708_s13, %s20_s18  }
   0x7   : > { %p29_p3 = por %p28_p2, %p27_p1  ;;  %127 = sbr.rel (%p611_p4) target bundleno = 23 (0x17), region = 24 }
   0xc   : > { %130 = sbr.rel (!%p29_p3) target bundleno = 23 (0x17), region = 28  ;;  %s132_s20 = sand.u32 (%p29_p3), 1, %s708_s13  }
   0xd   : > { %s664_s21 = smul.u32 (%p29_p3), 20, %s712_s14 }
   0xe   : > { %s663_s22 = smul.u32 (%p29_p3), 80, %s132_s20 }
   0xf   : > { %s137_s25 = scalar_lea.vmem (%p29_p3), %s938_s0, %s664_s21 }
  0x10   : > { %v154_v0 = vld [vmem:[%s137_s25] sm:$0xff] (%p29_p3)   ;;  %v158_v1 = vld [vmem:[%s137_s25 + $0x8] sm:$0xff] (%p29_p3)   ;;  %v162_v2 = vld [vmem:[%s137_s25 + $0x10] sm:$0xf] (%p29_p3)  ;;  %s134_s26 = scalar_lea.vmem (%p29_p3), [#allocation2], %s663_s22 }
  0x11   : > { %155 = vst [vmem:[%s134_s26] sm:$0xff] %v154_v0   ;;  %159 = vst [vmem:[%s134_s26 + $0x8] sm:$0xff] %v158_v1   ;;  %v164_v3 = vld [vmem:[%s137_s25 + $0x28] sm:$0xff]   ;;  %v168_v4 = vld [vmem:[%s137_s25 + $0x30] sm:$0xff]  }
  0x12   : > { %163 = vst [vmem:[%s134_s26 + $0x10] sm:$0xf] %v162_v2  ;;  %v172_v5 = vld [vmem:[%s137_s25 + $0x38] sm:$0xf]  ;;  %165 = vst [vmem:[%s134_s26 + $0x14] sm:$0xff] %v164_v3   ;;  %v174_v6 = vld [vmem:[%s137_s25 + $0x50] sm:$0xff]  }
  0x13   : > { %169 = vst [vmem:[%s134_s26 + $0x1c] sm:$0xff] %v168_v4   ;;  %173 = vst [vmem:[%s134_s26 + $0x24] sm:$0xf] %v172_v5  ;;  %v178_v7 = vld [vmem:[%s137_s25 + $0x58] sm:$0xff]   ;;  %v182_v8 = vld [vmem:[%s137_s25 + $0x60] sm:$0xf] }
  0x14   : > { %175 = vst [vmem:[%s134_s26 + $0x28] sm:$0xff] %v174_v6   ;;  %179 = vst [vmem:[%s134_s26 + $0x30] sm:$0xff] %v178_v7   ;;  %v184_v9 = vld [vmem:[%s137_s25 + $0x78] sm:$0xff]   ;;  %v188_v10 = vld [vmem:[%s137_s25 + $0x80] sm:$0xff]  }
  0x15   : > { %183 = vst [vmem:[%s134_s26 + $0x38] sm:$0xf] %v182_v8  ;;  %v192_v11 = vld [vmem:[%s137_s25 + $0x88] sm:$0xf]  ;;  %185 = vst [vmem:[%s134_s26 + $0x3c] sm:$0xff] %v184_v9  }
  0x16   : > { %189 = vst [vmem:[%s134_s26 + $0x44] sm:$0xff] %v188_v10   ;;  %193 = vst [vmem:[%s134_s26 + $0x4c] sm:$0xf] %v192_v11 }
  0x17 PF: > { %p613_p5 = scmp.ge.s32.totalorder %s712_s14, 1  ;;  %p256_p6 = scmp.lt.s32.totalorder %s712_s14, 3 }
  0x19   : > { %p257_p7 = pnand %p613_p5, %p256_p6 }
  0x1a   : > { %s263_s27 = sand.u32 (!%p257_p7), 1, %s704_s12   ;;  %p863_p8 = scmp.lt.s32.totalorder (!%p257_p7), %s608_s15, 1 }
  0x1b   : > { %260 = sbr.rel (%p257_p7) target bundleno = 82 (0x52), region = 69 }
  0x1c   : > { %s665_s28 = smul.u32 (!%p257_p7), 80, %s263_s27 }
  0x1e   : > { %s786_s8 = scalar_lea.vmem (!%p257_p7), [#allocation2], %s665_s28 }
  0x20   : > { %v774_v12 = vld [vmem:[%s939_s1] ss:$0 sm:$0xff]  ;;  %v779_v13 = vld [vmem:[%s939_s1 + $0x1] ss:$0 sm:$0xff]  ;;  %v784_v14 = vld [vmem:[%s939_s1 + $0x2] ss:$0 sm:$0xff] }
  0x21   : > { %v291_v15 = vld [vmem:[%s786_s8] sm:$0x3]  ;;  %v617_v16 = vld [vmem:[%s786_s8 + $0x14] sm:$0x3]  ;;  %v623_v21 = vld [vmem:[%s786_s8 + $0x28] sm:$0x3] }
  0x22   : > { %v793_v17 = vld [vmem:[%s939_s1 + $0x4] ss:$0 sm:$0xff]  ;;  %v295_v18 = vunpack.c.l.bf16 %v291_v15  ;;  %v317_v19 = vunpack.c.l.bf16 %v617_v16  ;;  %v334_v20 = vld [vmem:[%s786_s8] sm:$0x7]  ;;  %v629_v22 = vld [vmem:[%s786_s8 + $0x3c] sm:$0x3]  ;;  %v372_v24 = vunpack.c.l.bf16 %v623_v21 }
  0x23   : > { %v338_v23 = vunpack.c.l.bf16 %v334_v20  ;;  %v801_v25 = vld [vmem:[%s939_s1 + $0x5] ss:$0 sm:$0xff]  ;;  %v635_v26 = vld [vmem:[%s786_s8 + $0x28] sm:$0x7]  ;;  %v647_v28 = vld [vmem:[%s786_s8 + $0x18] sm:$0x3]  ;;  %v395_v31 = vunpack.c.l.bf16 %v629_v22 }
  0x24   : > { %v641_v27 = vld [vmem:[%s786_s8 + $0x4] sm:$0x3]  ;;  %v304_v29 = vmul.f32 %v774_v12, %v295_v18  ;;  %v326_v30 = vmul.f32 %v779_v13, %v317_v19  ;;  %v416_v32 = vunpack.c.l.bf16 %v635_v26  ;;  %v811_v33 = vld [vmem:[%s939_s1 + $0x6] ss:$0 sm:$0xff]  ;;  %v817_v35 = vld [vmem:[%s939_s1 + $0xa] ss:$0 sm:$0xff]  ;;  %v382_v42 = vmul.f32 %v793_v17, %v372_v24 }
  0x25   : > { %v653_v34 = vld [vmem:[%s786_s8 + $0x4] sm:$0x7]  ;;  %v347_v36 = vmul.f32 %v784_v14, %v338_v23  ;;  %v450_v37 = vunpack.c.l.bf16 %v641_v27  ;;  %v618_v39 = vld [vmem:[%s786_s8 + $0x18] sm:$0x3]  ;;  %v473_v44 = vunpack.c.l.bf16 %v647_v28  ;;  %v624_v46 = vld [vmem:[%s786_s8 + $0x2c] sm:$0x3]  ;;  %v404_v54 = vmul.f32 %v801_v25, %v395_v31 }
  0x26   : > { %v292_v38 = vld [vmem:[%s786_s8 + $0x4] sm:$0x3]  ;;  %v330_v41 = vadd.f32 %v326_v30, %v304_v29  ;;  %v827_v43 = vld [vmem:[%s939_s1 + $0x8] ss:$0 sm:$0xff]  ;;  %v494_v45 = vunpack.c.l.bf16 %v653_v34  ;;  %v630_v47 = vld [vmem:[%s786_s8 + $0x40] sm:$0x3]  ;;  %v425_v49 = vmul.f32 %v811_v33, %v416_v32  ;;  %v318_v52 = vunpack.c.l.bf16 %v618_v39 }
  0x27   : > { %v335_v40 = vld [vmem:[%s786_s8 + $0x4] sm:$0x7]  ;;  %v355_v48 = vrot.slane %v347_v36, 1  ;;  %v835_v50 = vld [vmem:[%s939_s1 + $0x9] ss:$0 sm:$0xff]  ;;  %v296_v51 = vunpack.c.l.bf16 %v292_v38  ;;  %v373_v57 = vunpack.c.l.bf16 %v624_v46  ;;  %v396_v61 = vunpack.c.l.bf16 %v630_v47  ;;  %s947_s15 = smov (!%p863_p8, %s608_s15), 1 }
  0x28   : > { %v636_v53 = vld [vmem:[%s786_s8 + $0x2c] sm:$0x7]  ;;  %v840_v55 = vmul.f32 %v817_v35, %v494_v45  ;;  %v339_v56 = vunpack.c.l.bf16 %v335_v40  ;;  %v327_v60 = vmul.f32 %v779_v13, %v318_v52  ;;  %v654_v62 = vld [vmem:[%s786_s8 + $0x8] sm:$0x7]  ;;  %v460_v63 = vmul.f32 %v827_v43, %v450_v37  ;;  %v619_v4 = vld [vmem:[%s786_s8 + $0x1c] sm:$0x3] }
  0x29   : > { %v363_v58 = vadd.f32 %v355_v48, %v330_v41  ;;  %v305_v59 = vmul.f32 %v774_v12, %v296_v51  ;;  %v482_v0 = vmul.f32 %v835_v50, %v473_v44  ;;  %v417_v2 = vunpack.c.l.bf16 %v636_v53  ;;  %v293_v3 = vld [vmem:[%s786_s8 + $0x8] sm:$0x3]  ;;  %v648_v10 = vld [vmem:[%s786_s8 + $0x1c] sm:$0x3]  ;;  %v625_v24 = vld [vmem:[%s786_s8 + $0x30] sm:$0x3] }
  0x2a   : > { %v348_v1 = vmul.f32 %v784_v14, %v339_v56  ;;  %v433_v6 = vrot.slane %v425_v49, 1  ;;  %v511_v7 = vrot.slane %v840_v55, 1  ;;  %v642_v9 = vld [vmem:[%s786_s8 + $0x8] sm:$0x3]  ;;  %v383_v15 = vmul.f32 %v793_v17, %v373_v57  ;;  %v631_v26 = vld [vmem:[%s786_s8 + $0x44] sm:$0x3] }
  0x2b   : > { %v386_v5 = vadd.f32 %v382_v42, %v363_v58  ;;  %v331_v8 = vadd.f32 %v327_v60, %v305_v59  ;;  %v426_v16 = vmul.f32 %v811_v33, %v417_v2  ;;  %v495_v18 = vunpack.c.l.bf16 %v654_v62  ;;  %v336_v19 = vld [vmem:[%s786_s8 + $0x8] sm:$0x7]  ;;  %v637_v31 = vld [vmem:[%s786_s8 + $0x30] sm:$0x7]  ;;  %v655_v47 = vld [vmem:[%s786_s8 + $0xc] sm:$0x7] }
  0x2c   : > { %v356_v11 = vrot.slane %v348_v1, 1  ;;  %v405_v21 = vmul.f32 %v801_v25, %v396_v61  ;;  %v297_v22 = vunpack.c.l.bf16 %v293_v3  ;;  %v319_v23 = vunpack.c.l.bf16 %v619_v4  ;;  %v294_v48 = vld [vmem:[%s786_s8 + $0xc] sm:$0x3]  ;;  %v649_v55 = vld [vmem:[%s786_s8 + $0x20] sm:$0x3]  ;;  %s662_s14 = sshll.u32 %s947_s15, 3 }
  0x2d   : > { %v408_v20 = vadd.f32 %v404_v54, %v386_v5  ;;  %v451_v28 = vunpack.c.l.bf16 %v642_v9  ;;  %v474_v29 = vunpack.c.l.bf16 %v648_v10  ;;  %v504_v30 = vmul.f32 %v817_v35, %v495_v18  ;;  %v643_v54 = vld [vmem:[%s786_s8 + $0xc] sm:$0x3]  ;;  %v620_v60 = vld [vmem:[%s786_s8 + $0x20] sm:$0x3]  ;;  %v632_v9 = vld [vmem:[%s786_s8 + $0x48] sm:$0x3]  ;;  %s905_s30 = scalar_lea.vmem %s941_s3, %s662_s14 }
  0x2e   : > { %v364_v27 = vadd.f32 %v356_v11, %v331_v8  ;;  %v306_v34 = vmul.f32 %v774_v12, %v297_v22  ;;  %v328_v36 = vmul.f32 %v779_v13, %v319_v23  ;;  %v340_v37 = vunpack.c.l.bf16 %v336_v19  ;;  %v888_v61 = vld [vmem:[%s940_s2] ss:$0 sm:$0xff]  ;;  %v337_v3 = vld [vmem:[%s786_s8 + $0xc] sm:$0x7]  ;;  %v638_v22 = vld [vmem:[%s786_s8 + $0x34] sm:$0x7] }
  0x2f   : > { %v441_v32 = vadd.f32 %v433_v6, %v408_v20  ;;  %v434_v39 = vrot.slane %v426_v16, 1  ;;  %v374_v40 = vunpack.c.l.bf16 %v625_v24  ;;  %v397_v41 = vunpack.c.l.bf16 %v631_v26 }
  0x30   : > { %v387_v38 = vadd.f32 %v383_v15, %v364_v27  ;;  %v332_v44 = vadd.f32 %v328_v36, %v306_v34  ;;  %v349_v45 = vmul.f32 %v784_v14, %v340_v37  ;;  %v418_v46 = vunpack.c.l.bf16 %v637_v31  ;;  %v656_v36 = vld [vmem:[%s786_s8 + $0x10] sm:$0x7] }
  0x31   : > { %v464_v42 = vadd.f32 %v460_v63, %v441_v32  ;;  %vm542_vm0 = vcmask 582656   ;;  %v461_v51 = vmul.f32 %v827_v43, %v451_v28  ;;  %v483_v52 = vmul.f32 %v835_v50, %v474_v29 }
  0x32   : > { %v409_v49 = vadd.f32 %v405_v21, %v387_v38  ;;  %v512_v53 = vrot.slane %v504_v30, 1  ;;  %v357_v57 = vrot.slane %v349_v45, 1  ;;  %v384_v58 = vmul.f32 %v793_v17, %v374_v40  ;;  %v650_v45 = vld [vmem:[%s786_s8 + $0x24] sm:$0x3] }
  0x33   : > { %v486_v56 = vadd.f32 %v482_v0, %v464_v42  ;;  %v427_v59 = vmul.f32 %v811_v33, %v418_v46  ;;  %v406_v63 = vmul.f32 %v801_v25, %v397_v41  ;;  %v496_v1 = vunpack.c.l.bf16 %v655_v47  ;;  %v626_v0 = vld [vmem:[%s786_s8 + $0x34] sm:$0x3] }
  0x34   : > { %v442_v62 = vadd.f32 %v434_v39, %v409_v49  ;;  %v298_v2 = vunpack.c.l.bf16 %v294_v48  ;;  %v365_v5 = vadd.f32 %v357_v57, %v332_v44  ;;  %v452_v6 = vunpack.c.l.bf16 %v643_v54 }
  0x35   : > { %v519_v4 = vadd.f32 %v511_v7, %v486_v56  ;;  %v475_v8 = vunpack.c.l.bf16 %v649_v55  ;;  %v435_v11 = vrot.slane %v427_v59, 1  ;;  %v320_v16 = vunpack.c.l.bf16 %v620_v60 }
  0x36   : > { %v465_v10 = vadd.f32 %v461_v51, %v442_v62  ;;  %v307_v15 = vmul.f32 %v774_v12, %v298_v2  ;;  %v388_v19 = vadd.f32 %v384_v58, %v365_v5  ;;  %v341_v20 = vunpack.c.l.bf16 %v337_v3 }
  0x37   : > { %v530_v18 = vadd.f32 %v888_v61, %v519_v4  ;;  %v375_v21 = vunpack.c.l.bf16 %v626_v0  ;;  %v505_v7 = vmul.f32 %v817_v35, %v496_v1  ;;  %v329_v24 = vmul.f32 %v779_v13, %v320_v16  ;;  %v644_v13 = vld [vmem:[%s786_s8 + $0x10] sm:$0x3] }
  0x38   : > { %v487_v23 = vadd.f32 %v483_v52, %v465_v10  ;;  %v398_v26 = vunpack.c.l.bf16 %v632_v9  ;;  %v410_v28 = vadd.f32 %v406_v63, %v388_v19  ;;  %v462_v12 = vmul.f32 %v827_v43, %v452_v6 }
  0x39   : > { %v534_v27 = vmax.f32 %v530_v18, 0.0  ;;  %v350_v29 = vmul.f32 %v784_v14, %v341_v20  ;;  %v484_v31 = vmul.f32 %v835_v50, %v475_v8  ;;  %v333_v32 = vadd.f32 %v329_v24, %v307_v15 }
  0x3a   : > { %v520_v30 = vadd.f32 %v512_v53, %v487_v23  ;;  %v419_v34 = vunpack.c.l.bf16 %v638_v22  ;;  %v443_v38 = vadd.f32 %v435_v11, %v410_v28  ;;  %v385_v40 = vmul.f32 %v793_v17, %v375_v21 }
  0x3b   : > { %v538_v37 = vpack.c.bf16 %v534_v27, %v534_v27  ;;  %v358_v39 = vrot.slane %v350_v29, 1  ;;  %v513_v41 = vrot.slane %v505_v7, 1  ;;  %v407_v42 = vmul.f32 %v801_v25, %v398_v26 }
  0x3c   : > { %v531_v14 = vadd.f32 %v888_v61, %v520_v30  ;;  %v428_v44 = vmul.f32 %v811_v33, %v419_v34  ;;  %v466_v46 = vadd.f32 %v462_v12, %v443_v38  ;;  %v453_v48 = vunpack.c.l.bf16 %v644_v13 }
  0x3d   : > { %543 = vst.msk [vmem:[%s905_s30] sm:$0x3] %vm542_vm0, %v538_v37  ;;  %v366_v47 = vadd.f32 %v358_v39, %v333_v32  ;;  %v497_v49 = vunpack.c.l.bf16 %v656_v36  ;;  %v476_v17 = vunpack.c.l.bf16 %v650_v45 }
  0x3e   : > { %v535_v51 = vmax.f32 %v531_v14, 0.0  ;;  %v488_v52 = vadd.f32 %v484_v31, %v466_v46  ;;  %v436_v54 = vrot.slane %v428_v44, 1  ;;  %v463_v25 = vmul.f32 %v827_v43, %v453_v48 }
  0x3f   : > { %v389_v53 = vadd.f32 %v385_v40, %v366_v47  ;;  %v506_v33 = vmul.f32 %v817_v35, %v497_v49  ;;  %v485_v60 = vmul.f32 %v835_v50, %v476_v17 }
  0x40   : > { %v539_v55 = vpack.c.bf16 %v535_v51, %v535_v51  ;;  %v521_v56 = vadd.f32 %v513_v41, %v488_v52 }
  0x41   : > { %v411_v57 = vadd.f32 %v407_v42, %v389_v53  ;;  %v514_v1 = vrot.slane %v506_v33, 1 }
  0x42   : > { %544 = vst.msk [vmem:[%s905_s30 + $0x2] sm:$0x3] %vm542_vm0, %v539_v55  ;;  %v532_v58 = vadd.f32 %v888_v61, %v521_v56 }
  0x43   : > { %v444_v59 = vadd.f32 %v436_v54, %v411_v57 }
  0x44   : > { %v536_v62 = vmax.f32 %v532_v58, 0.0 }
  0x45   : > { %v467_v63 = vadd.f32 %v463_v25, %v444_v59 }
  0x46   : > { %v540_v2 = vpack.c.bf16 %v536_v62, %v536_v62 }
  0x47   : > { %v489_v3 = vadd.f32 %v485_v60, %v467_v63 }
  0x48   : > { %545 = vst.msk [vmem:[%s905_s30 + $0x4] sm:$0x3] %vm542_vm0, %v540_v2 }
  0x49   : > { %v522_v0 = vadd.f32 %v514_v1, %v489_v3 }
  0x4b   : > { %v533_v43 = vadd.f32 %v888_v61, %v522_v0 }
  0x4d   : > { %v537_v4 = vmax.f32 %v533_v43, 0.0 }
  0x4f   : > { %v541_v5 = vpack.c.bf16 %v537_v4, %v537_v4 }
  0x51   : > { %546 = vst.msk [vmem:[%s905_s30 + $0x6] sm:$0x3] %vm542_vm0, %v541_v5 }
  0x52 PF: > { %p10_p9 = scmp.ge.s32.totalorder %s751_s16, 4   ;;  %s943_s12 = smov %s708_s13 }
  0x53   : > { %s944_s13 = smov %s760_s19  ;;  %s945_s14 = smov %s751_s16 }
  0x54   :  { %12 = sbr.rel (!%p10_p9) target bundleno = 2 (0x2), region = 115 }

// kernel: _lambda_.18
= control target key start
LH: loop header
LB: loop body
LE: loop exit
PB: predicated region body
PF: predicated region fallthrough
CT: control target
= control target key end

     0   :  { %vm79_vm0 = vcmask 1043456   ;;  %vm72_vm1 = vcmask 588800   ;;  %vm148_vm2 = vcmask 191488   ;;  %s260_s1 = inlined_call_operand.vmem [shape: bf16[72,24], index: 1, kind: input, shape index: {}]   ;;  %s261_s0 = inlined_call_operand.vmem [shape: bf16[32,72], index: 0, kind: input, shape index: {}]   ;;  %s262_s2 = inlined_call_operand.vmem [shape: f32[1,24], index: 2, kind: input, shape index: {}]   ;;  %s263_s3 = inlined_call_operand.vmem [shape: bf16[32,24], index: 3, kind: output, shape index: {}]  }
   0x1   :  { %v197_v0 = vld [vmem:[%s260_s1 + $0x20] ss:$0 sps:$4 sm:$0xff]   ;;  %v198_v1 = vld [vmem:[%s260_s1 + $0x18] sm:$0xff]   ;;  %v199_v3 = vld [vmem:[%s260_s1 + $0x10] sm:$0xff]  }
   0x2   :  { %196 = vmatprep.subr.msk.bf16.mxu0 %vm79_vm0, %v197_v0  ;;  %v81_v2 = vsel %vm79_vm0, %v197_v0, 0  ;;  %v202_v4 = vld [vmem:[%s261_s0] sm:$0xff]   ;;  %v200_v5 = vld [vmem:[%s260_s1 + $0x8] sm:$0xff]  }
   0x3   :  { %183 = vmatpush3.bf16.msra.mxu0 %v81_v2  ;;  %192 = vmatprep.mubr.msk.bf16.mxu0 %vm72_vm1, %v202_v4  ;;  %v201_v6 = vld [vmem:[%s260_s1] sm:$0xff]   ;;  %v203_v7 = vld [vmem:[%s261_s0 + $0x8] sm:$0xff]  }
   0x4   :  { %184 = vmatprep.subr.bf16.mxu0 %v198_v1  ;;  %v157_v8 = vld [vmem:[%s262_s2] ss:$0 sm:$0xff] }
   0x7   :  { %185 = vmatpush3.bf16.msra.mxu0 %v198_v1 }
   0x8   :  { %186 = vmatprep.subr.bf16.mxu0 %v199_v3 }
   0xb   :  { %187 = vmatpush3.bf16.msra.mxu0 %v199_v3 }
   0xc   :  { %188 = vmatprep.subr.bf16.mxu0 %v200_v5 }
   0xf   :  { %189 = vmatpush3.bf16.msra.mxu0 %v200_v5 }
  0x10   :  { %190 = vmatprep.subr.bf16.mxu0 %v201_v6 }
  0x13   :  { %191 = vmatpush3.bf16.msra.mxu0 %v201_v6 }
  0x16   :  { %193 = vmatmul.mubr.msk.bf16.vlgmr.msra.gmra.mxu0 %vm72_vm1, %v203_v7 }
  0xd6   :  { %v194_v9 = vpop.f32.mrf.mxu0 }
  0xd7   :  { %v126_v10 = vadd.f32 %v194_v9, %v157_v8 }
  0xd8   :  { %v117_v11 = vpop.f32.mrf.mxu0 }
  0xd9   :  { %v173_v12 = vpack.c.bf16 %v126_v10, %v126_v10  ;;  %v118_v13 = vadd.f32 %v157_v8, %v117_v11 }
  0xda   :  { %v195_v14 = vpop.f32.mrf.mxu0 }
  0xdb   :  { %151 = vst.msk [vmem:[%s263_s3 + $0x8] sm:$0xf] %vm148_vm2, %v173_v12  ;;  %v171_v15 = vpack.c.bf16 %v118_v13, %v118_v13  ;;  %v129_v16 = vadd.f32 %v195_v14, %v157_v8 }
  0xdc   :  { %v120_v17 = vpop.f32.mrf.mxu0 }
  0xdd   :  { %149 = vst.msk [vmem:[%s263_s3] sm:$0xf] %vm148_vm2, %v171_v15  ;;  %v174_v18 = vpack.c.bf16 %v129_v16, %v129_v16  ;;  %v121_v19 = vadd.f32 %v157_v8, %v120_v17 }
  0xdf   :  { %152 = vst.msk [vmem:[%s263_s3 + $0xc] sm:$0xf] %vm148_vm2, %v174_v18  ;;  %v172_v20 = vpack.c.bf16 %v121_v19, %v121_v19 }
  0xe1   :  { %150 = vst.msk [vmem:[%s263_s3 + $0x4] sm:$0xf] %vm148_vm2, %v172_v20 }

// kernel: _lambda_.20
= control target key start
LH: loop header
LB: loop body
LE: loop exit
PB: predicated region body
PF: predicated region fallthrough
CT: control target
= control target key end

     0   :  { %s494_s12 = smov 0   ;;  %s610_s0 = inlined_call_operand.vmem [shape: bf16[2,4,4,88], index: 0, kind: input, shape index: {}]   ;;  %s611_s1 = inlined_call_operand.vmem [shape: f32[3,3,88], index: 1, kind: input, shape index: {}]   ;;  %s612_s2 = inlined_call_operand.vmem [shape: f32[1,88], index: 2, kind: input, shape index: {}]   ;;  %s613_s3 = inlined_call_operand.vmem [shape: bf16[2,4,4,88], index: 3, kind: output, shape index: {}]  }
   0x1 LB: > { %s427_s13 = sadd.s32 4294967295, %s471_s12   ;;  %p431_p0 = scmp.ge.s32.totalorder %s471_s12, 1  ;;  %s471_s12 = sphi %s494_s12, %s13_s12  }
   0x2   : > { %p137_p1 = scmp.lt.s32.totalorder %s471_s12, 3 }
   0x4   : > { %p138_p2 = pnand %p431_p0, %p137_p1 }
   0x5   : > { %p161_p3 = scmp.lt.s32.totalorder (!%p138_p2), %s427_s13, 1 }
   0x6   : > { %141 = sbr.rel (%p138_p2) target bundleno = 55 (0x37), region = 32 }
   0xb   : > { %vm171_vm0 = vcmask 717824   ;;  %v473_v0 = vmov 0.0   ;;  %s615_s13 = smov (!%p161_p3, %s427_s13), 1  ;;  %vm187_vm1 = vcmask 715776   ;;  %v513_v1 = vld [vmem:[%s611_s1] ss:$0 sm:$0xff] }
   0xc   : > { %172 = vst.msk [vmem:[#allocation2] sm:$0x3f] %vm171_vm0, %v473_v0  ;;  %173 = vst.msk [vmem:[#allocation2 + $0x8] sm:$0x3f] %vm171_vm0, %v473_v0  ;;  %s454_s14 = sshll.u32 %s615_s13, 3  ;;  %vm367_vm2 = vcmask 713728  }
   0xd   : > { %174 = vst.msk [vmem:[#allocation2 + $0x10] sm:$0x3f] %vm171_vm0, %v473_v0  ;;  %175 = vst.msk [vmem:[#allocation2 + $0x18] sm:$0x3f] %vm171_vm0, %v473_v0  ;;  %s165_s17 = scalar_lea.vmem %s610_s0, %s454_s14  ;;  %v518_v2 = vld [vmem:[%s611_s1 + $0x1] ss:$0 sm:$0xff]  ;;  %s170_s16 = scalar_lea.vmem %s613_s3, %s454_s14 }
   0xe   : > { %176 = vst.msk [vmem:[#allocation2 + $0x20] sm:$0x3f] %vm171_vm0, %v473_v0  ;;  %177 = vst.msk [vmem:[#allocation2 + $0x28] sm:$0x3f] %vm171_vm0, %v473_v0  ;;  %v178_v3 = vld [vmem:[%s165_s17] sm:$0x3] }
   0xf   : > { %v179_v4 = vld [vmem:[%s165_s17 + $0x2] sm:$0x3]  ;;  %v180_v5 = vld [vmem:[%s165_s17 + $0x4] sm:$0x3]  ;;  %v182_v6 = vunpack.c.l.bf16 %v178_v3  ;;  %v181_v9 = vld [vmem:[%s165_s17 + $0x6] sm:$0x3] }
  0x10   : > { %v183_v7 = vunpack.c.l.bf16 %v179_v4  ;;  %v184_v8 = vunpack.c.l.bf16 %v180_v5  ;;  %v523_v10 = vld [vmem:[%s611_s1 + $0x2] ss:$0 sm:$0xff]  ;;  %v185_v11 = vunpack.c.l.bf16 %v181_v9  ;;  %v535_v19 = vld [vmem:[%s611_s1 + $0x4] ss:$0 sm:$0xff]  ;;  %v540_v23 = vld [vmem:[%s611_s1 + $0x5] ss:$0 sm:$0xff] }
  0x11   : > { %188 = vst.msk [vmem:[#allocation2 + $0x9] sm:$0xf] %vm187_vm1, %v182_v6  ;;  %v546_v26 = vld [vmem:[%s611_s1 + $0x6] ss:$0 sm:$0xff]  ;;  %v552_v32 = vld [vmem:[%s611_s1 + $0x8] ss:$0 sm:$0xff] }
  0x12   : > { %189 = vst.msk [vmem:[#allocation2 + $0x11] sm:$0xf] %vm187_vm1, %v183_v7  ;;  %190 = vst.msk [vmem:[#allocation2 + $0x19] sm:$0xf] %vm187_vm1, %v184_v8  ;;  %v557_v33 = vld [vmem:[%s611_s1 + $0x9] ss:$0 sm:$0xff] }
  0x13   : > { %v192_v12 = vld [vmem:[#allocation2] sm:$0xf]  ;;  %191 = vst.msk [vmem:[#allocation2 + $0x21] sm:$0xf] %vm187_vm1, %v185_v11  ;;  %v566_v46 = vld [vmem:[%s611_s1 + $0xa] ss:$0 sm:$0xff] }
  0x14   : > { %v209_v13 = vld [vmem:[#allocation2 + $0x1] sm:$0xf]  ;;  %v201_v15 = vmul.f32 %v513_v1, %v192_v12 }
  0x15   : > { %v226_v14 = vld [vmem:[#allocation2 + $0x2] sm:$0xf]  ;;  %v218_v16 = vmul.f32 %v518_v2, %v209_v13 }
  0x16   : > { %v235_v18 = vmul.f32 %v523_v10, %v226_v14 }
  0x17   : > { %v222_v17 = vadd.f32 %v218_v16, %v201_v15 }
  0x18   : > { %v243_v21 = vld [vmem:[#allocation2 + $0x8] sm:$0xf] }
  0x19   : > { %v239_v20 = vadd.f32 %v235_v18, %v222_v17  ;;  %v261_v22 = vld [vmem:[#allocation2 + $0x9] sm:$0xf]  ;;  %v253_v24 = vmul.f32 %v535_v19, %v243_v21  ;;  %v296_v36 = vld [vmem:[#allocation2 + $0x10] sm:$0xf]  ;;  %v245_v56 = vld [vmem:[#allocation2 + $0x18] sm:$0xf] }
  0x1a   : > { %v278_v25 = vld [vmem:[#allocation2 + $0xa] sm:$0xf]  ;;  %v270_v31 = vmul.f32 %v540_v23, %v261_v22  ;;  %v314_v37 = vld [vmem:[#allocation2 + $0x11] sm:$0xf]  ;;  %v306_v51 = vmul.f32 %v552_v32, %v296_v36  ;;  %v263_v60 = vld [vmem:[#allocation2 + $0x19] sm:$0xf]  ;;  %v255_v11 = vmul.f32 %v535_v19, %v245_v56 }
  0x1b   : > { %v193_v27 = vld [vmem:[#allocation2 + $0x8] sm:$0xf]  ;;  %v257_v30 = vadd.f32 %v253_v24, %v239_v20  ;;  %v244_v38 = vld [vmem:[#allocation2 + $0x10] sm:$0xf]  ;;  %v287_v40 = vmul.f32 %v546_v26, %v278_v25  ;;  %v323_v57 = vmul.f32 %v557_v33, %v314_v37  ;;  %v195_v61 = vld [vmem:[#allocation2 + $0x18] sm:$0xf]  ;;  %v272_v16 = vmul.f32 %v540_v23, %v263_v60 }
  0x1c   : > { %v210_v28 = vld [vmem:[#allocation2 + $0x9] sm:$0xf]  ;;  %v202_v34 = vmul.f32 %v513_v1, %v193_v27  ;;  %v194_v43 = vld [vmem:[#allocation2 + $0x10] sm:$0xf]  ;;  %v254_v54 = vmul.f32 %v535_v19, %v244_v38  ;;  %v212_v62 = vld [vmem:[#allocation2 + $0x19] sm:$0xf]  ;;  %v204_v4 = vmul.f32 %v513_v1, %v195_v61 }
  0x1d   : > { %v227_v29 = vld [vmem:[#allocation2 + $0xa] sm:$0xf]  ;;  %v219_v35 = vmul.f32 %v518_v2, %v210_v28  ;;  %v274_v39 = vadd.f32 %v270_v31, %v257_v30  ;;  %v211_v44 = vld [vmem:[#allocation2 + $0x11] sm:$0xf]  ;;  %v203_v48 = vmul.f32 %v513_v1, %v194_v43  ;;  %v229_v5 = vld [vmem:[#allocation2 + $0x1a] sm:$0xf]  ;;  %v221_v12 = vmul.f32 %v518_v2, %v212_v62 }
  0x1e   : > { %v236_v42 = vmul.f32 %v523_v10, %v227_v29  ;;  %v228_v45 = vld [vmem:[#allocation2 + $0x12] sm:$0xf]  ;;  %v220_v49 = vmul.f32 %v518_v2, %v211_v44  ;;  %v246_v6 = vld [vmem:[#allocation2 + $0x20] sm:$0xf]  ;;  %v297_v8 = vld [vmem:[#allocation2 + $0x18] sm:$0xf]  ;;  %v238_v22 = vmul.f32 %v523_v10, %v229_v5 }
  0x1f   : > { %v223_v41 = vadd.f32 %v219_v35, %v202_v34  ;;  %v262_v47 = vld [vmem:[#allocation2 + $0x11] sm:$0xf]  ;;  %v291_v50 = vadd.f32 %v287_v40, %v274_v39  ;;  %v237_v59 = vmul.f32 %v523_v10, %v228_v45  ;;  %v280_v17 = vld [vmem:[#allocation2 + $0x1a] sm:$0xf]  ;;  %v451_v1 = vld [vmem:[%s612_s2] ss:$0 sm:$0xff]  ;;  %v225_v21 = vadd.f32 %v221_v12, %v204_v4 }
  0x20   : > { %v331_v52 = vld [vmem:[#allocation2 + $0x12] sm:$0xf]  ;;  %v224_v58 = vadd.f32 %v220_v49, %v203_v48  ;;  %v271_v3 = vmul.f32 %v540_v23, %v262_v47  ;;  %v315_v18 = vld [vmem:[#allocation2 + $0x19] sm:$0xf]  ;;  %v256_v24 = vmul.f32 %v535_v19, %v246_v6  ;;  %v307_v27 = vmul.f32 %v552_v32, %v297_v8  ;;  %v298_v28 = vld [vmem:[#allocation2 + $0x20] sm:$0xf] }
  0x21   : > { %v240_v53 = vadd.f32 %v236_v42, %v223_v41  ;;  %v279_v55 = vld [vmem:[#allocation2 + $0x12] sm:$0xf]  ;;  %v310_v63 = vadd.f32 %v306_v51, %v291_v50  ;;  %v340_v7 = vmul.f32 %v566_v46, %v331_v52  ;;  %v264_v29 = vld [vmem:[#allocation2 + $0x21] sm:$0xf]  ;;  %v332_v30 = vld [vmem:[#allocation2 + $0x1a] sm:$0xf]  ;;  %v289_v34 = vmul.f32 %v546_v26, %v280_v17 }
  0x22   : > { %v241_v9 = vadd.f32 %v237_v59, %v224_v58  ;;  %v288_v15 = vmul.f32 %v546_v26, %v279_v55  ;;  %v242_v35 = vadd.f32 %v238_v22, %v225_v21  ;;  %v299_v36 = vld [vmem:[#allocation2 + $0x28] sm:$0xf]  ;;  %v324_v10 = vmul.f32 %v557_v33, %v315_v18  ;;  %v316_v39 = vld [vmem:[#allocation2 + $0x21] sm:$0xf] }
  0x23   : > { %v258_v0 = vadd.f32 %v254_v54, %v240_v53  ;;  %v327_v13 = vadd.f32 %v323_v57, %v310_v63  ;;  %v281_v19 = vld [vmem:[#allocation2 + $0x22] sm:$0xf]  ;;  %v308_v41 = vmul.f32 %v552_v32, %v298_v28  ;;  %v273_v43 = vmul.f32 %v540_v23, %v264_v29  ;;  %v317_v55 = vld [vmem:[#allocation2 + $0x29] sm:$0xf] }
  0x24   : > { %v259_v20 = vadd.f32 %v255_v11, %v241_v9  ;;  %v260_v42 = vadd.f32 %v256_v24, %v242_v35  ;;  %v341_v47 = vmul.f32 %v566_v46, %v332_v30  ;;  %v333_v48 = vld [vmem:[#allocation2 + $0x22] sm:$0xf]  ;;  %v309_v49 = vmul.f32 %v552_v32, %v299_v36  ;;  %v334_v59 = vld [vmem:[#allocation2 + $0x2a] sm:$0xf] }
  0x25   : > { %v275_v14 = vadd.f32 %v271_v3, %v258_v0  ;;  %v344_v25 = vadd.f32 %v340_v7, %v327_v13  ;;  %v325_v51 = vmul.f32 %v557_v33, %v316_v39  ;;  %v290_v53 = vmul.f32 %v546_v26, %v281_v19 }
  0x26   : > { %v276_v31 = vadd.f32 %v272_v16, %v259_v20  ;;  %v277_v52 = vadd.f32 %v273_v43, %v260_v42  ;;  %v342_v57 = vmul.f32 %v566_v46, %v333_v48  ;;  %v326_v62 = vmul.f32 %v557_v33, %v317_v55 }
  0x27   : > { %v292_v2 = vadd.f32 %v288_v15, %v275_v14  ;;  %v355_v37 = vadd.f32 %v451_v1, %v344_v25  ;;  %v343_v26 = vmul.f32 %v566_v46, %v334_v59 }
  0x28   : > { %v293_v40 = vadd.f32 %v289_v34, %v276_v31  ;;  %v294_v58 = vadd.f32 %v290_v53, %v277_v52 }
  0x29   : > { %v311_v38 = vadd.f32 %v307_v27, %v292_v2  ;;  %v359_v44 = vmax.f32 %v355_v37, 0.0 }
  0x2a   : > { %v312_v50 = vadd.f32 %v308_v41, %v293_v40  ;;  %v313_v61 = vadd.f32 %v309_v49, %v294_v58 }
  0x2b   : > { %v328_v45 = vadd.f32 %v324_v10, %v311_v38  ;;  %v363_v54 = vpack.c.bf16 %v359_v44, %v359_v44 }
  0x2c   : > { %v329_v56 = vadd.f32 %v325_v51, %v312_v50  ;;  %v330_v3 = vadd.f32 %v326_v62, %v313_v61 }
  0x2d   : > { %v345_v23 = vadd.f32 %v341_v47, %v328_v45  ;;  %368 = vst.msk [vmem:[%s170_s16] sm:$0x3] %vm367_vm2, %v363_v54 }
  0x2e   : > { %v346_v60 = vadd.f32 %v342_v57, %v329_v56  ;;  %v347_v6 = vadd.f32 %v343_v26, %v330_v3 }
  0x2f   : > { %v356_v32 = vadd.f32 %v451_v1, %v345_v23 }
  0x30   : > { %v357_v0 = vadd.f32 %v451_v1, %v346_v60  ;;  %v358_v8 = vadd.f32 %v451_v1, %v347_v6 }
  0x31   : > { %v360_v63 = vmax.f32 %v356_v32, 0.0 }
  0x32   : > { %v361_v5 = vmax.f32 %v357_v0, 0.0  ;;  %v362_v9 = vmax.f32 %v358_v8, 0.0 }
  0x33   : > { %v364_v4 = vpack.c.bf16 %v360_v63, %v360_v63 }
  0x34   : > { %v365_v7 = vpack.c.bf16 %v361_v5, %v361_v5  ;;  %v366_v11 = vpack.c.bf16 %v362_v9, %v362_v9 }
  0x35   : > { %369 = vst.msk [vmem:[%s170_s16 + $0x2] sm:$0x3] %vm367_vm2, %v364_v4 }
  0x36   : > { %370 = vst.msk [vmem:[%s170_s16 + $0x4] sm:$0x3] %vm367_vm2, %v365_v7  ;;  %371 = vst.msk [vmem:[%s170_s16 + $0x6] sm:$0x3] %vm367_vm2, %v366_v11 }
  0x37 PF: > { %s13_s12 = sadd.s32 1, %s471_s12  }
  0x38   : > { %p10_p4 = scmp.ge.s32.totalorder %s13_s12, 4  }
  0x3a   :  { %12 = sbr.rel (!%p10_p4) target bundleno = 1 (0x1), region = 66 }

// kernel: _lambda_.19
= control target key start
LH: loop header
LB: loop body
LE: loop exit
PB: predicated region body
PF: predicated region fallthrough
CT: control target
= control target key end

     0   :  { %vm55_vm0 = vcmask 1043456   ;;  %vm48_vm1 = vcmask 195584   ;;  %vm128_vm2 = vcmask 715776   ;;  %s216_s1 = inlined_call_operand.vmem [shape: bf16[24,88], index: 1, kind: input, shape index: {}]   ;;  %s217_s0 = inlined_call_operand.vmem [shape: bf16[32,24], index: 0, kind: input, shape index: {}]   ;;  %s218_s2 = inlined_call_operand.vmem [shape: f32[1,88], index: 2, kind: input, shape index: {}]   ;;  %s219_s3 = inlined_call_operand.vmem [shape: bf16[32,88], index: 3, kind: output, shape index: {}]  }
   0x1   :  { %v165_v0 = vld [vmem:[%s216_s1 + $0x8] ss:$0 sps:$4 sm:$0xff]   ;;  %v166_v1 = vld [vmem:[%s216_s1] sm:$0xff]  }
   0x2   :  { %164 = vmatprep.subr.msk.bf16.mxu0 %vm55_vm0, %v165_v0  ;;  %v57_v2 = vsel %vm55_vm0, %v165_v0, 0  ;;  %v167_v3 = vld [vmem:[%s217_s0] sm:$0xff]   ;;  %v168_v4 = vld [vmem:[%s217_s0 + $0x8] sm:$0xff]  }
   0x3   :  { %157 = vmatpush3.bf16.msra.mxu0 %v57_v2  ;;  %160 = vmatprep.mubr.msk.bf16.mxu0 %vm48_vm1, %v167_v3  ;;  %v137_v5 = vld [vmem:[%s218_s2] ss:$0 sm:$0xff] }
   0x4   :  { %158 = vmatprep.subr.bf16.mxu0 %v166_v1 }
   0x7   :  { %159 = vmatpush3.bf16.msra.mxu0 %v166_v1 }
   0xa   :  { %161 = vmatmul.mubr.msk.bf16.vlgmr.msra.gmra.mxu0 %vm48_vm1, %v168_v4 }
  0xca   :  { %v162_v6 = vpop.f32.mrf.mxu0 }
  0xcb   :  { %v102_v7 = vadd.f32 %v162_v6, %v137_v5 }
  0xcc   :  { %v93_v8 = vpop.f32.mrf.mxu0 }
  0xcd   :  { %v110_v9 = vmax.f32 %v102_v7, 0.0  ;;  %v94_v10 = vadd.f32 %v137_v5, %v93_v8 }
  0xce   :  { %v163_v11 = vpop.f32.mrf.mxu0 }
  0xcf   :  { %v150_v12 = vpack.c.bf16 %v110_v9, %v110_v9  ;;  %v108_v13 = vmax.f32 %v94_v10, 0.0  ;;  %v105_v14 = vadd.f32 %v163_v11, %v137_v5 }
  0xd0   :  { %v96_v15 = vpop.f32.mrf.mxu0 }
  0xd1   :  { %131 = vst.msk [vmem:[%s219_s3 + $0x8] sm:$0xf] %vm128_vm2, %v150_v12  ;;  %v148_v16 = vpack.c.bf16 %v108_v13, %v108_v13  ;;  %v111_v17 = vmax.f32 %v105_v14, 0.0  ;;  %v97_v18 = vadd.f32 %v137_v5, %v96_v15 }
  0xd3   :  { %129 = vst.msk [vmem:[%s219_s3] sm:$0xf] %vm128_vm2, %v148_v16  ;;  %v151_v19 = vpack.c.bf16 %v111_v17, %v111_v17  ;;  %v109_v20 = vmax.f32 %v97_v18, 0.0 }
  0xd5   :  { %132 = vst.msk [vmem:[%s219_s3 + $0xc] sm:$0xf] %vm128_vm2, %v151_v19  ;;  %v149_v21 = vpack.c.bf16 %v109_v20, %v109_v20 }
  0xd7   :  { %130 = vst.msk [vmem:[%s219_s3 + $0x4] sm:$0xf] %vm128_vm2, %v149_v21 }

// kernel: _lambda_.22
= control target key start
LH: loop header
LB: loop body
LE: loop exit
PB: predicated region body
PF: predicated region fallthrough
CT: control target
= control target key end

     0   :  { %vm55_vm0 = vcmask 1043456   ;;  %vm48_vm1 = vcmask 195584   ;;  %vm144_vm2 = vcmask 781312   ;;  %s232_s1 = inlined_call_operand.vmem [shape: bf16[24,96], index: 1, kind: input, shape index: {}]   ;;  %s233_s0 = inlined_call_operand.vmem [shape: bf16[32,24], index: 0, kind: input, shape index: {}]   ;;  %s234_s2 = inlined_call_operand.vmem [shape: f32[1,96], index: 2, kind: input, shape index: {}]   ;;  %s235_s3 = inlined_call_operand.vmem [shape: bf16[32,96], index: 3, kind: output, shape index: {}]  }
   0x1   :  { %v181_v0 = vld [vmem:[%s232_s1 + $0x8] ss:$0 sps:$4 sm:$0xff]   ;;  %v182_v1 = vld [vmem:[%s232_s1] sm:$0xff]  }
   0x2   :  { %180 = vmatprep.subr.msk.bf16.mxu0 %vm55_vm0, %v181_v0  ;;  %v57_v2 = vsel %vm55_vm0, %v181_v0, 0  ;;  %v183_v3 = vld [vmem:[%s233_s0] sm:$0xff]   ;;  %v184_v4 = vld [vmem:[%s233_s0 + $0x8] sm:$0xff]  }
   0x3   :  { %173 = vmatpush3.bf16.msra.mxu0 %v57_v2  ;;  %176 = vmatprep.mubr.msk.bf16.mxu0 %vm48_vm1, %v183_v3  ;;  %v153_v5 = vld [vmem:[%s234_s2] ss:$0 sm:$0xff] }
   0x4   :  { %174 = vmatprep.subr.bf16.mxu0 %v182_v1 }
   0x7   :  { %175 = vmatpush3.bf16.msra.mxu0 %v182_v1 }
   0xa   :  { %177 = vmatmul.mubr.msk.bf16.vlgmr.msra.gmra.mxu0 %vm48_vm1, %v184_v4 }
  0xca   :  { %v178_v6 = vpop.f32.mrf.mxu0 }
  0xcb   :  { %v102_v7 = vadd.f32 %v178_v6, %v153_v5 }
  0xcc   :  { %v93_v8 = vpop.f32.mrf.mxu0 }
  0xcd   :  { %v110_v9 = vadd.f32 3.0, %v102_v7  ;;  %v94_v10 = vadd.f32 %v153_v5, %v93_v8 }
  0xce   :  { %v179_v11 = vpop.f32.mrf.mxu0 }
  0xcf   :  { %v114_v12 = vmax.f32 %v110_v9, 0.0  ;;  %v108_v13 = vadd.f32 3.0, %v94_v10  ;;  %v105_v14 = vadd.f32 %v179_v11, %v153_v5 }
  0xd0   :  { %v96_v15 = vpop.f32.mrf.mxu0 }
  0xd1   :  { %v118_v16 = vmin.f32 %v114_v12, 6.0  ;;  %v112_v17 = vmax.f32 %v108_v13, 0.0  ;;  %v111_v18 = vadd.f32 3.0, %v105_v14  ;;  %v97_v19 = vadd.f32 %v153_v5, %v96_v15 }
  0xd3   :  { %v122_v20 = vmul.f32 %v118_v16, %v102_v7  ;;  %v116_v21 = vmin.f32 %v112_v17, 6.0  ;;  %v115_v22 = vmax.f32 %v111_v18, 0.0  ;;  %v109_v23 = vadd.f32 3.0, %v97_v19 }
  0xd5   :  { %v126_v24 = vmul.f32 0.16666667, %v122_v20  ;;  %v120_v25 = vmul.f32 %v116_v21, %v94_v10  ;;  %v119_v26 = vmin.f32 %v115_v22, 6.0  ;;  %v113_v27 = vmax.f32 %v109_v23, 0.0 }
  0xd7   :  { %v166_v28 = vpack.c.bf16 %v126_v24, %v126_v24  ;;  %v124_v29 = vmul.f32 0.16666667, %v120_v25  ;;  %v123_v30 = vmul.f32 %v119_v26, %v105_v14  ;;  %v117_v31 = vmin.f32 %v113_v27, 6.0 }
  0xd9   :  { %147 = vst.msk [vmem:[%s235_s3 + $0x8] sm:$0xf] %vm144_vm2, %v166_v28  ;;  %v164_v32 = vpack.c.bf16 %v124_v29, %v124_v29  ;;  %v127_v33 = vmul.f32 0.16666667, %v123_v30  ;;  %v121_v34 = vmul.f32 %v117_v31, %v97_v19 }
  0xdb   :  { %145 = vst.msk [vmem:[%s235_s3] sm:$0xf] %vm144_vm2, %v164_v32  ;;  %v167_v35 = vpack.c.bf16 %v127_v33, %v127_v33  ;;  %v125_v36 = vmul.f32 0.16666667, %v121_v34 }
  0xdd   :  { %148 = vst.msk [vmem:[%s235_s3 + $0xc] sm:$0xf] %vm144_vm2, %v167_v35  ;;  %v165_v37 = vpack.c.bf16 %v125_v36, %v125_v36 }
  0xdf   :  { %146 = vst.msk [vmem:[%s235_s3 + $0x4] sm:$0xf] %vm144_vm2, %v165_v37 }

// kernel: _lambda_.21
= control target key start
LH: loop header
LB: loop body
LE: loop exit
PB: predicated region body
PF: predicated region fallthrough
CT: control target
= control target key end

     0   :  { %vm90_vm0 = vcmask 1043456   ;;  %vm83_vm1 = vcmask 719872   ;;  %vm171_vm2 = vcmask 191488   ;;  %s317_s1 = inlined_call_operand.vmem [shape: bf16[88,24], index: 1, kind: input, shape index: {}]   ;;  %s318_s0 = inlined_call_operand.vmem [shape: bf16[32,88], index: 0, kind: input, shape index: {}]   ;;  %s319_s3 = inlined_call_operand.vmem [shape: bf16[32,24], index: 3, kind: input, shape index: {}]   ;;  %s320_s2 = inlined_call_operand.vmem [shape: f32[1,24], index: 2, kind: input, shape index: {}]   ;;  %s321_s4 = inlined_call_operand.vmem [shape: bf16[32,24], index: 4, kind: output, shape index: {}]  }
   0x1   :  { %v233_v0 = vld [vmem:[%s317_s1 + $0x28] ss:$0 sps:$4 sm:$0xff]   ;;  %v234_v1 = vld [vmem:[%s317_s1 + $0x20] sm:$0xff]   ;;  %v235_v3 = vld [vmem:[%s317_s1 + $0x18] sm:$0xff]  }
   0x2   :  { %232 = vmatprep.subr.msk.bf16.mxu0 %vm90_vm0, %v233_v0  ;;  %v92_v2 = vsel %vm90_vm0, %v233_v0, 0  ;;  %v239_v4 = vld [vmem:[%s318_s0] sm:$0xff]   ;;  %v236_v5 = vld [vmem:[%s317_s1 + $0x10] sm:$0xff]   ;;  %v237_v6 = vld [vmem:[%s317_s1 + $0x8] sm:$0xff]  }
   0x3   :  { %217 = vmatpush3.bf16.msra.mxu0 %v92_v2  ;;  %228 = vmatprep.mubr.msk.bf16.mxu0 %vm83_vm1, %v239_v4  ;;  %v238_v7 = vld [vmem:[%s317_s1] sm:$0xff]   ;;  %v240_v8 = vld [vmem:[%s318_s0 + $0x8] sm:$0xff]  }
   0x4   :  { %218 = vmatprep.subr.bf16.mxu0 %v234_v1  ;;  %v207_v9 = vld [vmem:[%s319_s3 + $0x8] sm:$0xff]   ;;  %v180_v10 = vld [vmem:[%s320_s2] ss:$0 sm:$0xff] }
   0x5   :  { %v200_v11 = vld [vmem:[%s319_s3] sm:$0xff]   ;;  %v205_v12 = vunpack.c.l.bf16 %v207_v9  ;;  %v206_v19 = vunpack.c.h.bf16 %v207_v9 }
   0x6   :  { %v201_v15 = vunpack.c.l.bf16 %v200_v11  ;;  %v202_v24 = vunpack.c.h.bf16 %v200_v11 }
   0x7   :  { %219 = vmatpush3.bf16.msra.mxu0 %v234_v1 }
   0x8   :  { %220 = vmatprep.subr.bf16.mxu0 %v235_v3 }
   0xb   :  { %221 = vmatpush3.bf16.msra.mxu0 %v235_v3 }
   0xc   :  { %222 = vmatprep.subr.bf16.mxu0 %v236_v5 }
   0xf   :  { %223 = vmatpush3.bf16.msra.mxu0 %v236_v5 }
  0x10   :  { %224 = vmatprep.subr.bf16.mxu0 %v237_v6 }
  0x13   :  { %225 = vmatpush3.bf16.msra.mxu0 %v237_v6 }
  0x14   :  { %226 = vmatprep.subr.bf16.mxu0 %v238_v7 }
  0x17   :  { %227 = vmatpush3.bf16.msra.mxu0 %v238_v7 }
  0x1a   :  { %229 = vmatmul.mubr.msk.bf16.vlgmr.msra.gmra.mxu0 %vm83_vm1, %v240_v8 }
  0xda   :  { %v230_v13 = vpop.f32.mrf.mxu0 }
  0xdb   :  { %v137_v14 = vadd.f32 %v230_v13, %v180_v10 }
  0xdc   :  { %v128_v16 = vpop.f32.mrf.mxu0 }
  0xdd   :  { %v153_v17 = vadd.f32 %v205_v12, %v137_v14  ;;  %v129_v18 = vadd.f32 %v180_v10, %v128_v16 }
  0xde   :  { %v231_v20 = vpop.f32.mrf.mxu0 }
  0xdf   :  { %v197_v21 = vpack.c.bf16 %v153_v17, %v153_v17  ;;  %v151_v22 = vadd.f32 %v201_v15, %v129_v18  ;;  %v140_v23 = vadd.f32 %v231_v20, %v180_v10 }
  0xe0   :  { %v131_v25 = vpop.f32.mrf.mxu0 }
  0xe1   :  { %174 = vst.msk [vmem:[%s321_s4 + $0x8] sm:$0xf] %vm171_vm2, %v197_v21  ;;  %v195_v26 = vpack.c.bf16 %v151_v22, %v151_v22  ;;  %v154_v27 = vadd.f32 %v206_v19, %v140_v23  ;;  %v132_v28 = vadd.f32 %v180_v10, %v131_v25 }
  0xe3   :  { %172 = vst.msk [vmem:[%s321_s4] sm:$0xf] %vm171_vm2, %v195_v26  ;;  %v198_v29 = vpack.c.bf16 %v154_v27, %v154_v27  ;;  %v152_v30 = vadd.f32 %v202_v24, %v132_v28 }
  0xe5   :  { %175 = vst.msk [vmem:[%s321_s4 + $0xc] sm:$0xf] %vm171_vm2, %v198_v29  ;;  %v196_v31 = vpack.c.bf16 %v152_v30, %v152_v30 }
  0xe7   :  { %173 = vst.msk [vmem:[%s321_s4 + $0x4] sm:$0xf] %vm171_vm2, %v196_v31 }

// kernel: _lambda_.24
= control target key start
LH: loop header
LB: loop body
LE: loop exit
PB: predicated region body
PF: predicated region fallthrough
CT: control target
= control target key end

     0   :  { %v161_v0 = vmov 0.0   ;;  %vm162_vm0 = vmmov 0   ;;  %vm71_vm1 = vcmask 785408   ;;  %vm116_vm2 = vcmask 322560   ;;  %s210_s1 = inlined_call_operand.vmem [shape: bf16[96,40], index: 1, kind: input, shape index: {}]   ;;  %s211_s0 = inlined_call_operand.vmem [shape: bf16[8,96], index: 0, kind: input, shape index: {}]   ;;  %s212_s2 = inlined_call_operand.vmem [shape: f32[1,40], index: 2, kind: input, shape index: {}]   ;;  %s213_s3 = inlined_call_operand.vmem [shape: bf16[8,40], index: 3, kind: output, shape index: {}]  }
   0x1   :  { %137 = vmatprep.subr.bf16.mxu0 %v161_v0  ;;  %v155_v1 = vld [vmem:[%s210_s1 + $0x28] sm:$0xff]   ;;  %149 = vmatprep.mubr.msk.bf16.mxu0 %vm162_vm0, %v161_v0  ;;  %v156_v2 = vld [vmem:[%s210_s1 + $0x20] sm:$0xff]   ;;  %v157_v3 = vld [vmem:[%s210_s1 + $0x18] sm:$0xff]  }
   0x2   :  { %138 = vmatpush3.bf16.msra.mxu0 %v155_v1  ;;  %v158_v4 = vld [vmem:[%s210_s1 + $0x10] sm:$0xff]   ;;  %v159_v5 = vld [vmem:[%s210_s1 + $0x8] sm:$0xff]   ;;  %v160_v6 = vld [vmem:[%s210_s1] sm:$0xff]  }
   0x3   :  { %139 = vmatprep.subr.bf16.mxu0 %v161_v0  ;;  %v15_v7 = vld [vmem:[%s211_s0] sm:$0xf] }
   0x4   :  { %v122_v8 = vld [vmem:[%s212_s2] ss:$0 sm:$0xff] }
   0x6   :  { %140 = vmatpush3.bf16.msra.mxu0 %v156_v2 }
   0x7   :  { %141 = vmatprep.subr.bf16.mxu0 %v161_v0 }
   0xa   :  { %142 = vmatpush3.bf16.msra.mxu0 %v157_v3 }
   0xb   :  { %143 = vmatprep.subr.bf16.mxu0 %v161_v0 }
   0xe   :  { %144 = vmatpush3.bf16.msra.mxu0 %v158_v4 }
   0xf   :  { %145 = vmatprep.subr.bf16.mxu0 %v161_v0 }
  0x12   :  { %146 = vmatpush3.bf16.msra.mxu0 %v159_v5 }
  0x13   :  { %147 = vmatprep.subr.bf16.mxu0 %v161_v0 }
  0x16   :  { %148 = vmatpush3.bf16.msra.mxu0 %v160_v6 }
  0x19   :  { %150 = vmatmul.mubr.msk.bf16.vlgmr.msra.gmra.mxu0 %vm71_vm1, %v15_v7 }
  0xd9   :  { %v109_v9 = vpop.f32.mrf.mxu0 }
  0xda   :  { %v110_v10 = vadd.f32 %v122_v8, %v109_v9 }
  0xdb   :  { %v151_v11 = vpop.f32.mrf.mxu0 }
  0xdc   :  { %v115_v12 = vpack.c.bf16 %v110_v10, %v110_v10 }
  0xdd   :  { %v112_v13 = vpop.f32.mrf.mxu0 }
  0xde   :  { %117 = vst.msk [vmem:[%s213_s3] sm:$0xf] %vm116_vm2, %v115_v12 }
  0xdf   :  { %v152_v14 = vpop.f32.mrf.mxu0 }

// kernel: _lambda_.25
= control target key start
LH: loop header
LB: loop body
LE: loop exit
PB: predicated region body
PF: predicated region fallthrough
CT: control target
= control target key end

     0   :  { %12 = vsyncpa [#allocation3], 0  ;;  %s1135_s0 = inlined_call_operand.vmem [shape: bf16[2,4,40], index: 0, kind: input, shape index: {}]   ;;  %s1136_s1 = inlined_call_operand.vmem [shape: bf16[40,240], index: 1, kind: input, shape index: {}]   ;;  %s1137_s2 = inlined_call_operand.vmem [shape: f32[1,240], index: 2, kind: input, shape index: {}]   ;;  %s1138_s3 = inlined_call_operand.vmem [shape: f32[240,64], index: 3, kind: input, shape index: {}]   ;;  %s1139_s4 = inlined_call_operand.vmem [shape: f32[1,64], index: 4, kind: input, shape index: {}]   ;;  %s1140_s5 = inlined_call_operand.vmem [shape: f32[64,10], index: 5, kind: input, shape index: {}]   ;;  %s1141_s6 = inlined_call_operand.vmem [shape: f32[1,10], index: 6, kind: input, shape index: {}]   ;;  %s1142_s7 = inlined_call_operand.hbm [shape: f32[2,1,10], index: 7, kind: output, shape index: {}]  }
   0x1   :  { %14 = vsyncpa [#allocation3 + $0x1], 0  ;;  %s862_s24 = smov 0   ;;  %s864_s25 = smov 0  }
   0x2   :  { %s866_s26 = smov 0   ;;  %s868_s27 = smov 0  }
   0x3 LB: > { %s883_s28 = sadd.s32 4294967295, %s816_s27   ;;  %s660_s29 = sadd.s32 4294967294, %s816_s27   ;;  %s816_s27 = sphi %s868_s27, %s1148_s27   ;;  %s812_s26 = sphi %s866_s26, %s1147_s26   ;;  %s808_s25 = sphi %s864_s25, %s1146_s25   ;;  %s804_s24 = sphi %s862_s24, %s1145_s24  }
   0x4   : > { %s887_s30 = sadd.s32 1, %s816_s27   ;;  %s179_s8 = sadd.s32 1, %s812_s26 }
   0x5   : > { %s176_s9 = ssub.s32 %s816_s27, %s887_s30  ;;  %p189_p0 = scmp.ne.s32.totalorder %s812_s26, %s808_s25 }
   0x6   : > { %p177_p1 = scmp.eq.s32.totalorder %s176_s9, 0  ;;  %p190_p2 = scmp.eq.s32.totalorder %s883_s28, 1 }
   0x7   : > { %p195_p3 = scmp.ne.s32.totalorder %s808_s25, %s804_s24  ;;  %p196_p4 = scmp.eq.s32.totalorder %s660_s29, 1 }
   0x8   : > { %s898_s10 = scalar_select %p177_p1, %s812_s26, %s179_s8  }
   0x9   : > { %p900_p5 = por %p190_p2, %p189_p0  ;;  %p904_p6 = por %p196_p4, %p195_p3 }
   0xa   : > { %p663_p7 = scmp.ge.s32.totalorder %s816_s27, 1  ;;  %p239_p8 = scmp.lt.s32.totalorder %s816_s27, 3 }
   0xc   : > { %p240_p9 = pnand %p663_p7, %p239_p8 }
   0xd   : > { %p269_p10 = scmp.lt.s32.totalorder (!%p240_p9), %s883_s28, 1  ;;  %s267_s29 = sand.u32 (!%p240_p9), 1, %s808_s25  }
   0xe   : > { %243 = sbr.rel (%p240_p9) target bundleno = 670 (0x29e), region = 48  ;;  %s675_s13 = sshll.u32 (!%p240_p9), %s883_s28, 4 }
   0xf   : > { %s268_s14 = scalar_lea.vmem (!%p240_p9), [#allocation2], %s267_s29  ;;  %s1100_s19 = scalar_lea.hbm (!%p240_p9), %s1142_s7, %s675_s13 }
  0x10   : > { %s605_s15 = sshll.u32 (!%p240_p9), %s268_s14, 4  ;;  %s606_s15 = int_to_ptr.vmem [resolvable:$true] %s605_s15 }
  0x11   : > { %s756_s20 = scalar_lea.vmem (!%p240_p9), %s606_s15, 16 }
  0x12   : > { %p757_p11 = scmp.ne.s32.totalorder (!%p240_p9), %s606_s15, %s756_s20 }
  0x13   : > { %v279_v0 = vld [vmem:[%s1136_s1 + $0x20] sm:$0xff]  ;;  %vm321_vm0 = vcmask 1043456   ;;  %v750_v3 = vld [vmem:[%s1136_s1 + $0x14] ss:$8 sps:$4 sm:$0xff]   ;;  %v818_v4 = vmov 0   ;;  %s270_s17 = scalar_select %p269_p10, %s883_s28, 1  ;;  %v282_v42 = vlaneseq }
  0x14   : > { %v670_v1 = vcombine.high %v279_v0, %v279_v0  ;;  %v669_v2 = vcombine.low %v279_v0, %v279_v0  ;;  %360 = vmatprep.mubr.bf16.mxu0 %v818_v4  ;;  %v412_v6 = vld [vmem:[%s1138_s3 + $0x78] sm:$0xff]  ;;  %v819_v8 = vmov 0.0   ;;  %v411_v9 = vld [vmem:[%s1138_s3 + $0x70] sm:$0xff]  ;;  %v753_v10 = vld [vmem:[%s1136_s1 + $0x4] ss:$8 sps:$4 sm:$0xff]   ;;  %vm317_vm1 = vcmask 326656   ;;  %p758_p12 = pnand %p757_p11, %p900_p5 }
  0x15   : > { %v752_v7 = vld [vmem:[%s1136_s1 + $0x10] ss:$8 sps:$4 sm:$0xff]   ;;  %432 = vmatprep.subr.mxu1 %v819_v8  ;;  %s664_s9 = sshll.u32 %s270_s17, 1  ;;  %v410_v11 = vld [vmem:[%s1138_s3 + $0x68] sm:$0xff]  ;;  %v409_v13 = vld [vmem:[%s1138_s3 + $0x60] sm:$0xff]  ;;  %v283_v43 = vshrl.u32 %v282_v42, 7 }
  0x16   : > { %671 = vmatprep.subr.msk.bf16.mxu0 %vm321_vm0, %v670_v1  ;;  %v323_v5 = vsel %vm321_vm0, %v669_v2, 0  ;;  %433 = vmatpush1.msra.mxu1 %v412_v6  ;;  %v755_v12 = vld [vmem:[%s1136_s1] ss:$8 sps:$4 sm:$0xff]   ;;  %s272_s21 = scalar_lea.vmem %s1135_s0, %s664_s9  ;;  %v408_v14 = vld [vmem:[%s1138_s3 + $0x58] sm:$0xff]  ;;  %v407_v16 = vld [vmem:[%s1138_s3 + $0x50] sm:$0xff]  ;;  %vm386_vm2 = vcmask 912384   ;;  %p759_p13 = pneg %p758_p12 }
  0x17   : > { %339 = vmatpush1.bf16.msra.mxu0 %v323_v5  ;;  %434 = vmatprep.subr.mxu1 %v819_v8  ;;  %v274_v15 = vld [vmem:[%s272_s21] sm:$0x3]  ;;  %v406_v17 = vld [vmem:[%s1138_s3 + $0x48] sm:$0xff]  ;;  %v404_v19 = vld [vmem:[%s1138_s3 + $0x38] sm:$0xff]  ;;  %v284_v44 = vsub.s32 0, %v283_v43  ;;  %v288_v46 = vsub.s32 1, %v283_v43 }
  0x18   : > { %340 = vmatprep.subr.bf16.mxu0 %v750_v3  ;;  %435 = vmatpush1.msra.mxu1 %v411_v9  ;;  %v405_v18 = vld [vmem:[%s1138_s3 + $0x40] sm:$0xff]  ;;  %v403_v20 = vld [vmem:[%s1138_s3 + $0x30] sm:$0xff]  ;;  %v402_v21 = vld [vmem:[%s1138_s3 + $0x28] sm:$0xff]  ;;  %vm428_vm3 = vcmask 916480   ;;  %vm820_vm4 = vmmov 0   ;;  %vm516_vm5 = vcmask 523264  }
  0x19   : > { %436 = vmatprep.subr.mxu1 %v819_v8  ;;  %v401_v22 = vld [vmem:[%s1138_s3 + $0x20] sm:$0xff]  ;;  %v400_v23 = vld [vmem:[%s1138_s3 + $0x18] sm:$0xff]  ;;  %v399_v24 = vld [vmem:[%s1138_s3 + $0x10] sm:$0xff]  ;;  %vm590_vm6 = vcmask 73728   ;;  %s593_s17 = scalar_lea.sflag [#allocation3], %s267_s29  ;;  %s821_s28 = smov [#allocation2]  }
  0x1a   : > { %437 = vmatpush1.msra.mxu1 %v410_v11  ;;  %v398_v25 = vld [vmem:[%s1138_s3 + $0x8] sm:$0xff]  ;;  %v397_v26 = vld [vmem:[%s1138_s3] sm:$0xff]  ;;  %v424_v29 = vld [vmem:[%s1138_s3 + $0xd8] sm:$0xff]  ;;  %s760_s21 = sshll.u32 %s821_s28, 4  ;;  %s761_s21 = int_to_ptr.vmem [resolvable:$false] %s760_s21 }
  0x1b   : > { %341 = vmatpush1.bf16.msra.mxu0 %v752_v7  ;;  %438 = vmatprep.subr.mxu1 %v819_v8  ;;  %v426_v27 = vld [vmem:[%s1138_s3 + $0xe8] sm:$0xff]  ;;  %v425_v28 = vld [vmem:[%s1138_s3 + $0xe0] sm:$0xff]  ;;  %v423_v30 = vld [vmem:[%s1138_s3 + $0xd0] sm:$0xff]  ;;  %s762_s22 = scalar_lea.vmem %s761_s21, 32  ;;  %p763_p0 = scmp.lt.s32.totalorder %s606_s15, %s761_s21 }
  0x1c   : > { %342 = vmatprep.subr.bf16.mxu0 %v753_v10  ;;  %439 = vmatpush1.msra.mxu1 %v409_v13  ;;  %v422_v31 = vld [vmem:[%s1138_s3 + $0xc8] sm:$0xff]  ;;  %v421_v32 = vld [vmem:[%s1138_s3 + $0xc0] sm:$0xff]  ;;  %v420_v33 = vld [vmem:[%s1138_s3 + $0xb8] sm:$0xff]  ;;  %p764_p1 = scmp.lt.s32.totalorder %s762_s22, %s756_s20 }
  0x1d   : > { %440 = vmatprep.subr.mxu1 %v819_v8  ;;  %v419_v34 = vld [vmem:[%s1138_s3 + $0xb0] sm:$0xff]  ;;  %v418_v35 = vld [vmem:[%s1138_s3 + $0xa8] sm:$0xff]  ;;  %v417_v36 = vld [vmem:[%s1138_s3 + $0xa0] sm:$0xff] }
  0x1e   : > { %441 = vmatpush1.msra.mxu1 %v408_v14  ;;  %v416_v37 = vld [vmem:[%s1138_s3 + $0x98] sm:$0xff]  ;;  %v415_v38 = vld [vmem:[%s1138_s3 + $0x90] sm:$0xff]  ;;  %v414_v39 = vld [vmem:[%s1138_s3 + $0x88] sm:$0xff]  ;;  %p765_p2 = por %p764_p1, %p763_p0 }
  0x1f   : > { %343 = vmatpush1.bf16.msra.mxu0 %v755_v12  ;;  %442 = vmatprep.subr.mxu1 %v819_v8  ;;  %v413_v40 = vld [vmem:[%s1138_s3 + $0x80] sm:$0xff]  ;;  %v514_v41 = vld [vmem:[%s1140_s5 + $0x38] sm:$0xff] }
  0x20   : > { %687 = vmatprep.subr.mxu0 %v819_v8  ;;  %443 = vmatpush1.msra.mxu1 %v407_v16  ;;  %v280_v45 = vld [vmem:[%s1137_s2] sm:$0x3]  ;;  %p766_p3 = pnand %p765_p2, %p759_p13 }
  0x21   : > { %444 = vmatprep.subr.mxu1 %v819_v8  ;;  %v285_v47 = vrot.slane %v280_v45, %v284_v44  ;;  %v289_v48 = vrot.slane %v280_v45, %v288_v46 }
  0x22   : > { %672 = vmatmul.mubr.msk.bf16.vlgmr.msra.gmra.mxu0 %vm317_vm1, %v274_v15  ;;  %445 = vmatpush1.msra.mxu1 %v406_v17 }
  0x23   : > { %446 = vmatprep.subr.mxu1 %v819_v8  ;;  %688 = vmatpush3.msra.mxu0 %v514_v41 }
  0x24   : > { %447 = vmatpush1.msra.mxu1 %v405_v18  ;;  %689 = vmatprep.subr.mxu0 %v819_v8  ;;  %v513_v18 = vld [vmem:[%s1140_s5 + $0x30] sm:$0xff] }
  0x25   : > { %448 = vmatprep.subr.mxu1 %v819_v8  ;;  %690 = vmatpush3.msra.mxu0 %v513_v18 }
  0x26   : > { %449 = vmatpush1.msra.mxu1 %v404_v19  ;;  %691 = vmatprep.subr.mxu0 %v819_v8  ;;  %v512_v19 = vld [vmem:[%s1140_s5 + $0x28] sm:$0xff] }
  0x27   : > { %450 = vmatprep.subr.mxu1 %v819_v8  ;;  %692 = vmatpush3.msra.mxu0 %v512_v19 }
  0x28   : > { %451 = vmatpush1.msra.mxu1 %v403_v20  ;;  %693 = vmatprep.subr.mxu0 %v819_v8  ;;  %v511_v20 = vld [vmem:[%s1140_s5 + $0x20] sm:$0xff] }
  0x29   : > { %452 = vmatprep.subr.mxu1 %v819_v8  ;;  %694 = vmatpush3.msra.mxu0 %v511_v20 }
  0x2a   : > { %453 = vmatpush1.msra.mxu1 %v402_v21  ;;  %695 = vmatprep.subr.mxu0 %v819_v8  ;;  %v510_v21 = vld [vmem:[%s1140_s5 + $0x18] sm:$0xff] }
  0x2b   : > { %454 = vmatprep.subr.mxu1 %v819_v8  ;;  %696 = vmatpush3.msra.mxu0 %v510_v21 }
  0x2c   : > { %455 = vmatpush1.msra.mxu1 %v401_v22  ;;  %697 = vmatprep.subr.mxu0 %v819_v8  ;;  %v509_v22 = vld [vmem:[%s1140_s5 + $0x10] sm:$0xff] }
  0x2d   : > { %456 = vmatprep.subr.mxu1 %v819_v8  ;;  %698 = vmatpush3.msra.mxu0 %v509_v22 }
  0x2e   : > { %457 = vmatpush1.msra.mxu1 %v400_v23  ;;  %699 = vmatprep.subr.mxu0 %v819_v8  ;;  %v508_v23 = vld [vmem:[%s1140_s5 + $0x8] sm:$0xff] }
  0x2f   : > { %458 = vmatprep.subr.mxu1 %v819_v8  ;;  %700 = vmatpush3.msra.mxu0 %v508_v23 }
  0x30   : > { %459 = vmatpush1.msra.mxu1 %v399_v24  ;;  %701 = vmatprep.subr.mxu0 %v819_v8  ;;  %v507_v24 = vld [vmem:[%s1140_s5] sm:$0xff] }
  0x31   : > { %460 = vmatprep.subr.mxu1 %v819_v8  ;;  %702 = vmatpush3.msra.mxu0 %v507_v24 }
  0x32   : > { %461 = vmatpush1.msra.mxu1 %v398_v25  ;;  %703 = vmatprep.mubr.msk.f32.mxu0 %vm820_vm4, %v819_v8  ;;  %v427_v25 = vld [vmem:[%s1139_s4] sm:$0x1] }
  0x33   : > { %462 = vmatprep.subr.mxu1 %v819_v8 }
  0x34   : > { %463 = vmatpush1.msra.mxu1 %v397_v26 }
  0x35   : > { %468 = vmatprep.subr.mxu1 %v819_v8 }
  0x36   : > { %469 = vmatpush2.msra.mxu1 %v426_v27 }
  0x37   : > { %470 = vmatprep.subr.mxu1 %v819_v8 }
  0x38   : > { %471 = vmatpush2.msra.mxu1 %v425_v28 }
  0x39   : > { %472 = vmatprep.subr.mxu1 %v819_v8 }
  0x3a   : > { %473 = vmatpush2.msra.mxu1 %v424_v29 }
  0x3b   : > { %474 = vmatprep.subr.mxu1 %v819_v8 }
  0x3c   : > { %475 = vmatpush2.msra.mxu1 %v423_v30 }
  0x3d   : > { %476 = vmatprep.subr.mxu1 %v819_v8 }
  0x3e   : > { %477 = vmatpush2.msra.mxu1 %v422_v31 }
  0x3f   : > { %478 = vmatprep.subr.mxu1 %v819_v8 }
  0x40   : > { %479 = vmatpush2.msra.mxu1 %v421_v32 }
  0x41   : > { %480 = vmatprep.subr.mxu1 %v819_v8 }
  0x42   : > { %481 = vmatpush2.msra.mxu1 %v420_v33 }
  0x43   : > { %482 = vmatprep.subr.mxu1 %v819_v8 }
  0x44   : > { %483 = vmatpush2.msra.mxu1 %v419_v34 }
  0x45   : > { %484 = vmatprep.subr.mxu1 %v819_v8 }
  0x46   : > { %485 = vmatpush2.msra.mxu1 %v418_v35 }
  0x47   : > { %486 = vmatprep.subr.mxu1 %v819_v8 }
  0x48   : > { %487 = vmatpush2.msra.mxu1 %v417_v36 }
  0x49   : > { %488 = vmatprep.subr.mxu1 %v819_v8 }
  0x4a   : > { %489 = vmatpush2.msra.mxu1 %v416_v37 }
  0x4b   : > { %490 = vmatprep.subr.mxu1 %v819_v8 }
  0x4c   : > { %491 = vmatpush2.msra.mxu1 %v415_v38 }
  0x4d   : > { %492 = vmatprep.subr.mxu1 %v819_v8 }
  0x4e   : > { %493 = vmatpush2.msra.mxu1 %v414_v39 }
  0x4f   : > { %494 = vmatprep.subr.mxu1 %v819_v8  ;;  %v515_v8 = vld [vmem:[%s1141_s6] sm:$0x1] }
  0x50   : > { %495 = vmatpush2.msra.mxu1 %v413_v40 }
  0xe2   : > { %v362_v49 = vpop.f32.mrf.mxu0 }
  0xe3   : > { %v363_v50 = vadd.f32 %v362_v49, %v285_v47 }
  0xe4   : > { %v364_v51 = vpop.f32.mrf.mxu0 }
  0xe5   : > { %v369_v52 = vadd.f32 3.0, %v363_v50  ;;  %v365_v53 = vadd.f32 %v364_v51, %v289_v48 }
  0xe6   : > { %v366_v54 = vpop.f32.mrf.mxu0 }
  0xe7   : > { %v371_v55 = vmax.f32 %v369_v52, 0.0  ;;  %v370_v56 = vadd.f32 3.0, %v365_v53 }
  0xe8   : > { %v367_v57 = vpop.f32.mrf.mxu0 }
  0xe9   : > { %v373_v58 = vmin.f32 %v371_v55, 6.0  ;;  %v372_v59 = vmax.f32 %v370_v56, 0.0 }
  0xeb   : > { %v375_v60 = vmul.f32 %v373_v58, %v363_v50  ;;  %v374_v61 = vmin.f32 %v372_v59, 6.0 }
  0xed   : > { %v377_v62 = vmul.f32 0.16666667, %v375_v60  ;;  %v376_v63 = vmul.f32 %v374_v61, %v365_v53 }
  0xef   : > { %v379_v0 = vsel %vm321_vm0, %v377_v62, 0.0  ;;  %v378_v1 = vmul.f32 0.16666667, %v376_v63 }
  0xf0   : > { %v380_v2 = vrot.slane %v379_v0, 4 }
  0xf1   : > { %v387_v3 = vsel %vm386_vm2, %v378_v1, 0.0 }
  0xf2   : > { %v381_v4 = vadd.f32 %v380_v2, %v379_v0  ;;  %v388_v5 = vrot.slane %v387_v3, 4 }
  0xf4   : > { %v382_v6 = vrot.slane %v381_v4, 2  ;;  %v389_v7 = vadd.f32 %v388_v5, %v387_v3 }
  0xf6   : > { %v390_v9 = vrot.slane %v389_v7, 2  ;;  %v383_v10 = vadd.f32 %v382_v6, %v381_v4 }
  0xf8   : > { %v391_v11 = vadd.f32 %v390_v9, %v389_v7  ;;  %v384_v12 = vrot.slane %v383_v10, 1 }
  0xfa   : > { %v392_v13 = vrot.slane %v391_v11, 1  ;;  %v385_v14 = vadd.f32 %v384_v12, %v383_v10 }
  0xfc   : > { %v393_v15 = vadd.f32 %v392_v13, %v391_v11  ;;  %v395_v17 = vmul.f32 0.25, %v385_v14 }
  0xfe   : > { %v396_v16 = vmul.f32 0.25, %v393_v15 }
 0x100   : > { %673 = vmatprep.mubr.msk.f32.mxu1 %vm428_vm3, %v396_v16 }
 0x101   : > { %497 = vmatmul.mubr.f32.vlgmr.msra.gmra.mxu1 %v395_v17 }
 0x1c1   : > { %v498_v26 = vpop.f32.mrf.mxu1 }
 0x1c2   : > { %v499_v27 = vadd.f32 %v498_v26, %v427_v25 }
 0x1c3   : > { %v500_v28 = vpop.f32.mrf.mxu1 }
 0x1c4   : > { %v502_v29 = vadd.f32 3.0, %v499_v27 }
 0x1c6   : > { %v503_v30 = vmax.f32 %v502_v29, 0.0 }
 0x1c8   : > { %v504_v31 = vmin.f32 %v503_v30, 6.0 }
 0x1ca   : > { %v505_v32 = vmul.f32 %v504_v31, %v499_v27 }
 0x1cc   : > { %v506_v33 = vmul.f32 0.16666667, %v505_v32 }
 0x1ce   : > { %704 = vmatmul.mubr.msk.f32.vlgmr.msra.gmra.mxu0 %vm516_vm5, %v506_v33 }
 0x28e   : > { %v586_v34 = vpop.f32.mrf.mxu0 }
 0x28f   : > { %v587_v35 = vadd.f32 %v586_v34, %v515_v8 }
 0x290   : > { %v705_v36 = vpop.f32.mrf.mxu0 }
 0x291   : > { %591 = vst.msk [vmem:[%s268_s14] sm:$0x1] %vm590_vm6, %v587_v35 }
 0x292   : > { %769 = shalt.err (!%p766_p3)
}
 0x293   : > { %s770_s23 = scalar_lea.hbm %s1100_s19, 16  ;;  %s774_s9 = scalar_lea.hbm %s1142_s7, 32 }
 0x294   : > { %p771_p4 = scmp.ne.s32.totalorder %s1100_s19, %s770_s23  ;;  %p775_p9 = scmp.lt.s32.totalorder %s1100_s19, %s1142_s7 }
 0x295   : > { %p776_p10 = scmp.lt.s32.totalorder %s774_s9, %s770_s23 }
 0x296   : > { %p772_p7 = pnand %p771_p4, %p900_p5 }
 0x297   : > { %p777_p11 = por %p776_p10, %p775_p9 }
 0x298   : > { %p773_p8 = pneg %p772_p7 }
 0x29a   : > { %p778_p12 = pnand %p777_p11, %p773_p8 }
 0x29c   : > { %781 = shalt.err (!%p778_p12)
}
 0x29d   : > { %706 = dma.vmem_to_hbm [thread:$0]  (%p900_p5), %s606_s15, 16, %s1100_s19, %s593_s17  }
 0x29e PF: > { %p712_p13 = scmp.ge.s32.totalorder %s816_s27, 2  ;;  %s617_s16 = sand.u32 1, %s804_s24  }
 0x29f   : > { %s618_s18 = scalar_lea.sflag [#allocation3], %s617_s16 }
 0x2a0   : > { %p709_p0 = pnand %p712_p13, %p904_p6 }
 0x2a2   : > { %p710_p1 = pneg %p709_p0 }
 0x2a4   : > { %799 = dma.done.wait (%p710_p1), %s618_s18, 16  }
 0x2a5   : > { %801 = vsyncadd (%p710_p1), %s618_s18, 4294967280  ;;  %p17_p2 = scmp.ge.s32.totalorder %s887_s30, 4   ;;  %s1145_s24 = smov %s808_s25 }
 0x2a6   : > { %s1146_s25 = smov %s812_s26  ;;  %s1147_s26 = smov %s898_s10 }
 0x2a7   : > { %s1148_s27 = smov %s887_s30  ;;  %19 = sbr.rel (!%p17_p2) target bundleno = 3 (0x3), region = 83 }
 0x2ac   :  { %622 = vsyncpa [#allocation3], 1 }
 0x2ad   :  { %624 = vsyncpa [#allocation3 + $0x1], 1 }

// kernel: _lambda_.23
= control target key start
LH: loop header
LB: loop body
LE: loop exit
PB: predicated region body
PF: predicated region fallthrough
CT: control target
= control target key end

     0   :  { %s1425_s24 = smov 0   ;;  %s1427_s25 = smov 0   ;;  %s1715_s0 = inlined_call_operand.vmem [shape: bf16[4,2,4,4,96], index: 0, kind: input, shape index: {}]   ;;  %s1716_s1 = inlined_call_operand.vmem [shape: f32[5,5,96], index: 1, kind: input, shape index: {}]   ;;  %s1717_s2 = inlined_call_operand.vmem [shape: f32[1,96], index: 2, kind: input, shape index: {}]   ;;  %s1718_s3 = inlined_call_operand.vmem [shape: f32[96,96], index: 3, kind: input, shape index: {}]   ;;  %s1719_s4 = inlined_call_operand.vmem [shape: f32[1,96], index: 4, kind: input, shape index: {}]   ;;  %s1720_s5 = inlined_call_operand.vmem [shape: f32[96,96], index: 5, kind: input, shape index: {}]   ;;  %s1721_s6 = inlined_call_operand.vmem [shape: f32[1,96], index: 6, kind: input, shape index: {}]   ;;  %s1722_s7 = inlined_call_operand.vmem [shape: bf16[2,2,2,96], index: 7, kind: output, shape index: {}]  }
   0x1   :  { %s1429_s26 = smov 0  }
   0x2 LB: > { %s1118_s27 = sadd.s32 4294967295, %s1381_s26   ;;  %s1442_s28 = sadd.s32 1, %s1381_s26   ;;  %s1381_s26 = sphi %s1429_s26, %s1725_s26   ;;  %s1377_s25 = sphi %s1427_s25, %s1724_s25   ;;  %s1373_s24 = sphi %s1425_s24, %s1723_s24  }
   0x3   : > { %s21_s29 = ssub.s32 %s1381_s26, %s1442_s28  ;;  %s24_s30 = sadd.s32 1, %s1377_s25 }
   0x4   : > { %p22_p0 = scmp.eq.s32.totalorder %s21_s29, 0  ;;  %p31_p1 = scmp.ne.s32.totalorder %s1377_s25, %s1373_s24 }
   0x5   : > { %p32_p2 = scmp.eq.s32.totalorder %s1381_s26, 0  ;;  %p1121_p4 = scmp.ge.s32.totalorder %s1381_s26, 2 }
   0x6   : > { %s1451_s8 = scalar_select %p22_p0, %s1377_s25, %s24_s30  }
   0x7   : > { %p33_p3 = por %p32_p2, %p31_p1  ;;  %227 = sbr.rel (%p1121_p4) target bundleno = 18 (0x12), region = 40 }
   0xc   : > { %230 = sbr.rel (!%p33_p3) target bundleno = 18 (0x12), region = 44  ;;  %s232_s9 = sand.u32 (%p33_p3), 1, %s1377_s25  }
   0xd   : > { %s1252_s10 = sshll.u32 (%p33_p3), %s1381_s26, 3  ;;  %s1122_s11 = sshll.u32 (%p33_p3), %s232_s9, 5 }
   0xe   : > { %s237_s14 = scalar_lea.vmem (%p33_p3), %s1715_s0, %s1252_s10  ;;  %s234_s15 = scalar_lea.vmem (%p33_p3), [#allocation2], %s1122_s11 }
   0xf   : > { %v254_v0 = vld [vmem:[%s237_s14] sm:$0xff] (%p33_p3)   ;;  %v262_v1 = vld [vmem:[%s237_s14 + $0x10] sm:$0xff] (%p33_p3)  }
  0x10   : > { %v270_v2 = vld [vmem:[%s237_s14 + $0x20] sm:$0xff] (%p33_p3)   ;;  %255 = vst [vmem:[%s234_s15] sm:$0xff] (%p33_p3), %v254_v0   ;;  %263 = vst [vmem:[%s234_s15 + $0x8] sm:$0xff] (%p33_p3), %v262_v1   ;;  %v278_v3 = vld [vmem:[%s237_s14 + $0x30] sm:$0xff] (%p33_p3)  }
  0x11   : > { %271 = vst [vmem:[%s234_s15 + $0x10] sm:$0xff] %v270_v2   ;;  %279 = vst [vmem:[%s234_s15 + $0x18] sm:$0xff] %v278_v3  }
  0x12 PF: > { %p1125_p5 = scmp.ge.s32.totalorder %s1381_s26, 1  ;;  %p340_p6 = scmp.lt.s32.totalorder %s1381_s26, 3 }
  0x14   : > { %p341_p7 = pnand %p1125_p5, %p340_p6 }
  0x15   : > { %s347_s18 = sand.u32 (!%p341_p7), 1, %s1373_s24   ;;  %p377_p8 = scmp.lt.s32.totalorder (!%p341_p7), %s1118_s27, 1 }
  0x16   : > { %344 = sbr.rel (%p341_p7) target bundleno = 520 (0x208), region = 85  ;;  %s1126_s21 = sshll.u32 (!%p341_p7), %s347_s18, 5 }
  0x17   : > { %s1479_s30 = scalar_lea.vmem (!%p341_p7), [#allocation2], %s1126_s21 }
  0x1b   : > { %v881_v4 = vld [vmem:[%s1718_s3 + $0x58] sm:$0xff]  ;;  %v1383_v5 = vmov 0.0   ;;  %v880_v6 = vld [vmem:[%s1718_s3 + $0x50] sm:$0xff]  ;;  %vm1384_vm0 = vmmov 0   ;;  %v879_v7 = vld [vmem:[%s1718_s3 + $0x48] sm:$0xff]  ;;  %vm858_vm1 = vcmask 779264  }
  0x1c   : > { %1279 = vmatprep.subr.mxu0 %v1383_v5  ;;  %1303 = vmatprep.mubr.msk.f32.mxu0 %vm1384_vm0, %v1383_v5  ;;  %v878_v8 = vld [vmem:[%s1718_s3 + $0x40] sm:$0xff]  ;;  %v877_v12 = vld [vmem:[%s1718_s3 + $0x38] sm:$0xff]  ;;  %v1129_v15 = vld [vmem:[%s1479_s30 + $0x8] sm:$0x1]  ;;  %vm883_vm2 = vcmask 785408   ;;  %s1727_s27 = smov (!%p377_p8, %s1118_s27), 1 }
  0x1d   : > { %1280 = vmatpush3.msra.mxu0 %v881_v4  ;;  %1306 = vmatprep.subr.mxu1 %v1383_v5  ;;  %v381_v9 = vld [vmem:[%s1479_s30] sm:$0x1]  ;;  %v382_v10 = vld [vmem:[%s1479_s30 + $0x2] sm:$0x1]  ;;  %v1130_v16 = vld [vmem:[%s1479_s30 + $0xa] sm:$0x1]  ;;  %v397_v18 = vunpack.c.l.bf16 %v1129_v15 }
  0x1e   : > { %1281 = vmatprep.subr.mxu0 %v1383_v5  ;;  %1330 = vmatprep.mubr.msk.f32.mxu1 %vm1384_vm0, %v1383_v5  ;;  %v1128_v11 = vld [vmem:[%s1716_s1] ss:$0 sm:$0xff]  ;;  %v383_v13 = vunpack.c.l.bf16 %v381_v9  ;;  %v384_v14 = vunpack.c.l.bf16 %v382_v10  ;;  %v1131_v17 = vld [vmem:[%s1716_s1 + $0x1] ss:$0 sm:$0xff]  ;;  %v398_v19 = vunpack.c.l.bf16 %v1130_v16  ;;  %v409_v21 = vld [vmem:[%s1479_s30 + $0x2] sm:$0x3] }
  0x1f   : > { %1282 = vmatpush3.msra.mxu0 %v880_v6  ;;  %v408_v20 = vld [vmem:[%s1479_s30] sm:$0x3]  ;;  %v1132_v22 = vld [vmem:[%s1716_s1 + $0x2] ss:$0 sm:$0xff]  ;;  %v411_v26 = vunpack.c.l.bf16 %v409_v21  ;;  %v1135_v27 = vld [vmem:[%s1479_s30 + $0x8] sm:$0x3]  ;;  %v404_v30 = vmul.f32 %v1131_v17, %v397_v18 }
  0x20   : > { %1283 = vmatprep.subr.mxu0 %v1383_v5  ;;  %v390_v23 = vmul.f32 %v1128_v11, %v383_v13  ;;  %v391_v24 = vmul.f32 %v1128_v11, %v384_v14  ;;  %v410_v25 = vunpack.c.l.bf16 %v408_v20  ;;  %v1136_v28 = vld [vmem:[%s1479_s30 + $0xa] sm:$0x3]  ;;  %v1137_v29 = vld [vmem:[%s1716_s1 + $0x3] ss:$0 sm:$0xff]  ;;  %v405_v31 = vmul.f32 %v1131_v17, %v398_v19  ;;  %v450_v34 = vld [vmem:[%s1479_s30] sm:$0x2] }
  0x21   : > { %1284 = vmatpush3.msra.mxu0 %v879_v7  ;;  %v431_v32 = vunpack.c.l.bf16 %v1135_v27  ;;  %v432_v33 = vunpack.c.l.bf16 %v1136_v28  ;;  %v451_v35 = vld [vmem:[%s1479_s30 + $0x2] sm:$0x2]  ;;  %v1140_v36 = vld [vmem:[%s1716_s1 + $0x4] ss:$0 sm:$0xff]  ;;  %v876_v37 = vld [vmem:[%s1718_s3 + $0x30] sm:$0xff]  ;;  %v418_v39 = vmul.f32 %v1132_v22, %v411_v26  ;;  %v452_v40 = vunpack.c.l.bf16 %v450_v34  ;;  %s1127_s18 = sshll.u32 %s1727_s27, 1 }
  0x22   : > { %1285 = vmatprep.subr.mxu0 %v1383_v5  ;;  %v417_v38 = vmul.f32 %v1132_v22, %v410_v25  ;;  %v453_v41 = vunpack.c.l.bf16 %v451_v35  ;;  %v1143_v42 = vld [vmem:[%s1479_s30 + $0x10] sm:$0x1]  ;;  %v1144_v43 = vld [vmem:[%s1479_s30 + $0x12] sm:$0x1]  ;;  %v875_v44 = vld [vmem:[%s1718_s3 + $0x28] sm:$0xff]  ;;  %v406_v45 = vadd.f32 %v404_v30, %v390_v23  ;;  %v407_v46 = vadd.f32 %v405_v31, %v391_v24  ;;  %s380_s21 = scalar_lea.vmem %s1722_s7, %s1127_s18 }
  0x23   : > { %1286 = vmatpush3.msra.mxu0 %v878_v8  ;;  %v438_v47 = vmul.f32 %v1137_v29, %v431_v32  ;;  %v439_v48 = vmul.f32 %v1137_v29, %v432_v33  ;;  %v1146_v49 = vld [vmem:[%s1716_s1 + $0x8] ss:$0 sm:$0xff]  ;;  %v1147_v50 = vld [vmem:[%s1479_s30 + $0x18] sm:$0x1]  ;;  %v874_v51 = vld [vmem:[%s1718_s3 + $0x20] sm:$0xff]  ;;  %v1134_v53 = vrot.slane %v418_v39, 9  ;;  %v459_v54 = vmul.f32 %v1140_v36, %v452_v40 }
  0x24   : > { %1287 = vmatprep.subr.mxu0 %v1383_v5  ;;  %v1133_v52 = vrot.slane %v417_v38, 9  ;;  %v460_v55 = vmul.f32 %v1140_v36, %v453_v41  ;;  %v1148_v56 = vld [vmem:[%s1479_s30 + $0x1a] sm:$0x1]  ;;  %v1150_v57 = vld [vmem:[%s1716_s1 + $0x9] ss:$0 sm:$0xff]  ;;  %v474_v60 = vunpack.c.l.bf16 %v1143_v42  ;;  %v475_v61 = vunpack.c.l.bf16 %v1144_v43  ;;  %v872_v24 = vld [vmem:[%s1718_s3 + $0x10] sm:$0xff] }
  0x25   : > { %1288 = vmatpush3.msra.mxu0 %v877_v12  ;;  %v1138_v58 = vrot.slane %v438_v47, 9  ;;  %v1139_v59 = vrot.slane %v439_v48, 9  ;;  %v1151_v62 = vld [vmem:[%s1479_s30 + $0x10] sm:$0x3]  ;;  %v1152_v63 = vld [vmem:[%s1479_s30 + $0x12] sm:$0x3]  ;;  %v428_v1 = vadd.f32 %v1134_v53, %v407_v46  ;;  %v489_v10 = vunpack.c.l.bf16 %v1147_v50 }
  0x26   : > { %1289 = vmatprep.subr.mxu0 %v1383_v5  ;;  %v427_v0 = vadd.f32 %v1133_v52, %v406_v45  ;;  %v1141_v2 = vrot.slane %v459_v54, 10  ;;  %v1142_v3 = vrot.slane %v460_v55, 10  ;;  %v1157_v4 = vld [vmem:[%s1479_s30 + $0x18] sm:$0x3]  ;;  %v1158_v6 = vld [vmem:[%s1479_s30 + $0x1a] sm:$0x3]  ;;  %v482_v8 = vmul.f32 %v1146_v49, %v474_v60 }
  0x27   : > { %1290 = vmatpush3.msra.mxu0 %v876_v37  ;;  %v873_v7 = vld [vmem:[%s1718_s3 + $0x18] sm:$0xff]  ;;  %v483_v9 = vmul.f32 %v1146_v49, %v475_v61  ;;  %v490_v11 = vunpack.c.l.bf16 %v1148_v56  ;;  %v1154_v12 = vld [vmem:[%s1716_s1 + $0xa] ss:$0 sm:$0xff]  ;;  %v449_v14 = vadd.f32 %v1139_v59, %v428_v1  ;;  %v502_v15 = vunpack.c.l.bf16 %v1151_v62  ;;  %v1160_v17 = vld [vmem:[%s1716_s1 + $0xb] ss:$0 sm:$0xff] }
  0x28   : > { %1291 = vmatprep.subr.mxu0 %v1383_v5  ;;  %v448_v13 = vadd.f32 %v1138_v58, %v427_v0  ;;  %v503_v16 = vunpack.c.l.bf16 %v1152_v63  ;;  %v1163_v18 = vld [vmem:[%s1479_s30 + $0x10] sm:$0x2]  ;;  %v1164_v19 = vld [vmem:[%s1479_s30 + $0x12] sm:$0x2]  ;;  %v496_v20 = vmul.f32 %v1150_v57, %v489_v10  ;;  %v523_v22 = vunpack.c.l.bf16 %v1157_v4  ;;  %v1166_v29 = vld [vmem:[%s1716_s1 + $0xc] ss:$0 sm:$0xff] }
  0x29   : > { %1292 = vmatpush3.msra.mxu0 %v875_v44  ;;  %v497_v21 = vmul.f32 %v1150_v57, %v490_v11  ;;  %v524_v23 = vunpack.c.l.bf16 %v1158_v6  ;;  %v470_v26 = vadd.f32 %v1142_v3, %v449_v14  ;;  %v509_v27 = vmul.f32 %v1154_v12, %v502_v15  ;;  %v871_v30 = vld [vmem:[%s1718_s3 + $0x8] sm:$0xff]  ;;  %v1169_v35 = vld [vmem:[%s1479_s30 + $0x2] sm:$0x1]  ;;  %v1170_v36 = vld [vmem:[%s1479_s30 + $0x4] sm:$0x1] }
  0x2a   : > { %1293 = vmatprep.subr.mxu0 %v1383_v5  ;;  %v469_v25 = vadd.f32 %v1141_v2, %v448_v13  ;;  %v510_v28 = vmul.f32 %v1154_v12, %v503_v16  ;;  %v530_v31 = vmul.f32 %v1160_v17, %v523_v22  ;;  %v544_v33 = vunpack.c.l.bf16 %v1163_v18  ;;  %v1173_v41 = vld [vmem:[%s1479_s30 + $0xa] sm:$0x1]  ;;  %v1174_v42 = vld [vmem:[%s1479_s30 + $0xc] sm:$0x1]  ;;  %v870_v43 = vld [vmem:[%s1718_s3] sm:$0xff] }
  0x2b   : > { %1294 = vmatpush3.msra.mxu0 %v874_v51  ;;  %v531_v32 = vmul.f32 %v1160_v17, %v524_v23  ;;  %v545_v34 = vunpack.c.l.bf16 %v1164_v19  ;;  %v485_v38 = vadd.f32 %v483_v9, %v470_v26  ;;  %v1155_v39 = vrot.slane %v509_v27, 9  ;;  %v1172_v48 = vld [vmem:[%s1716_s1 + $0x10] ss:$0 sm:$0xff]  ;;  %v1176_v53 = vld [vmem:[%s1716_s1 + $0x11] ss:$0 sm:$0xff] }
  0x2c   : > { %1295 = vmatprep.subr.mxu0 %v1383_v5  ;;  %v484_v37 = vadd.f32 %v482_v8, %v469_v25  ;;  %v1156_v40 = vrot.slane %v510_v28, 9  ;;  %v1161_v44 = vrot.slane %v530_v31, 9  ;;  %v551_v46 = vmul.f32 %v1166_v29, %v544_v33  ;;  %v1177_v54 = vld [vmem:[%s1479_s30 + $0x2] sm:$0x3]  ;;  %v1178_v55 = vld [vmem:[%s1479_s30 + $0x4] sm:$0x3] }
  0x2d   : > { %1296 = vmatpush3.msra.mxu0 %v873_v7  ;;  %v1162_v45 = vrot.slane %v531_v32, 9  ;;  %v552_v47 = vmul.f32 %v1166_v29, %v545_v34  ;;  %v499_v50 = vadd.f32 %v497_v21, %v485_v38  ;;  %v566_v51 = vunpack.c.l.bf16 %v1169_v35  ;;  %v1183_v60 = vld [vmem:[%s1479_s30 + $0xa] sm:$0x3]  ;;  %v1184_v61 = vld [vmem:[%s1479_s30 + $0xc] sm:$0x3] }
  0x2e   : > { %1297 = vmatprep.subr.mxu0 %v1383_v5  ;;  %v498_v49 = vadd.f32 %v496_v20, %v484_v37  ;;  %v567_v52 = vunpack.c.l.bf16 %v1170_v36  ;;  %v1167_v56 = vrot.slane %v551_v46, 10  ;;  %v581_v58 = vunpack.c.l.bf16 %v1173_v41  ;;  %v1180_v2 = vld [vmem:[%s1716_s1 + $0x12] ss:$0 sm:$0xff]  ;;  %v1189_v3 = vld [vmem:[%s1479_s30 + $0x2] sm:$0x2] }
  0x2f   : > { %1298 = vmatpush3.msra.mxu0 %v872_v24  ;;  %v1168_v57 = vrot.slane %v552_v47, 10  ;;  %v582_v59 = vunpack.c.l.bf16 %v1174_v42  ;;  %v520_v63 = vadd.f32 %v1156_v40, %v499_v50  ;;  %v574_v0 = vmul.f32 %v1172_v48, %v566_v51  ;;  %v1190_v4 = vld [vmem:[%s1479_s30 + $0x4] sm:$0x2]  ;;  %v1186_v10 = vld [vmem:[%s1716_s1 + $0x13] ss:$0 sm:$0xff] }
  0x30   : > { %1299 = vmatprep.subr.mxu0 %v1383_v5  ;;  %v519_v62 = vadd.f32 %v1155_v39, %v498_v49  ;;  %v575_v1 = vmul.f32 %v1172_v48, %v567_v52  ;;  %v588_v6 = vmul.f32 %v1176_v53, %v581_v58  ;;  %v594_v8 = vunpack.c.l.bf16 %v1177_v54  ;;  %v1192_v15 = vld [vmem:[%s1716_s1 + $0x14] ss:$0 sm:$0xff]  ;;  %v1195_v24 = vld [vmem:[%s1479_s30 + $0x12] sm:$0x1]  ;;  %v1198_v28 = vld [vmem:[%s1716_s1 + $0x18] ss:$0 sm:$0xff] }
  0x31   : > { %1300 = vmatpush3.msra.mxu0 %v871_v30  ;;  %v589_v7 = vmul.f32 %v1176_v53, %v582_v59  ;;  %v595_v9 = vunpack.c.l.bf16 %v1178_v55  ;;  %v541_v12 = vadd.f32 %v1162_v45, %v520_v63  ;;  %v615_v13 = vunpack.c.l.bf16 %v1183_v60  ;;  %v1196_v25 = vld [vmem:[%s1479_s30 + $0x14] sm:$0x1]  ;;  %v1199_v29 = vld [vmem:[%s1479_s30 + $0x1a] sm:$0x1]  ;;  %v1200_v30 = vld [vmem:[%s1479_s30 + $0x1c] sm:$0x1] }
  0x32   : > { %1301 = vmatprep.subr.mxu0 %v1383_v5  ;;  %v540_v11 = vadd.f32 %v1161_v44, %v519_v62  ;;  %v616_v14 = vunpack.c.l.bf16 %v1184_v61  ;;  %v601_v16 = vmul.f32 %v1180_v2, %v594_v8  ;;  %v636_v18 = vunpack.c.l.bf16 %v1189_v3  ;;  %v1203_v35 = vld [vmem:[%s1479_s30 + $0x12] sm:$0x3]  ;;  %v1204_v36 = vld [vmem:[%s1479_s30 + $0x14] sm:$0x3]  ;;  %v1206_v41 = vld [vmem:[%s1716_s1 + $0x1a] ss:$0 sm:$0xff] }
  0x33   : > { %1302 = vmatpush3.msra.mxu0 %v870_v43  ;;  %v602_v17 = vmul.f32 %v1180_v2, %v595_v9  ;;  %v637_v19 = vunpack.c.l.bf16 %v1190_v4  ;;  %v562_v21 = vadd.f32 %v1168_v57, %v541_v12  ;;  %v622_v22 = vmul.f32 %v1186_v10, %v615_v13  ;;  %v1209_v42 = vld [vmem:[%s1479_s30 + $0x1a] sm:$0x3]  ;;  %v1210_v47 = vld [vmem:[%s1479_s30 + $0x1c] sm:$0x3]  ;;  %v1215_v48 = vld [vmem:[%s1479_s30 + $0x12] sm:$0x2] }
  0x34   : > { %v561_v20 = vadd.f32 %v1167_v56, %v540_v11  ;;  %v623_v23 = vmul.f32 %v1186_v10, %v616_v14  ;;  %v643_v26 = vmul.f32 %v1192_v15, %v636_v18  ;;  %v1181_v33 = vrot.slane %v601_v16, 9  ;;  %v1216_v53 = vld [vmem:[%s1479_s30 + $0x14] sm:$0x2]  ;;  %v969_v54 = vld [vmem:[%s1720_s5 + $0x58] sm:$0xff]  ;;  %v967_v2 = vld [vmem:[%s1720_s5 + $0x48] sm:$0xff] }
  0x35   : > { %v644_v27 = vmul.f32 %v1192_v15, %v637_v19  ;;  %v577_v32 = vadd.f32 %v575_v1, %v562_v21  ;;  %v1182_v34 = vrot.slane %v602_v17, 9  ;;  %v1187_v37 = vrot.slane %v622_v22, 9  ;;  %v968_v55 = vld [vmem:[%s1720_s5 + $0x50] sm:$0xff]  ;;  %v1212_v60 = vld [vmem:[%s1716_s1 + $0x1b] ss:$0 sm:$0xff]  ;;  %1307 = vmatpush3.msra.mxu1 %v969_v54  ;;  %v966_v11 = vld [vmem:[%s1720_s5 + $0x40] sm:$0xff] }
  0x36   : > { %v576_v31 = vadd.f32 %v574_v0, %v561_v20  ;;  %v1188_v38 = vrot.slane %v623_v23, 9  ;;  %v658_v39 = vunpack.c.l.bf16 %v1195_v24  ;;  %v659_v40 = vunpack.c.l.bf16 %v1196_v25  ;;  %v1202_v61 = vld [vmem:[%s1716_s1 + $0x19] ss:$0 sm:$0xff]  ;;  %1308 = vmatprep.subr.mxu1 %v1383_v5  ;;  %v1218_v8 = vld [vmem:[%s1716_s1 + $0x1c] ss:$0 sm:$0xff] }
  0x37   : > { %v591_v44 = vadd.f32 %v589_v7, %v577_v32  ;;  %v1193_v45 = vrot.slane %v643_v26, 10  ;;  %v1194_v46 = vrot.slane %v644_v27, 10  ;;  %v673_v49 = vunpack.c.l.bf16 %v1199_v29  ;;  %1309 = vmatpush3.msra.mxu1 %v968_v55  ;;  %v1221_v16 = vld [vmem:[%s1479_s30 + $0x4] sm:$0x1]  ;;  %v1222_v17 = vld [vmem:[%s1479_s30 + $0x6] sm:$0x1] }
  0x38   : > { %v590_v43 = vadd.f32 %v588_v6, %v576_v31  ;;  %v674_v50 = vunpack.c.l.bf16 %v1200_v30  ;;  %v686_v51 = vunpack.c.l.bf16 %v1203_v35  ;;  %v687_v52 = vunpack.c.l.bf16 %v1204_v36  ;;  %1310 = vmatprep.subr.mxu1 %v1383_v5  ;;  %v1225_v18 = vld [vmem:[%s1479_s30 + $0xc] sm:$0x1]  ;;  %v1229_v21 = vld [vmem:[%s1479_s30 + $0x4] sm:$0x3]  ;;  %v1230_v22 = vld [vmem:[%s1479_s30 + $0x6] sm:$0x3] }
  0x39   : > { %v612_v57 = vadd.f32 %v1182_v34, %v591_v44  ;;  %v666_v58 = vmul.f32 %v1198_v28, %v658_v39  ;;  %v667_v59 = vmul.f32 %v1198_v28, %v659_v40  ;;  %v707_v0 = vunpack.c.l.bf16 %v1209_v42  ;;  %1311 = vmatpush3.msra.mxu1 %v967_v2  ;;  %v965_v23 = vld [vmem:[%s1720_s5 + $0x38] sm:$0xff]  ;;  %v1226_v28 = vld [vmem:[%s1479_s30 + $0xe] sm:$0x1]  ;;  %v1235_v29 = vld [vmem:[%s1479_s30 + $0xc] sm:$0x3] }
  0x3a   : > { %v611_v56 = vadd.f32 %v1181_v33, %v590_v43  ;;  %v693_v62 = vmul.f32 %v1206_v41, %v686_v51  ;;  %v694_v63 = vmul.f32 %v1206_v41, %v687_v52  ;;  %v708_v1 = vunpack.c.l.bf16 %v1210_v47  ;;  %1312 = vmatprep.subr.mxu1 %v1383_v5  ;;  %v1236_v34 = vld [vmem:[%s1479_s30 + $0xe] sm:$0x3]  ;;  %v964_v35 = vld [vmem:[%s1720_s5 + $0x30] sm:$0xff]  ;;  %v1232_v41 = vld [vmem:[%s1716_s1 + $0x22] ss:$0 sm:$0xff] }
  0x3b   : > { %v633_v4 = vadd.f32 %v1188_v38, %v612_v57  ;;  %v728_v6 = vunpack.c.l.bf16 %v1215_v48  ;;  %v729_v7 = vunpack.c.l.bf16 %v1216_v53  ;;  %v714_v9 = vmul.f32 %v1212_v60, %v707_v0  ;;  %1313 = vmatpush3.msra.mxu1 %v966_v11  ;;  %v1224_v38 = vld [vmem:[%s1716_s1 + $0x20] ss:$0 sm:$0xff]  ;;  %v1241_v42 = vld [vmem:[%s1479_s30 + $0x4] sm:$0x2]  ;;  %v1242_v47 = vld [vmem:[%s1479_s30 + $0x6] sm:$0x2] }
  0x3c   : > { %v632_v3 = vadd.f32 %v1187_v37, %v611_v56  ;;  %v715_v10 = vmul.f32 %v1212_v60, %v708_v1  ;;  %v680_v14 = vmul.f32 %v1202_v61, %v673_v49  ;;  %v681_v15 = vmul.f32 %v1202_v61, %v674_v50  ;;  %1314 = vmatprep.subr.mxu1 %v1383_v5  ;;  %v963_v48 = vld [vmem:[%s1720_s5 + $0x28] sm:$0xff]  ;;  %v1228_v51 = vld [vmem:[%s1716_s1 + $0x21] ss:$0 sm:$0xff]  ;;  %v1244_v2 = vld [vmem:[%s1716_s1 + $0x24] ss:$0 sm:$0xff] }
  0x3d   : > { %v654_v13 = vadd.f32 %v1194_v46, %v633_v4  ;;  %v735_v19 = vmul.f32 %v1218_v8, %v728_v6  ;;  %v736_v20 = vmul.f32 %v1218_v8, %v729_v7  ;;  %v1207_v26 = vrot.slane %v693_v62, 9  ;;  %1315 = vmatpush3.msra.mxu1 %v965_v23 }
  0x3e   : > { %v653_v12 = vadd.f32 %v1193_v45, %v632_v3  ;;  %v1208_v27 = vrot.slane %v694_v63, 9  ;;  %v1213_v30 = vrot.slane %v714_v9, 9  ;;  %v1214_v31 = vrot.slane %v715_v10, 9  ;;  %1316 = vmatprep.subr.mxu1 %v1383_v5  ;;  %v961_v3 = vld [vmem:[%s1720_s5 + $0x18] sm:$0xff] }
  0x3f   : > { %v669_v25 = vadd.f32 %v667_v59, %v654_v13  ;;  %v750_v32 = vunpack.c.l.bf16 %v1221_v16  ;;  %v751_v33 = vunpack.c.l.bf16 %v1222_v17  ;;  %v778_v39 = vunpack.c.l.bf16 %v1229_v21  ;;  %1317 = vmatpush3.msra.mxu1 %v964_v35  ;;  %v962_v59 = vld [vmem:[%s1720_s5 + $0x20] sm:$0xff] }
  0x40   : > { %v668_v24 = vadd.f32 %v666_v58, %v653_v12  ;;  %v779_v40 = vunpack.c.l.bf16 %v1230_v22  ;;  %v1219_v43 = vrot.slane %v735_v19, 10  ;;  %v1220_v44 = vrot.slane %v736_v20, 10  ;;  %v1238_v58 = vld [vmem:[%s1716_s1 + $0x23] ss:$0 sm:$0xff]  ;;  %1318 = vmatprep.subr.mxu1 %v1383_v5 }
  0x41   : > { %v683_v37 = vadd.f32 %v681_v15, %v669_v25  ;;  %v765_v45 = vunpack.c.l.bf16 %v1225_v18  ;;  %v766_v46 = vunpack.c.l.bf16 %v1226_v28  ;;  %v799_v52 = vunpack.c.l.bf16 %v1235_v29  ;;  %1319 = vmatpush3.msra.mxu1 %v963_v48  ;;  %v1247_v25 = vld [vmem:[%s1717_s2] ss:$0 sm:$0xff] }
  0x42   : > { %v682_v36 = vadd.f32 %v680_v14, %v668_v24  ;;  %v800_v53 = vunpack.c.l.bf16 %v1236_v34  ;;  %v758_v54 = vmul.f32 %v1224_v38, %v750_v32  ;;  %v759_v55 = vmul.f32 %v1224_v38, %v751_v33  ;;  %1320 = vmatprep.subr.mxu1 %v1383_v5 }
  0x43   : > { %v704_v50 = vadd.f32 %v1208_v27, %v683_v37  ;;  %v785_v56 = vmul.f32 %v1232_v41, %v778_v39  ;;  %v786_v57 = vmul.f32 %v1232_v41, %v779_v40  ;;  %v820_v62 = vunpack.c.l.bf16 %v1241_v42  ;;  %1321 = vmatpush3.msra.mxu1 %v962_v59 }
  0x44   : > { %v703_v49 = vadd.f32 %v1207_v26, %v682_v36  ;;  %v821_v63 = vunpack.c.l.bf16 %v1242_v47  ;;  %v772_v0 = vmul.f32 %v1228_v51, %v765_v45  ;;  %v773_v1 = vmul.f32 %v1228_v51, %v766_v46  ;;  %1322 = vmatprep.subr.mxu1 %v1383_v5  ;;  %v959_v51 = vld [vmem:[%s1720_s5 + $0x8] sm:$0xff] }
  0x45   : > { %v725_v61 = vadd.f32 %v1214_v31, %v704_v50  ;;  %v806_v7 = vmul.f32 %v1238_v58, %v799_v52  ;;  %v807_v8 = vmul.f32 %v1238_v58, %v800_v53  ;;  %v1233_v9 = vrot.slane %v785_v56, 9  ;;  %1323 = vmatpush3.msra.mxu1 %v961_v3  ;;  %v960_v50 = vld [vmem:[%s1720_s5 + $0x10] sm:$0xff]  ;;  %v958_v52 = vld [vmem:[%s1720_s5] sm:$0xff] }
  0x46   : > { %v724_v60 = vadd.f32 %v1213_v30, %v703_v49  ;;  %v1234_v10 = vrot.slane %v786_v57, 9  ;;  %v827_v13 = vmul.f32 %v1244_v2, %v820_v62  ;;  %v828_v14 = vmul.f32 %v1244_v2, %v821_v63  ;;  %1324 = vmatprep.subr.mxu1 %v1383_v5  ;;  %v882_v53 = vld [vmem:[%s1719_s4] sm:$0x1] }
  0x47   : > { %v746_v6 = vadd.f32 %v1220_v44, %v725_v61  ;;  %v1239_v17 = vrot.slane %v806_v7, 9  ;;  %v1240_v18 = vrot.slane %v807_v8, 9  ;;  %1325 = vmatpush3.msra.mxu1 %v960_v50  ;;  %v1048_v58 = vlaneseq }
  0x48   : > { %v745_v4 = vadd.f32 %v1219_v43, %v724_v60  ;;  %v1245_v21 = vrot.slane %v827_v13, 10  ;;  %v1246_v22 = vrot.slane %v828_v14, 10  ;;  %1326 = vmatprep.subr.mxu1 %v1383_v5  ;;  %vm1056_vm3 = vcmask 778240  }
  0x49   : > { %v761_v12 = vadd.f32 %v759_v55, %v746_v6  ;;  %1327 = vmatpush3.msra.mxu1 %v959_v51  ;;  %v1049_v63 = vshrl.u32 %v1048_v58, 7 }
  0x4a   : > { %v760_v11 = vadd.f32 %v758_v54, %v745_v4  ;;  %1328 = vmatprep.subr.mxu1 %v1383_v5  ;;  %v970_v5 = vld [vmem:[%s1721_s6] sm:$0x1] }
  0x4b   : > { %v775_v16 = vadd.f32 %v773_v1, %v761_v12  ;;  %1329 = vmatpush3.msra.mxu1 %v958_v52  ;;  %v1050_v2 = vsub.s32 0, %v1049_v63 }
  0x4c   : > { %v774_v15 = vadd.f32 %v772_v0, %v760_v11 }
  0x4d   : > { %v796_v20 = vadd.f32 %v1234_v10, %v775_v16 }
  0x4e   : > { %v795_v19 = vadd.f32 %v1233_v9, %v774_v15 }
  0x4f   : > { %v817_v24 = vadd.f32 %v1240_v18, %v796_v20 }
  0x50   : > { %v816_v23 = vadd.f32 %v1239_v17, %v795_v19 }
  0x51   : > { %v838_v27 = vadd.f32 %v1246_v22, %v817_v24 }
  0x52   : > { %v837_v26 = vadd.f32 %v1245_v21, %v816_v23 }
  0x53   : > { %v847_v29 = vadd.f32 %v1247_v25, %v838_v27 }
  0x54   : > { %v846_v28 = vadd.f32 %v1247_v25, %v837_v26 }
  0x55   : > { %v849_v31 = vadd.f32 3.0, %v847_v29 }
  0x56   : > { %v848_v30 = vadd.f32 3.0, %v846_v28 }
  0x57   : > { %v851_v33 = vmax.f32 %v849_v31, 0.0 }
  0x58   : > { %v850_v32 = vmax.f32 %v848_v30, 0.0 }
  0x59   : > { %v853_v35 = vmin.f32 %v851_v33, 6.0 }
  0x5a   : > { %v852_v34 = vmin.f32 %v850_v32, 6.0 }
  0x5b   : > { %v855_v37 = vmul.f32 %v853_v35, %v847_v29 }
  0x5c   : > { %v854_v36 = vmul.f32 %v852_v34, %v846_v28 }
  0x5d   : > { %v857_v39 = vmul.f32 0.16666667, %v855_v37 }
  0x5e   : > { %v856_v38 = vmul.f32 0.16666667, %v854_v36 }
  0x5f   : > { %v860_v41 = vsel %vm858_vm1, %v857_v39, 0.0 }
  0x60   : > { %v859_v40 = vsel %vm858_vm1, %v856_v38, 0.0 }
  0x61   : > { %v861_v42 = vadd.f32 %v860_v41, %v859_v40 }
  0x63   : > { %v862_v43 = vrot.slane %v861_v42, 4 }
  0x65   : > { %v863_v44 = vadd.f32 %v862_v43, %v861_v42 }
  0x67   : > { %v864_v45 = vrot.slane %v863_v44, 2 }
  0x69   : > { %v865_v46 = vadd.f32 %v864_v45, %v863_v44 }
  0x6b   : > { %v866_v47 = vrot.slane %v865_v46, 1 }
  0x6d   : > { %v867_v48 = vadd.f32 %v866_v47, %v865_v46 }
  0x6f   : > { %v869_v49 = vmul.f32 0.25, %v867_v48 }
  0x71   : > { %1304 = vmatmul.mubr.msk.f32.vlgmr.msra.gmra.mxu0 %vm883_vm2, %v869_v49 }
 0x131   : > { %v953_v54 = vpop.f32.mrf.mxu0 }
 0x132   : > { %v954_v55 = vadd.f32 %v953_v54, %v882_v53 }
 0x133   : > { %v1305_v56 = vpop.f32.mrf.mxu0 }
 0x134   : > { %v957_v57 = vmax.f32 %v954_v55, 0.0 }
 0x136   : > { %1331 = vmatmul.mubr.msk.f32.vlgmr.msra.gmra.mxu1 %vm883_vm2, %v957_v57 }
 0x1f6   : > { %v1040_v59 = vpop.f32.mrf.mxu1 }
 0x1f7   : > { %v1041_v60 = vadd.f32 %v1040_v59, %v970_v5 }
 0x1f8   : > { %v1332_v61 = vpop.f32.mrf.mxu1 }
 0x1f9   : > { %v1044_v62 = vadd.f32 3.0, %v1041_v60 }
 0x1fb   : > { %v1045_v0 = vmax.f32 %v1044_v62, 0.0 }
 0x1fd   : > { %v1046_v1 = vmin.f32 %v1045_v0, 6.0 }
 0x1ff   : > { %v1047_v3 = vmul.f32 0.16666667, %v1046_v1 }
 0x201   : > { %v1051_v4 = vrot.slane %v1047_v3, %v1050_v2 }
 0x203   : > { %v1052_v6 = vmul.f32 %v1051_v4, %v856_v38  ;;  %v1053_v7 = vmul.f32 %v1051_v4, %v857_v39 }
 0x205   : > { %v1054_v8 = vpack.c.bf16 %v1052_v6, %v1052_v6  ;;  %v1055_v9 = vpack.c.bf16 %v1053_v7, %v1053_v7 }
 0x207   : > { %1057 = vst.msk [vmem:[%s380_s21] sm:$0x1] %vm1056_vm3, %v1054_v8  ;;  %1058 = vst.msk [vmem:[%s380_s21 + $0x1] sm:$0x1] %vm1056_vm3, %v1055_v9 }
 0x208 PF: > { %p14_p9 = scmp.ge.s32.totalorder %s1442_s28, 4   ;;  %s1723_s24 = smov %s1377_s25 }
 0x209   : > { %s1724_s25 = smov %s1451_s8  ;;  %s1725_s26 = smov %s1442_s28 }
 0x20a   :  { %16 = sbr.rel (!%p14_p9) target bundleno = 2 (0x2), region = 137 }

</bundles_post_ra>
